<compile_context>
chip_gen: v7x
topology: tpu7x:2x2x1
jax: 0.10.0
libtpu: 0.0.40
codegen_flags: <defaults>
</compile_context>

<pallas_src>
import jax
import jax.numpy as jnp
from jax.experimental import pallas as pl
from jax.experimental.pallas import tpu as pltpu

NOISE_DIM = 10
NUM_CLASSES = 2
IMAGE_CHANNELS = 1
IMG_HW = 256
OUT_FEATURES = IMAGE_CHANNELS * IMG_HW * IMG_HW  # 65536

H1, H2, H3 = 256, 512, 1024
B_PAD = 8          # pad batch to sublane multiple (8)
TN = 2048          # output-column tile of the final (1024 x 65536) matmul


def _final_layer_kernel(h_ref, w4_ref, b4_ref, out_ref):
    # h: (B_PAD, H3) bf16, w4 tile: (H3, TN) bf16, b4 tile: (1, TN) f32.
    acc = jnp.dot(h_ref[...], w4_ref[...], preferred_element_type=jnp.float32)
    out_ref[...] = jnp.tanh(acc + b4_ref[...])


def generator_final_layer(h_bf16, w4_bf16, b4):
    """h_bf16: (B_PAD, H3) bf16, w4_bf16: (H3, OUT) bf16, b4: (1, OUT) f32.
    Returns (B_PAD, OUT_FEATURES) f32 = tanh(h @ w4 + b4)."""
    n_tiles = OUT_FEATURES // TN

    cost = pl.CostEstimate(
        flops=2 * B_PAD * H3 * OUT_FEATURES,
        transcendentals=B_PAD * OUT_FEATURES,
        bytes_accessed=(H3 * OUT_FEATURES * 2      # w4 (bf16)
                        + OUT_FEATURES * 4         # b4 (f32)
                        + B_PAD * H3 * 2           # h  (bf16)
                        + B_PAD * OUT_FEATURES * 4),  # out (f32)
    )

    grid_spec = pltpu.PrefetchScalarGridSpec(
        num_scalar_prefetch=0,
        grid=(n_tiles,),
        in_specs=[
            pl.BlockSpec((B_PAD, H3), lambda j: (0, 0)),   # grid-invariant h
            pl.BlockSpec((H3, TN), lambda j: (0, j)),      # w4 column tile
            pl.BlockSpec((1, TN), lambda j: (0, j)),       # b4 column tile
        ],
        out_specs=pl.BlockSpec((B_PAD, TN), lambda j: (0, j)),
    )

    return pl.pallas_call(
        _final_layer_kernel,
        out_shape=jax.ShapeDtypeStruct((B_PAD, OUT_FEATURES), jnp.float32),
        grid_spec=grid_spec,
        compiler_params=pltpu.CompilerParams(
            dimension_semantics=("parallel",),   # no cross-tile dependence
            vmem_limit_bytes=32 << 20,           # generous headroom on all gens
        ),
        cost_estimate=cost,
    )(h_bf16, w4_bf16, b4)


def generator_forward(noise, labels, label_emb, params):
    """noise: (B, NOISE_DIM) f32, labels: (B,) int32 -> (B, 1, 256, 256) f32."""
    w1, b1, w2, b2, w3, b3, w4_bf16, b4 = params
    B = noise.shape[0]

    # Glue + tiny first-three-layer MLP in plain JAX (negligible vs w4 stream).
    emb = jnp.take(label_emb, labels, axis=0)             # (B, NOISE_DIM)
    x = jnp.concatenate([noise, emb], axis=1)             # (B, 2*NOISE_DIM)
    h = jnp.maximum(x @ w1 + b1, 0.0)                     # (B, 256)
    h = jnp.maximum(h @ w2 + b2, 0.0)                     # (B, 512)
    h = jnp.maximum(h @ w3 + b3, 0.0)                     # (B, 1024)

    # Pad batch to a sublane multiple and cast to bf16 for the MXU.
    h_pad = jnp.zeros((B_PAD, H3), jnp.float32).at[:B].set(h)
    h_bf16 = h_pad.astype(jnp.bfloat16)

    out = generator_final_layer(h_bf16, w4_bf16, b4)      # (B_PAD, 65536) f32
    img = out[:B].reshape(B, IMAGE_CHANNELS, IMG_HW, IMG_HW)
    return img


def init_params(key):
    ks = jax.random.split(key, 9)
    scale = 0.02
    label_emb = scale * jax.random.normal(ks[0], (NUM_CLASSES, NOISE_DIM), jnp.float32)
    w1 = scale * jax.random.normal(ks[1], (2 * NOISE_DIM, H1), jnp.float32)
    b1 = scale * jax.random.normal(ks[2], (1, H1), jnp.float32)
    w2 = scale * jax.random.normal(ks[3], (H1, H2), jnp.float32)
    b2 = scale * jax.random.normal(ks[4], (1, H2), jnp.float32)
    w3 = scale * jax.random.normal(ks[5], (H2, H3), jnp.float32)
    b3 = scale * jax.random.normal(ks[6], (1, H3), jnp.float32)
    # Final-layer weight lives in HBM as bf16 (halves the dominant stream).
    w4 = (scale * jax.random.normal(ks[7], (H3, OUT_FEATURES), jnp.float32)
          ).astype(jnp.bfloat16)
    b4 = scale * jax.random.normal(ks[8], (1, OUT_FEATURES), jnp.float32)
    return label_emb, (w1, b1, w2, b2, w3, b3, w4, b4)


def reference_forward(noise, labels, label_emb, params):
    """Pure-JAX reference using the same bf16 final-layer weight."""
    w1, b1, w2, b2, w3, b3, w4_bf16, b4 = params
    emb = jnp.take(label_emb, labels, axis=0)
    x = jnp.concatenate([noise, emb], axis=1)
    h = jnp.maximum(x @ w1 + b1, 0.0)
    h = jnp.maximum(h @ w2 + b2, 0.0)
    h = jnp.maximum(h @ w3 + b3, 0.0)
    acc = jnp.dot(h.astype(jnp.bfloat16), w4_bf16,
                  preferred_element_type=jnp.float32)
    out = jnp.tanh(acc + b4)
    return out.reshape(noise.shape[0], IMAGE_CHANNELS, IMG_HW, IMG_HW)


if __name__ == "__main__":
    key = jax.random.PRNGKey(0)
    k_param, k_noise, k_label = jax.random.split(key, 3)

    label_emb, params = init_params(k_param)

    B = 2
    noise = jax.random.normal(k_noise, (B, NOISE_DIM), jnp.float32)
    labels = jax.random.randint(k_label, (B,), 0, NUM_CLASSES, jnp.int32)

    img = generator_forward(noise, labels, label_emb, params)
    img = jax.block_until_ready(img)
    assert img.shape == (B, IMAGE_CHANNELS, IMG_HW, IMG_HW)
    assert img.dtype == jnp.float32

    ref = jax.block_until_ready(reference_forward(noise, labels, label_emb, params))
    assert jnp.allclose(img, ref, atol=1e-3, rtol=1e-3), float(
        jnp.max(jnp.abs(img - ref)))

    print("KERNEL_OK")
</pallas_src>

<mosaic_0001>
module attributes {stable_mosaic.version = 11 : i64} {
  func.func @_final_layer_kernel(%arg0: i32, %arg1: memref<8x1024xbf16, #tpu.memory_space<vmem>>, %arg2: memref<1024x2048xbf16, #tpu.memory_space<vmem>>, %arg3: memref<1x2048xf32, #tpu.memory_space<vmem>>, %arg4: memref<8x2048xf32, #tpu.memory_space<vmem>>) attributes {dimension_semantics = [#tpu.dimension_semantics<parallel>], iteration_bounds = array<i64: 32>, scalar_prefetch = 0 : i64, scratch_operands = 0 : i64, tpu.core_type = #tpu.core_type<tc>, window_params = [{pipeline_mode = #tpu.pipeline_mode<synchronous>, transform_indices = @transform_0, window_bounds = array<i64: 8, 1024>}, {transform_indices = @transform_1, window_bounds = array<i64: 1024, 2048>}, {transform_indices = @transform_2, window_bounds = array<i64: 1, 2048>}, {transform_indices = @transform_3, window_bounds = array<i64: 8, 2048>}]} {
    %c0 = arith.constant 0 : index
    %c0_0 = arith.constant 0 : index
    %0 = vector.load %arg1[%c0, %c0_0] : memref<8x1024xbf16, #tpu.memory_space<vmem>>, vector<8x1024xbf16>
    %c0_1 = arith.constant 0 : index
    %c0_2 = arith.constant 0 : index
    %1 = vector.load %arg2[%c0_1, %c0_2] : memref<1024x2048xbf16, #tpu.memory_space<vmem>>, vector<1024x2048xbf16>
    %cst = arith.constant dense<0.000000e+00> : vector<8x2048xf32>
    %2 = tpu.matmul %0, %1, %cst {dimension_numbers = #tpu.dot_dimension_numbers<[1], [0], [0], [1], [0, 0, 1, 1], [], []>} : vector<8x1024xbf16>, vector<1024x2048xbf16>, vector<8x2048xf32> -> vector<8x2048xf32>
    %c0_3 = arith.constant 0 : index
    %c0_4 = arith.constant 0 : index
    %3 = vector.load %arg3[%c0_3, %c0_4] : memref<1x2048xf32, #tpu.memory_space<vmem>>, vector<1x2048xf32>
    %4 = vector.broadcast %3 : vector<1x2048xf32> to vector<8x2048xf32>
    %5 = arith.addf %2, %4 : vector<8x2048xf32>
    %6 = math.tanh %5 : vector<8x2048xf32>
    %c0_5 = arith.constant 0 : index
    %c0_6 = arith.constant 0 : index
    %7 = vector.load %arg4[%c0_5, %c0_6] : memref<8x2048xf32, #tpu.memory_space<vmem>>, vector<8x2048xf32>
    tpu.vector_store %arg4[%c0_5, %c0_6], %6 {strides = array<i32>} : memref<8x2048xf32, #tpu.memory_space<vmem>>, vector<8x2048xf32>,
    return
  }
  func.func @transform_0(%arg0: i32) -> (i32, i32) {
    %c0_i32 = arith.constant 0 : i32
    %c0_i32_0 = arith.constant 0 : i32
    %c0_i32_1 = arith.constant 0 : i32
    return %c0_i32, %c0_i32_0 : i32, i32
  }
  func.func @transform_1(%arg0: i32) -> (i32, i32) {
    %c0_i32 = arith.constant 0 : i32
    %c0_i32_0 = arith.constant 0 : i32
    return %c0_i32, %arg0 : i32, i32
  }
  func.func @transform_2(%arg0: i32) -> (i32, i32) {
    %c0_i32 = arith.constant 0 : i32
    %c0_i32_0 = arith.constant 0 : i32
    return %c0_i32, %arg0 : i32, i32
  }
  func.func @transform_3(%arg0: i32) -> (i32, i32) {
    %c0_i32 = arith.constant 0 : i32
    %c0_i32_0 = arith.constant 0 : i32
    return %c0_i32, %arg0 : i32, i32
  }
}

</mosaic_0001>

<bundles_post_ra>
// kernel: tpu_custom_call.1
= control target key start
LH: loop header
LB: loop body
LE: loop exit
PB: predicated region body
PF: predicated region fallthrough
CT: control target
= control target key end

     0   :  { %8 = vsyncpa [#allocation3], 0  ;;  %s10860_s0 = inlined_call_operand.hbm [shape: bf16[8,1024], index: 0, kind: input, shape index: {}]   ;;  %s10861_s1 = inlined_call_operand.hbm [shape: bf16[1024,65536], index: 1, kind: input, shape index: {}]   ;;  %s10862_s2 = inlined_call_operand.hbm [shape: f32[1,65536], index: 2, kind: input, shape index: {}]   ;;  %s10863_s3 = inlined_call_operand.hbm [shape: f32[8,65536], index: 3, kind: output, shape index: {}]  }
   0x1   :  { %9 = vsyncpa [#allocation6], 0 }
   0x2   :  { %11 = vsyncpa [#allocation6 + $0x1], 0 }
   0x3   :  { %12 = vsyncpa [#allocation4], 0 }
   0x4   :  { %14 = vsyncpa [#allocation4 + $0x1], 0  ;;  %s9421_s12 = smov 0   ;;  %s9423_s13 = smov 0  }
   0x5   :  { %s9425_s14 = smov 0   ;;  %s9427_s15 = smov 0  }
   0x6 LB: > { %s9442_s16 = sadd.s32 1, %s9392_s15   ;;  %s48_s17 = sadd.s32 1, %s9388_s14  ;;  %s9392_s15 = sphi %s9427_s15, %s10889_s15   ;;  %s9388_s14 = sphi %s9425_s14, %s10888_s14   ;;  %s9384_s13 = sphi %s9423_s13, %s10887_s13   ;;  %s9380_s12 = sphi %s9421_s12, %s10886_s12  }
   0x7   : > { %s45_s18 = ssub.s32 %s9392_s15, %s9442_s16  ;;  %p55_p0 = scmp.ne.s32.totalorder %s9388_s14, %s9384_s13 }
   0x8   : > { %p46_p1 = scmp.eq.s32.totalorder %s45_s18, 0  ;;  %p56_p2 = scmp.eq.s32.totalorder %s9392_s15, 0 }
   0x9   : > { %p9154_p3 = scmp.lt.s32.totalorder %s9392_s15, 32  ;;  %s148_s20 = sand.u32 1, %s9392_s15  }
   0xa   : > { %s9452_s19 = scalar_select %p46_p1, %s9388_s14, %s48_s17  }
   0xb   : > { %p57_p4 = por %p56_p2, %p55_p0  ;;  %s150_s21 = sand.u32 1, %s9388_s14  }
   0xc   : > { %s7965_s22 = sshll.u32 %s150_s21, 13  ;;  %s9013_s23 = sshll.u32 %s9392_s15, 10 }
   0xd   : > { %s9465_s26 = scalar_lea.hbm %s10861_s1, %s9013_s23  ;;  %s152_s27 = scalar_lea.vmem [#allocation5], %s7965_s22 }
   0xe   : > { %s159_s28 = sshll.u32 %s152_s27, 4  ;;  %p9467_p5 = pnand %p9154_p3, %p57_p4  ;;  %s9471_s28 = int_to_ptr.vmem [resolvable:$true] %s159_s28 }
   0xf   : > { %s9473_s30 = scalar_lea.sflag [#allocation6], %s148_s20  ;;  %s9234_s4 = scalar_lea.hbm %s9465_s26, 131072 }
  0x10   : > { %s10871_s29 = scalar_select %p9467_p5, 1, 0 }
  0x11   : > { %p9235_p6 = scmp.ne.s32.totalorder %s9465_s26, %s9234_s4  ;;  %p10865_p7 = pneg %p9467_p5 }
  0x12   : > { %s9239_s7 = scalar_lea.hbm %s10861_s1, 4194304  ;;  %p9240_p10 = scmp.lt.u32.totalorder %s9465_s26, %s10861_s1 }
  0x13   : > { %p9237_p8 = pnand %p10865_p7, %p9235_p6  ;;  %p9241_p11 = scmp.lt.u32.totalorder %s9239_s7, %s9234_s4 }
  0x14   : > { %p9243_p13 = scmp.lt.u32.totalorder %s9234_s4, %s9465_s26 }
  0x15   : > { %p9238_p9 = pneg %p9237_p8  ;;  %p9242_p12 = por %p9241_p11, %p9240_p10 }
  0x17   : > { %p9244_p1 = por %p9243_p13, %p9242_p12 }
  0x19   : > { %p9245_p2 = pnand %p9244_p1, %p9238_p9 }
  0x1b   : > { %9248 = shalt.err (!%p9245_p2)
}
  0x1c   : > { %s9249_s10 = scalar_lea.vmem %s9471_s28, 131072  ;;  %s9394_s11 = smov [#allocation5]  }
  0x1d   : > { %p9250_p3 = scmp.ne.s32.totalorder %s9471_s28, %s9249_s10  ;;  %s9254_s17 = sshll.u32 %s9394_s11, 4  ;;  %s9255_s17 = int_to_ptr.vmem [resolvable:$false] %s9254_s17 }
  0x1e   : > { %s9256_s18 = scalar_lea.vmem %s9255_s17, 262144  ;;  %p9257_p8 = scmp.lt.s32.totalorder %s9471_s28, %s9255_s17 }
  0x1f   : > { %p9252_p4 = pnand %p9250_p3, %p10865_p7  ;;  %p9258_p10 = scmp.lt.s32.totalorder %s9256_s18, %s9249_s10 }
  0x21   : > { %p9253_p6 = pneg %p9252_p4  ;;  %p9259_p11 = por %p9258_p10, %p9257_p8 }
  0x23   : > { %p9260_p12 = pnand %p9259_p11, %p9253_p6 }
  0x25   : > { %9263 = shalt.err (!%p9260_p12)
}
  0x26   : > { %s9395_s20 = smov 32768   ;;  %s9396_s22 = smov 1024  }
  0x27   : > { %s9397_s23 = smov 64   ;;  %s9502_s24 = sadd.s32 4294967295, %s9392_s15  }
  0x28   : > { %9145 = dma.hbm_to_vmem [thread:$0]  (!%p9467_p5), %s9465_s26, 131072, %s9471_s28, %s9473_s30, %s9395_s20, %s9396_s22, %s9397_s23  }
  0x29   : > { %s7961_s25 = sadd.s32 4294967294, %s9392_s15   ;;  %p61_p9 = scmp.ne.s32.totalorder %s9384_s13, %s9380_s12 }
  0x2a   : > { %p10864_p13 = scmp.eq.s32.totalorder %s9502_s24, 0  ;;  %p111_p1 = scmp.eq.s32.totalorder %s9502_s24, 31 }
  0x2b   : > { %p117_p2 = scmp.eq.s32.totalorder %s7961_s25, 31  ;;  %p7962_p3 = scmp.ge.s32.totalorder %s9392_s15, 1 }
  0x2c   : > { %p9512_p4 = por %p10864_p13, %p61_p9  ;;  %p9519_p6 = por %p111_p1, %p55_p0 }
  0x2d   : > { %p9523_p8 = por %p117_p2, %p61_p9  ;;  %p124_p10 = scmp.lt.s32.totalorder %s9392_s15, 33 }
  0x2e   : > { %s10872_s27 = scalar_select %p9512_p4, 1, 0 }
  0x2f   : > { %s10873_s26 = scalar_select %p9519_p6, 1, 0 }
  0x30   : > { %s10874_s28 = scalar_select %p9523_p8, 1, 0 }
  0x31   : > { %p9528_p11 = pnand %p7962_p3, %p124_p10  ;;  %s9398_s5 = smov [#allocation2]  }
  0x32   : > { %s137_s6 = sshll.u32 %s9398_s5, 4  ;;  %s7968_s7 = sshll.u32 %s150_s21, 4  ;;  %s138_s6 = int_to_ptr.vmem [resolvable:$true] %s137_s6 }
  0x33   : > { %s10875_s4 = scalar_select %p9528_p11, 1, 0 }
  0x34   : > { %p9138_p12 = pneg %p9528_p11  ;;  %s9014_s8 = sshll.u32 %s9392_s15, 8 }
  0x35   : > { %s173_s9 = scalar_lea.vmem [#allocation7], %s7968_s7  ;;  %s9546_s20 = scalar_lea.hbm %s10862_s2, %s9014_s8 }
  0x36   : > { %s181_s10 = sshll.u32 %s173_s9, 4  ;;  %p9539_p0 = pnand %p9138_p12, %p10864_p13  ;;  %s9548_s10 = int_to_ptr.vmem [resolvable:$true] %s181_s10 }
  0x37   : > { %s9264_s23 = scalar_lea.hbm %s10860_s0, 512 }
  0x38   : > { %p9265_p9 = scmp.ne.s32.totalorder %s10860_s0, %s9264_s23  ;;  %p9266_p1 = pneg %p9539_p0 }
  0x39   : > { %p9271_p10 = scmp.lt.u32.totalorder %s9264_s23, %s10860_s0 }
  0x3a   : > { %p9267_p2 = pnand %p9266_p1, %p9265_p9 }
  0x3c   : > { %p9268_p3 = pneg %p9267_p2 }
  0x3e   : > { %p9273_p12 = pnand %p9271_p10, %p9268_p3 }
  0x40   : > { %9276 = shalt.err (!%p9273_p12)
}
  0x41   : > { %s9277_s8 = scalar_lea.vmem %s138_s6, 512  ;;  %p9285_p6 = scmp.lt.s32.totalorder %s138_s6, %s138_s6 }
  0x42   : > { %p9278_p13 = scmp.ne.s32.totalorder %s138_s6, %s9277_s8  ;;  %p9286_p4 = scmp.lt.s32.totalorder %s9277_s8, %s9277_s8 }
  0x44   : > { %p9280_p7 = pnand %p9278_p13, %p9266_p1  ;;  %p9287_p11 = por %p9286_p4, %p9285_p6 }
  0x46   : > { %p9281_p8 = pneg %p9280_p7 }
  0x48   : > { %p9288_p5 = pnand %p9287_p11, %p9281_p8 }
  0x4a   : > { %9291 = shalt.err (!%p9288_p5)
}
  0x4b   : > { %9141 = dma.hbm_to_vmem [thread:$0]  (!%p9539_p0), %s10860_s0, 512, %s138_s6, [#allocation3]  }
  0x4c   : > { %s9292_s21 = scalar_lea.hbm %s9546_s20, 256  ;;  %p10877_p13 = scmp.ne.s32.totalorder %s10871_s29, 0 }
  0x4d   : > { %p9293_p9 = scmp.ne.s32.totalorder %s9546_s20, %s9292_s21  ;;  %s9297_s25 = scalar_lea.hbm %s10862_s2, 8192 }
  0x4e   : > { %p10878_p7 = pneg %p10877_p13  ;;  %p9298_p5 = scmp.lt.u32.totalorder %s9546_s20, %s10862_s2 }
  0x4f   : > { %p9299_p4 = scmp.lt.u32.totalorder %s9297_s25, %s9292_s21  ;;  %p9301_p8 = scmp.lt.u32.totalorder %s9292_s21, %s9546_s20 }
  0x50   : > { %p9295_p1 = pnand %p9293_p9, %p10878_p7 }
  0x51   : > { %p9300_p6 = por %p9299_p4, %p9298_p5 }
  0x52   : > { %p9296_p2 = pneg %p9295_p1 }
  0x53   : > { %p9302_p11 = por %p9301_p8, %p9300_p6 }
  0x55   : > { %p9303_p3 = pnand %p9302_p11, %p9296_p2 }
  0x57   : > { %9306 = shalt.err (!%p9303_p3)
}
  0x58   : > { %s9307_s6 = scalar_lea.vmem %s9548_s10, 256  ;;  %p10879_p10 = pmov %p10878_p7 }
  0x59   : > { %p9308_p0 = scmp.ne.s32.totalorder %s9548_s10, %s9307_s6  ;;  %s9399_s7 = smov [#allocation7]  }
  0x5a   : > { %s9312_s9 = sshll.u32 %s9399_s7, 4  ;;  %s9313_s9 = int_to_ptr.vmem [resolvable:$false] %s9312_s9 }
  0x5b   : > { %p9310_p12 = pnand %p9308_p0, %p10879_p10  ;;  %s9314_s8 = scalar_lea.vmem %s9313_s9, 512 }
  0x5c   : > { %p9315_p7 = scmp.lt.s32.totalorder %s9548_s10, %s9313_s9  ;;  %p9316_p1 = scmp.lt.s32.totalorder %s9314_s8, %s9307_s6 }
  0x5d   : > { %p9311_p9 = pneg %p9310_p12 }
  0x5e   : > { %p9317_p5 = por %p9316_p1, %p9315_p7 }
  0x60   : > { %p9318_p4 = pnand %p9317_p5, %p9311_p9 }
  0x62   : > { %9321 = shalt.err (!%p9318_p4)
}
  0x63   : > { %9148 = dma.hbm_to_vmem [thread:$0]  (!%p10877_p13), %s9546_s20, 256, %s9548_s10, %s9473_s30  }
  0x64   : > { %p10880_p2 = scmp.ne.s32.totalorder %s10875_s4, 0 }
  0x65   : > { %p10881_p6 = scmp.eq.s32.totalorder (!%p10880_p2), %s9502_s24, 0 }
  0x66   : > { %190 = sbr.rel (%p10880_p2) target bundleno = 1385 (0x569), region = 32 }
  0x6d   : > { %9367 = dma.done.wait (%p10881_p6), [#allocation3], 512   ;;  %p10882_p8 = pmov %p10881_p6 }
  0x6e   : > { %s196_s17 = sand.u32 1, %s9502_s24   ;;  %s9598_s18 = sand.u32 1, %s9384_s13  }
  0x6f   : > { %9369 = vsyncadd (%p10882_p8), [#allocation3], 4294966784  ;;  %s7973_s29 = sshll.u32 %s9598_s18, 13  ;;  %s197_s21 = scalar_lea.sflag [#allocation6], %s196_s17 }
  0x70   : > { %s9601_s22 = scalar_lea.vmem [#allocation5], %s7973_s29  ;;  %p10883_p13 = scmp.ne.s32.totalorder %s10872_s27, 0 }
  0x72   : > { %9371 = dma.done.wait (%p10883_p13), %s197_s21, 131328  }
  0x73   : > { %9373 = vsyncadd (%p10883_p13), %s197_s21, 4294835968  ;;  %v244_v0 = vld [vmem:[%s9601_s22] sm:$0xff]  ;;  %v245_v2 = vld [vmem:[%s9601_s22 + $0x8] sm:$0xff]  ;;  %s7974_s30 = sshll.u32 %s9598_s18, 4  ;;  %s7975_s4 = sshll.u32 %s9598_s18, 7 }
  0x74   : > { %v252_v1 = vld [vmem:[%s9601_s22 + $0x40] sm:$0xff]  ;;  %v253_v4 = vld [vmem:[%s9601_s22 + $0x48] sm:$0xff]  ;;  %s10153_s27 = scalar_lea.vmem [#allocation7], %s7974_s30  ;;  %s10188_s10 = scalar_lea.vmem [#allocation8], %s7975_s4 }
  0x75   : > { %v7985_v3 = vcombine.high %v244_v0, %v252_v1  ;;  %v7984_v5 = vcombine.low %v244_v0, %v252_v1  ;;  %v260_v6 = vld [vmem:[%s9601_s22 + $0x80] sm:$0xff]  ;;  %v7987_v8 = vcombine.high %v245_v2, %v253_v4  ;;  %v7986_v9 = vcombine.low %v245_v2, %v253_v4  ;;  %v261_v11 = vld [vmem:[%s9601_s22 + $0x88] sm:$0xff]  ;;  %s9015_s20 = sshll.u32 %s9502_s24, 11  ;;  %s7859_s23 = sshll.u32 %s10188_s10, 4  ;;  %s10817_s23 = int_to_ptr.vmem [resolvable:$true] %s7859_s23 }
  0x76   : > { %v268_v7 = vld [vmem:[%s9601_s22 + $0xc0] sm:$0xff]  ;;  %v269_v12 = vld [vmem:[%s9601_s22 + $0xc8] sm:$0xff]  ;;  %s10815_s5 = scalar_lea.hbm %s10863_s3, %s9015_s20  ;;  %s7845_s24 = scalar_lea.sflag [#allocation4], %s9598_s18 }
  0x77   : > { %v8001_v10 = vcombine.high %v260_v6, %v268_v7  ;;  %v276_v13 = vld [vmem:[%s9601_s22 + $0x100] sm:$0xff]  ;;  %6500 = vmatprep.subr.bf16.mxu0 %v7985_v3  ;;  %v8003_v14 = vcombine.high %v261_v11, %v269_v12  ;;  %v277_v16 = vld [vmem:[%s9601_s22 + $0x108] sm:$0xff]  ;;  %6664 = vmatprep.subr.bf16.mxu1 %v7987_v8  ;;  %v8000_v18 = vcombine.low %v260_v6, %v268_v7  ;;  %s9322_s6 = scalar_lea.vmem %s10817_s23, 2048  ;;  %p10884_p3 = scmp.ne.s32.totalorder %s10873_s26, 0 }
  0x78   : > { %v284_v15 = vld [vmem:[%s9601_s22 + $0x140] sm:$0xff]  ;;  %v285_v17 = vld [vmem:[%s9601_s22 + $0x148] sm:$0xff]  ;;  %6501 = vmatpush1.bf16.msra.mxu0 %v7984_v5  ;;  %6665 = vmatpush1.bf16.msra.mxu1 %v7986_v9  ;;  %v8002_v19 = vcombine.low %v261_v11, %v269_v12  ;;  %p9323_p11 = scmp.ne.s32.totalorder %s10817_s23, %s9322_s6  ;;  %s9400_s7 = smov [#allocation8]  }
  0x79   : > { %6502 = vmatprep.subr.bf16.mxu0 %v8001_v10  ;;  %v8017_v20 = vcombine.high %v276_v13, %v284_v15  ;;  %6666 = vmatprep.subr.bf16.mxu1 %v8003_v14  ;;  %v8019_v21 = vcombine.high %v277_v16, %v285_v17  ;;  %v292_v22 = vld [vmem:[%s9601_s22 + $0x180] sm:$0xff]  ;;  %v293_v24 = vld [vmem:[%s9601_s22 + $0x188] sm:$0xff]  ;;  %v8016_v26 = vcombine.low %v276_v13, %v284_v15  ;;  %s9326_s9 = sshll.u32 %s9400_s7, 4  ;;  %s9327_s9 = int_to_ptr.vmem [resolvable:$false] %s9326_s9 }
  0x7a   : > { %v300_v23 = vld [vmem:[%s9601_s22 + $0x1c0] sm:$0xff]  ;;  %v301_v25 = vld [vmem:[%s9601_s22 + $0x1c8] sm:$0xff]  ;;  %v8018_v27 = vcombine.low %v277_v16, %v285_v17  ;;  %p9324_p0 = pnand %p9323_p11, %p10884_p3  ;;  %s9328_s8 = scalar_lea.vmem %s9327_s9, 4096 }
  0x7b   : > { %v8033_v28 = vcombine.high %v292_v22, %v300_v23  ;;  %v8035_v29 = vcombine.high %v293_v24, %v301_v25  ;;  %v308_v30 = vld [vmem:[%s9601_s22 + $0x200] sm:$0xff]  ;;  %v309_v32 = vld [vmem:[%s9601_s22 + $0x208] sm:$0xff]  ;;  %v8032_v34 = vcombine.low %v292_v22, %v300_v23  ;;  %v8034_v35 = vcombine.low %v293_v24, %v301_v25  ;;  %p9329_p12 = scmp.lt.s32.totalorder %s10817_s23, %s9327_s9  ;;  %p9330_p9 = scmp.lt.s32.totalorder %s9328_s8, %s9322_s6 }
  0x7c   : > { %6503 = vmatpush1.bf16.msra.mxu0 %v8000_v18  ;;  %6667 = vmatpush1.bf16.msra.mxu1 %v8002_v19  ;;  %v316_v31 = vld [vmem:[%s9601_s22 + $0x240] sm:$0xff]  ;;  %v317_v33 = vld [vmem:[%s9601_s22 + $0x248] sm:$0xff]  ;;  %p9325_p10 = pneg %p9324_p0 }
  0x7d   : > { %6504 = vmatprep.subr.bf16.mxu0 %v8017_v20  ;;  %6668 = vmatprep.subr.bf16.mxu1 %v8019_v21  ;;  %v8049_v36 = vcombine.high %v308_v30, %v316_v31  ;;  %v8051_v37 = vcombine.high %v309_v32, %v317_v33  ;;  %v324_v38 = vld [vmem:[%s9601_s22 + $0x280] sm:$0xff]  ;;  %v325_v40 = vld [vmem:[%s9601_s22 + $0x288] sm:$0xff]  ;;  %v8048_v42 = vcombine.low %v308_v30, %v316_v31  ;;  %p9331_p7 = por %p9330_p9, %p9329_p12 }
  0x7e   : > { %v332_v39 = vld [vmem:[%s9601_s22 + $0x2c0] sm:$0xff]  ;;  %v333_v41 = vld [vmem:[%s9601_s22 + $0x2c8] sm:$0xff]  ;;  %v8050_v43 = vcombine.low %v309_v32, %v317_v33 }
  0x7f   : > { %v8065_v44 = vcombine.high %v324_v38, %v332_v39  ;;  %v8067_v45 = vcombine.high %v325_v40, %v333_v41  ;;  %v340_v46 = vld [vmem:[%s9601_s22 + $0x300] sm:$0xff]  ;;  %v341_v48 = vld [vmem:[%s9601_s22 + $0x308] sm:$0xff]  ;;  %v8064_v50 = vcombine.low %v324_v38, %v332_v39  ;;  %v8066_v51 = vcombine.low %v325_v40, %v333_v41  ;;  %p9332_p1 = pnand %p9331_p7, %p9325_p10 }
  0x80   : > { %6505 = vmatpush1.bf16.msra.mxu0 %v8016_v26  ;;  %6669 = vmatpush1.bf16.msra.mxu1 %v8018_v27  ;;  %v348_v47 = vld [vmem:[%s9601_s22 + $0x340] sm:$0xff]  ;;  %v349_v49 = vld [vmem:[%s9601_s22 + $0x348] sm:$0xff] }
  0x81   : > { %6506 = vmatprep.subr.bf16.mxu0 %v8033_v28  ;;  %6670 = vmatprep.subr.bf16.mxu1 %v8035_v29  ;;  %v8081_v52 = vcombine.high %v340_v46, %v348_v47  ;;  %v9635_v53 = vld [vmem:[#allocation2] sm:$0xff]  ;;  %v8083_v54 = vcombine.high %v341_v48, %v349_v49  ;;  %v357_v58 = vld [vmem:[%s9601_s22 + $0x388] sm:$0xff]  ;;  %v8080_v60 = vcombine.low %v340_v46, %v348_v47 }
  0x82   : > { %v356_v55 = vld [vmem:[%s9601_s22 + $0x380] sm:$0xff]  ;;  %v9641_v57 = vcombine.high %v9635_v53, %v9635_v53  ;;  %v365_v59 = vld [vmem:[%s9601_s22 + $0x3c8] sm:$0xff]  ;;  %v8082_v61 = vcombine.low %v341_v48, %v349_v49 }
  0x83   : > { %v364_v56 = vld [vmem:[%s9601_s22 + $0x3c0] sm:$0xff]  ;;  %v8099_v63 = vcombine.high %v357_v58, %v365_v59  ;;  %v373_v2 = vld [vmem:[%s9601_s22 + $0x408] sm:$0xff]  ;;  %v8098_v5 = vcombine.low %v357_v58, %v365_v59 }
  0x84   : > { %6507 = vmatpush1.bf16.msra.mxu0 %v8032_v34  ;;  %6671 = vmatpush1.bf16.msra.mxu1 %v8034_v35  ;;  %v8097_v62 = vcombine.high %v356_v55, %v364_v56  ;;  %v372_v0 = vld [vmem:[%s9601_s22 + $0x400] sm:$0xff]  ;;  %v381_v3 = vld [vmem:[%s9601_s22 + $0x448] sm:$0xff]  ;;  %v8096_v4 = vcombine.low %v356_v55, %v364_v56 }
  0x85   : > { %6508 = vmatprep.subr.bf16.mxu0 %v8049_v36  ;;  %6672 = vmatprep.subr.bf16.mxu1 %v8051_v37  ;;  %v380_v1 = vld [vmem:[%s9601_s22 + $0x440] sm:$0xff]  ;;  %v8115_v7 = vcombine.high %v373_v2, %v381_v3  ;;  %v389_v10 = vld [vmem:[%s9601_s22 + $0x488] sm:$0xff]  ;;  %v8114_v13 = vcombine.low %v373_v2, %v381_v3 }
  0x86   : > { %6532 = vmatprep.mubr.bf16.mxu0 %v9641_v57  ;;  %6696 = vmatprep.mubr.bf16.mxu1 %v9641_v57  ;;  %v8113_v6 = vcombine.high %v372_v0, %v380_v1  ;;  %v388_v8 = vld [vmem:[%s9601_s22 + $0x480] sm:$0xff]  ;;  %v397_v11 = vld [vmem:[%s9601_s22 + $0x4c8] sm:$0xff]  ;;  %v8112_v12 = vcombine.low %v372_v0, %v380_v1 }
  0x87   : > { %v396_v9 = vld [vmem:[%s9601_s22 + $0x4c0] sm:$0xff]  ;;  %v8131_v15 = vcombine.high %v389_v10, %v397_v11  ;;  %v405_v18 = vld [vmem:[%s9601_s22 + $0x508] sm:$0xff]  ;;  %v8130_v21 = vcombine.low %v389_v10, %v397_v11 }
  0x88   : > { %6509 = vmatpush1.bf16.msra.mxu0 %v8048_v42  ;;  %6673 = vmatpush1.bf16.msra.mxu1 %v8050_v43  ;;  %v8129_v14 = vcombine.high %v388_v8, %v396_v9  ;;  %v404_v16 = vld [vmem:[%s9601_s22 + $0x500] sm:$0xff]  ;;  %v413_v19 = vld [vmem:[%s9601_s22 + $0x548] sm:$0xff]  ;;  %v8128_v20 = vcombine.low %v388_v8, %v396_v9 }
  0x89   : > { %6510 = vmatprep.subr.bf16.mxu0 %v8065_v44  ;;  %6674 = vmatprep.subr.bf16.mxu1 %v8067_v45  ;;  %v412_v17 = vld [vmem:[%s9601_s22 + $0x540] sm:$0xff]  ;;  %v8147_v23 = vcombine.high %v405_v18, %v413_v19  ;;  %v421_v26 = vld [vmem:[%s9601_s22 + $0x588] sm:$0xff]  ;;  %v8146_v29 = vcombine.low %v405_v18, %v413_v19 }
  0x8a   : > { %v8145_v22 = vcombine.high %v404_v16, %v412_v17  ;;  %v420_v24 = vld [vmem:[%s9601_s22 + $0x580] sm:$0xff]  ;;  %v429_v27 = vld [vmem:[%s9601_s22 + $0x5c8] sm:$0xff]  ;;  %v8144_v28 = vcombine.low %v404_v16, %v412_v17 }
  0x8b   : > { %v428_v25 = vld [vmem:[%s9601_s22 + $0x5c0] sm:$0xff]  ;;  %v8163_v31 = vcombine.high %v421_v26, %v429_v27  ;;  %v437_v34 = vld [vmem:[%s9601_s22 + $0x608] sm:$0xff]  ;;  %v8162_v37 = vcombine.low %v421_v26, %v429_v27 }
  0x8c   : > { %6511 = vmatpush1.bf16.msra.mxu0 %v8064_v50  ;;  %6675 = vmatpush1.bf16.msra.mxu1 %v8066_v51  ;;  %v8161_v30 = vcombine.high %v420_v24, %v428_v25  ;;  %v436_v32 = vld [vmem:[%s9601_s22 + $0x600] sm:$0xff]  ;;  %v445_v35 = vld [vmem:[%s9601_s22 + $0x648] sm:$0xff]  ;;  %v8160_v36 = vcombine.low %v420_v24, %v428_v25 }
  0x8d   : > { %6512 = vmatprep.subr.bf16.mxu0 %v8081_v52  ;;  %6676 = vmatprep.subr.bf16.mxu1 %v8083_v54  ;;  %v444_v33 = vld [vmem:[%s9601_s22 + $0x640] sm:$0xff]  ;;  %v8179_v39 = vcombine.high %v437_v34, %v445_v35  ;;  %v453_v42 = vld [vmem:[%s9601_s22 + $0x688] sm:$0xff]  ;;  %v8178_v45 = vcombine.low %v437_v34, %v445_v35 }
  0x8e   : > { %v8177_v38 = vcombine.high %v436_v32, %v444_v33  ;;  %v452_v40 = vld [vmem:[%s9601_s22 + $0x680] sm:$0xff]  ;;  %v461_v43 = vld [vmem:[%s9601_s22 + $0x6c8] sm:$0xff]  ;;  %v8176_v44 = vcombine.low %v436_v32, %v444_v33 }
  0x8f   : > { %v460_v41 = vld [vmem:[%s9601_s22 + $0x6c0] sm:$0xff]  ;;  %v8195_v47 = vcombine.high %v453_v42, %v461_v43  ;;  %v469_v50 = vld [vmem:[%s9601_s22 + $0x708] sm:$0xff]  ;;  %v8194_v54 = vcombine.low %v453_v42, %v461_v43 }
  0x90   : > { %6513 = vmatpush1.bf16.msra.mxu0 %v8080_v60  ;;  %6677 = vmatpush1.bf16.msra.mxu1 %v8082_v61  ;;  %v8193_v46 = vcombine.high %v452_v40, %v460_v41  ;;  %v468_v48 = vld [vmem:[%s9601_s22 + $0x700] sm:$0xff]  ;;  %v477_v51 = vld [vmem:[%s9601_s22 + $0x748] sm:$0xff]  ;;  %v8192_v52 = vcombine.low %v452_v40, %v460_v41 }
  0x91   : > { %6514 = vmatprep.subr.bf16.mxu0 %v8097_v62  ;;  %6678 = vmatprep.subr.bf16.mxu1 %v8099_v63  ;;  %v476_v49 = vld [vmem:[%s9601_s22 + $0x740] sm:$0xff]  ;;  %v8211_v56 = vcombine.high %v469_v50, %v477_v51  ;;  %v485_v60 = vld [vmem:[%s9601_s22 + $0x788] sm:$0xff]  ;;  %v8210_v63 = vcombine.low %v469_v50, %v477_v51 }
  0x92   : > { %v8209_v55 = vcombine.high %v468_v48, %v476_v49  ;;  %v484_v58 = vld [vmem:[%s9601_s22 + $0x780] sm:$0xff]  ;;  %v493_v61 = vld [vmem:[%s9601_s22 + $0x7c8] sm:$0xff]  ;;  %v8208_v62 = vcombine.low %v468_v48, %v476_v49 }
  0x93   : > { %v492_v59 = vld [vmem:[%s9601_s22 + $0x7c0] sm:$0xff]  ;;  %v8227_v1 = vcombine.high %v485_v60, %v493_v61 }
  0x94   : > { %6515 = vmatpush1.bf16.msra.mxu0 %v8096_v4  ;;  %6679 = vmatpush1.bf16.msra.mxu1 %v8098_v5  ;;  %v8225_v0 = vcombine.high %v484_v58, %v492_v59  ;;  %v500_v2 = vld [vmem:[%s9601_s22 + $0x800] sm:$0xff]  ;;  %v501_v4 = vld [vmem:[%s9601_s22 + $0x808] sm:$0xff] }
  0x95   : > { %6516 = vmatprep.subr.bf16.mxu0 %v8113_v6  ;;  %6680 = vmatprep.subr.bf16.mxu1 %v8115_v7  ;;  %v508_v3 = vld [vmem:[%s9601_s22 + $0x840] sm:$0xff]  ;;  %v509_v5 = vld [vmem:[%s9601_s22 + $0x848] sm:$0xff]  ;;  %v8224_v6 = vcombine.low %v484_v58, %v492_v59  ;;  %v8226_v7 = vcombine.low %v485_v60, %v493_v61 }
  0x96   : > { %v8241_v8 = vcombine.high %v500_v2, %v508_v3  ;;  %v8243_v9 = vcombine.high %v501_v4, %v509_v5  ;;  %v516_v10 = vld [vmem:[%s9601_s22 + $0x880] sm:$0xff]  ;;  %v8240_v16 = vcombine.low %v500_v2, %v508_v3  ;;  %v8242_v17 = vcombine.low %v501_v4, %v509_v5 }
  0x97   : > { %v524_v11 = vld [vmem:[%s9601_s22 + $0x8c0] sm:$0xff] }
  0x98   : > { %6517 = vmatpush1.bf16.msra.mxu0 %v8112_v12  ;;  %6681 = vmatpush1.bf16.msra.mxu1 %v8114_v13  ;;  %v9687_v12 = vcombine.low %v9635_v53, %v9635_v53  ;;  %v517_v13 = vld [vmem:[%s9601_s22 + $0x888] sm:$0xff]  ;;  %v8257_v18 = vcombine.high %v516_v10, %v524_v11  ;;  %v8256_v24 = vcombine.low %v516_v10, %v524_v11 }
  0x99   : > { %6518 = vmatprep.subr.bf16.mxu0 %v8129_v14  ;;  %6682 = vmatprep.subr.bf16.mxu1 %v8131_v15  ;;  %v525_v14 = vld [vmem:[%s9601_s22 + $0x8c8] sm:$0xff] }
  0x9a   : > { %v9691_v15 = vld [vmem:[#allocation2 + $0x8] sm:$0xff]  ;;  %v8259_v19 = vcombine.high %v517_v13, %v525_v14  ;;  %v8258_v25 = vcombine.low %v517_v13, %v525_v14 }
  0x9b   : > { %v9697_v53 = vcombine.high %v9691_v15, %v9691_v15 }
  0x9c   : > { %6519 = vmatpush1.bf16.msra.mxu0 %v8128_v20  ;;  %6683 = vmatpush1.bf16.msra.mxu1 %v8130_v21  ;;  %v532_v20 = vld [vmem:[%s9601_s22 + $0x900] sm:$0xff] }
  0x9d   : > { %6520 = vmatprep.subr.bf16.mxu0 %v8145_v22  ;;  %6684 = vmatprep.subr.bf16.mxu1 %v8147_v23  ;;  %v540_v21 = vld [vmem:[%s9601_s22 + $0x940] sm:$0xff]  ;;  %v533_v22 = vld [vmem:[%s9601_s22 + $0x908] sm:$0xff] }
  0x9e   : > { %v541_v23 = vld [vmem:[%s9601_s22 + $0x948] sm:$0xff]  ;;  %v8273_v26 = vcombine.high %v532_v20, %v540_v21  ;;  %v8272_v32 = vcombine.low %v532_v20, %v540_v21 }
  0x9f   : > { %v8275_v27 = vcombine.high %v533_v22, %v541_v23  ;;  %v8274_v33 = vcombine.low %v533_v22, %v541_v23 }
  0xa0   : > { %6521 = vmatpush1.bf16.msra.mxu0 %v8144_v28  ;;  %6685 = vmatpush1.bf16.msra.mxu1 %v8146_v29  ;;  %v548_v28 = vld [vmem:[%s9601_s22 + $0x980] sm:$0xff] }
  0xa1   : > { %6522 = vmatprep.subr.bf16.mxu0 %v8161_v30  ;;  %6686 = vmatprep.subr.bf16.mxu1 %v8163_v31  ;;  %v556_v29 = vld [vmem:[%s9601_s22 + $0x9c0] sm:$0xff]  ;;  %v549_v30 = vld [vmem:[%s9601_s22 + $0x988] sm:$0xff] }
  0xa2   : > { %v557_v31 = vld [vmem:[%s9601_s22 + $0x9c8] sm:$0xff]  ;;  %v8289_v34 = vcombine.high %v548_v28, %v556_v29  ;;  %v8288_v40 = vcombine.low %v548_v28, %v556_v29 }
  0xa3   : > { %v8291_v35 = vcombine.high %v549_v30, %v557_v31  ;;  %v8290_v41 = vcombine.low %v549_v30, %v557_v31 }
  0xa4   : > { %6523 = vmatpush1.bf16.msra.mxu0 %v8160_v36  ;;  %6687 = vmatpush1.bf16.msra.mxu1 %v8162_v37  ;;  %v564_v36 = vld [vmem:[%s9601_s22 + $0xa00] sm:$0xff] }
  0xa5   : > { %6524 = vmatprep.subr.bf16.mxu0 %v8177_v38  ;;  %6688 = vmatprep.subr.bf16.mxu1 %v8179_v39  ;;  %v572_v37 = vld [vmem:[%s9601_s22 + $0xa40] sm:$0xff]  ;;  %v565_v38 = vld [vmem:[%s9601_s22 + $0xa08] sm:$0xff] }
  0xa6   : > { %v573_v39 = vld [vmem:[%s9601_s22 + $0xa48] sm:$0xff]  ;;  %v8305_v42 = vcombine.high %v564_v36, %v572_v37  ;;  %v8304_v48 = vcombine.low %v564_v36, %v572_v37 }
  0xa7   : > { %v8307_v43 = vcombine.high %v565_v38, %v573_v39  ;;  %v8306_v49 = vcombine.low %v565_v38, %v573_v39 }
  0xa8   : > { %6525 = vmatpush1.bf16.msra.mxu0 %v8176_v44  ;;  %6689 = vmatpush1.bf16.msra.mxu1 %v8178_v45  ;;  %v580_v44 = vld [vmem:[%s9601_s22 + $0xa80] sm:$0xff] }
  0xa9   : > { %6526 = vmatprep.subr.bf16.mxu0 %v8193_v46  ;;  %6690 = vmatprep.subr.bf16.mxu1 %v8195_v47  ;;  %v588_v45 = vld [vmem:[%s9601_s22 + $0xac0] sm:$0xff]  ;;  %v581_v46 = vld [vmem:[%s9601_s22 + $0xa88] sm:$0xff] }
  0xaa   : > { %v589_v47 = vld [vmem:[%s9601_s22 + $0xac8] sm:$0xff]  ;;  %v8321_v50 = vcombine.high %v580_v44, %v588_v45  ;;  %v8320_v58 = vcombine.low %v580_v44, %v588_v45 }
  0xab   : > { %v8323_v51 = vcombine.high %v581_v46, %v589_v47  ;;  %v8322_v59 = vcombine.low %v581_v46, %v589_v47 }
  0xac   : > { %6527 = vmatpush1.bf16.msra.mxu0 %v8192_v52  ;;  %6691 = vmatpush1.bf16.msra.mxu1 %v8194_v54  ;;  %v596_v52 = vld [vmem:[%s9601_s22 + $0xb00] sm:$0xff] }
  0xad   : > { %6528 = vmatprep.subr.bf16.mxu0 %v8209_v55  ;;  %6692 = vmatprep.subr.bf16.mxu1 %v8211_v56  ;;  %v604_v54 = vld [vmem:[%s9601_s22 + $0xb40] sm:$0xff]  ;;  %v597_v55 = vld [vmem:[%s9601_s22 + $0xb08] sm:$0xff] }
  0xae   : > { %v605_v56 = vld [vmem:[%s9601_s22 + $0xb48] sm:$0xff]  ;;  %v8337_v60 = vcombine.high %v596_v52, %v604_v54  ;;  %v8336_v2 = vcombine.low %v596_v52, %v604_v54 }
  0xaf   : > { %v8339_v61 = vcombine.high %v597_v55, %v605_v56  ;;  %v8338_v3 = vcombine.low %v597_v55, %v605_v56 }
  0xb0   : > { %6529 = vmatpush1.bf16.msra.mxu0 %v8208_v62  ;;  %6693 = vmatpush1.bf16.msra.mxu1 %v8210_v63  ;;  %v612_v62 = vld [vmem:[%s9601_s22 + $0xb80] sm:$0xff] }
  0xb1   : > { %6530 = vmatprep.subr.bf16.mxu0 %v8225_v0  ;;  %6694 = vmatprep.subr.bf16.mxu1 %v8227_v1  ;;  %v620_v63 = vld [vmem:[%s9601_s22 + $0xbc0] sm:$0xff]  ;;  %v613_v0 = vld [vmem:[%s9601_s22 + $0xb88] sm:$0xff] }
  0xb2   : > { %v621_v1 = vld [vmem:[%s9601_s22 + $0xbc8] sm:$0xff]  ;;  %v8353_v4 = vcombine.high %v612_v62, %v620_v63  ;;  %v8352_v10 = vcombine.low %v612_v62, %v620_v63 }
  0xb3   : > { %v8355_v5 = vcombine.high %v613_v0, %v621_v1  ;;  %v8354_v11 = vcombine.low %v613_v0, %v621_v1 }
  0xb4   : > { %6531 = vmatpush1.bf16.msra.mxu0 %v8224_v6  ;;  %6695 = vmatpush1.bf16.msra.mxu1 %v8226_v7  ;;  %v628_v6 = vld [vmem:[%s9601_s22 + $0xc00] sm:$0xff] }
  0xb5   : > { %6541 = vmatprep.subr.bf16.mxu0 %v8241_v8  ;;  %6705 = vmatprep.subr.bf16.mxu1 %v8243_v9  ;;  %v636_v7 = vld [vmem:[%s9601_s22 + $0xc40] sm:$0xff]  ;;  %v629_v8 = vld [vmem:[%s9601_s22 + $0xc08] sm:$0xff] }
  0xb6   : > { %v637_v9 = vld [vmem:[%s9601_s22 + $0xc48] sm:$0xff]  ;;  %v8369_v13 = vcombine.high %v628_v6, %v636_v7  ;;  %v8368_v20 = vcombine.low %v628_v6, %v636_v7 }
  0xb7   : > { %6533 = vmatmul.mubr.bf16.vlgmr.msra.gmra.mrb[0].mxu0 %v9687_v12  ;;  %6697 = vmatmul.mubr.bf16.vlgmr.msra.gmra.mrb[0].mxu1 %v9687_v12  ;;  %v8371_v14 = vcombine.high %v629_v8, %v637_v9  ;;  %v8370_v21 = vcombine.low %v629_v8, %v637_v9 }
  0xb8   : > { %6542 = vmatpush1.bf16.msra.mxu0 %v8240_v16  ;;  %6706 = vmatpush1.bf16.msra.mxu1 %v8242_v17  ;;  %v644_v16 = vld [vmem:[%s9601_s22 + $0xc80] sm:$0xff] }
  0xb9   : > { %6543 = vmatprep.subr.bf16.mxu0 %v8257_v18  ;;  %6707 = vmatprep.subr.bf16.mxu1 %v8259_v19  ;;  %v652_v17 = vld [vmem:[%s9601_s22 + $0xcc0] sm:$0xff]  ;;  %v645_v18 = vld [vmem:[%s9601_s22 + $0xc88] sm:$0xff] }
  0xba   : > { %6573 = vmatprep.mubr.bf16.mxu0 %v9697_v53  ;;  %6737 = vmatprep.mubr.bf16.mxu1 %v9697_v53  ;;  %v653_v19 = vld [vmem:[%s9601_s22 + $0xcc8] sm:$0xff]  ;;  %v8385_v22 = vcombine.high %v644_v16, %v652_v17  ;;  %v8384_v28 = vcombine.low %v644_v16, %v652_v17 }
  0xbb   : > { %v8387_v23 = vcombine.high %v645_v18, %v653_v19  ;;  %v8386_v29 = vcombine.low %v645_v18, %v653_v19 }
  0xbc   : > { %6544 = vmatpush1.bf16.msra.mxu0 %v8256_v24  ;;  %6708 = vmatpush1.bf16.msra.mxu1 %v8258_v25  ;;  %v660_v24 = vld [vmem:[%s9601_s22 + $0xd00] sm:$0xff] }
  0xbd   : > { %6545 = vmatprep.subr.bf16.mxu0 %v8273_v26  ;;  %6709 = vmatprep.subr.bf16.mxu1 %v8275_v27  ;;  %v668_v25 = vld [vmem:[%s9601_s22 + $0xd40] sm:$0xff]  ;;  %v661_v26 = vld [vmem:[%s9601_s22 + $0xd08] sm:$0xff] }
  0xbe   : > { %v669_v27 = vld [vmem:[%s9601_s22 + $0xd48] sm:$0xff]  ;;  %v8401_v30 = vcombine.high %v660_v24, %v668_v25  ;;  %v8400_v36 = vcombine.low %v660_v24, %v668_v25  ;;  %v9769_v25 = vld [vmem:[#allocation2 + $0x10] sm:$0xff] }
  0xbf   : > { %v8403_v31 = vcombine.high %v661_v26, %v669_v27  ;;  %v8402_v37 = vcombine.low %v661_v26, %v669_v27  ;;  %v781_v24 = vld [vmem:[%s9601_s22 + $0x10c8] sm:$0xff] }
  0xc0   : > { %6546 = vmatpush1.bf16.msra.mxu0 %v8272_v32  ;;  %6710 = vmatpush1.bf16.msra.mxu1 %v8274_v33  ;;  %v676_v32 = vld [vmem:[%s9601_s22 + $0xd80] sm:$0xff] }
  0xc1   : > { %6547 = vmatprep.subr.bf16.mxu0 %v8289_v34  ;;  %6711 = vmatprep.subr.bf16.mxu1 %v8291_v35  ;;  %v684_v33 = vld [vmem:[%s9601_s22 + $0xdc0] sm:$0xff]  ;;  %v677_v34 = vld [vmem:[%s9601_s22 + $0xd88] sm:$0xff] }
  0xc2   : > { %v685_v35 = vld [vmem:[%s9601_s22 + $0xdc8] sm:$0xff]  ;;  %v8417_v38 = vcombine.high %v676_v32, %v684_v33  ;;  %v8416_v44 = vcombine.low %v676_v32, %v684_v33 }
  0xc3   : > { %v8419_v39 = vcombine.high %v677_v34, %v685_v35  ;;  %v8418_v45 = vcombine.low %v677_v34, %v685_v35  ;;  %v789_v32 = vld [vmem:[%s9601_s22 + $0x1108] sm:$0xff] }
  0xc4   : > { %6548 = vmatpush1.bf16.msra.mxu0 %v8288_v40  ;;  %6712 = vmatpush1.bf16.msra.mxu1 %v8290_v41  ;;  %v692_v40 = vld [vmem:[%s9601_s22 + $0xe00] sm:$0xff]  ;;  %v797_v33 = vld [vmem:[%s9601_s22 + $0x1148] sm:$0xff] }
  0xc5   : > { %6549 = vmatprep.subr.bf16.mxu0 %v8305_v42  ;;  %6713 = vmatprep.subr.bf16.mxu1 %v8307_v43  ;;  %v700_v41 = vld [vmem:[%s9601_s22 + $0xe40] sm:$0xff]  ;;  %v693_v42 = vld [vmem:[%s9601_s22 + $0xe08] sm:$0xff] }
  0xc6   : > { %v701_v43 = vld [vmem:[%s9601_s22 + $0xe48] sm:$0xff]  ;;  %v8433_v46 = vcombine.high %v692_v40, %v700_v41  ;;  %v8432_v52 = vcombine.low %v692_v40, %v700_v41 }
  0xc7   : > { %v8435_v47 = vcombine.high %v693_v42, %v701_v43  ;;  %v8434_v54 = vcombine.low %v693_v42, %v701_v43  ;;  %v805_v40 = vld [vmem:[%s9601_s22 + $0x1188] sm:$0xff]  ;;  %v8530_v43 = vcombine.low %v789_v32, %v797_v33 }
  0xc8   : > { %6550 = vmatpush1.bf16.msra.mxu0 %v8304_v48  ;;  %6714 = vmatpush1.bf16.msra.mxu1 %v8306_v49  ;;  %v708_v48 = vld [vmem:[%s9601_s22 + $0xe80] sm:$0xff]  ;;  %v813_v41 = vld [vmem:[%s9601_s22 + $0x11c8] sm:$0xff] }
  0xc9   : > { %6551 = vmatprep.subr.bf16.mxu0 %v8321_v50  ;;  %6715 = vmatprep.subr.bf16.mxu1 %v8323_v51  ;;  %v716_v49 = vld [vmem:[%s9601_s22 + $0xec0] sm:$0xff]  ;;  %v709_v50 = vld [vmem:[%s9601_s22 + $0xe88] sm:$0xff] }
  0xca   : > { %v717_v51 = vld [vmem:[%s9601_s22 + $0xec8] sm:$0xff]  ;;  %v8449_v55 = vcombine.high %v708_v48, %v716_v49  ;;  %v8448_v62 = vcombine.low %v708_v48, %v716_v49 }
  0xcb   : > { %v8451_v56 = vcombine.high %v709_v50, %v717_v51  ;;  %v8450_v63 = vcombine.low %v709_v50, %v717_v51  ;;  %v821_v48 = vld [vmem:[%s9601_s22 + $0x1208] sm:$0xff]  ;;  %v8546_v51 = vcombine.low %v805_v40, %v813_v41 }
  0xcc   : > { %6552 = vmatpush1.bf16.msra.mxu0 %v8320_v58  ;;  %6716 = vmatpush1.bf16.msra.mxu1 %v8322_v59  ;;  %v724_v58 = vld [vmem:[%s9601_s22 + $0xf00] sm:$0xff]  ;;  %v829_v49 = vld [vmem:[%s9601_s22 + $0x1248] sm:$0xff] }
  0xcd   : > { %6553 = vmatprep.subr.bf16.mxu0 %v8337_v60  ;;  %6717 = vmatprep.subr.bf16.mxu1 %v8339_v61  ;;  %v732_v59 = vld [vmem:[%s9601_s22 + $0xf40] sm:$0xff]  ;;  %v725_v60 = vld [vmem:[%s9601_s22 + $0xf08] sm:$0xff] }
  0xce   : > { %v733_v61 = vld [vmem:[%s9601_s22 + $0xf48] sm:$0xff]  ;;  %v8465_v0 = vcombine.high %v724_v58, %v732_v59  ;;  %v8464_v6 = vcombine.low %v724_v58, %v732_v59 }
  0xcf   : > { %v8467_v1 = vcombine.high %v725_v60, %v733_v61  ;;  %v8466_v7 = vcombine.low %v725_v60, %v733_v61  ;;  %v837_v58 = vld [vmem:[%s9601_s22 + $0x1288] sm:$0xff]  ;;  %v8562_v61 = vcombine.low %v821_v48, %v829_v49 }
  0xd0   : > { %6554 = vmatpush1.bf16.msra.mxu0 %v8336_v2  ;;  %6718 = vmatpush1.bf16.msra.mxu1 %v8338_v3  ;;  %v740_v2 = vld [vmem:[%s9601_s22 + $0xf80] sm:$0xff]  ;;  %v845_v59 = vld [vmem:[%s9601_s22 + $0x12c8] sm:$0xff] }
  0xd1   : > { %6555 = vmatprep.subr.bf16.mxu0 %v8353_v4  ;;  %6719 = vmatprep.subr.bf16.mxu1 %v8355_v5  ;;  %v748_v3 = vld [vmem:[%s9601_s22 + $0xfc0] sm:$0xff]  ;;  %v741_v4 = vld [vmem:[%s9601_s22 + $0xf88] sm:$0xff] }
  0xd2   : > { %v749_v5 = vld [vmem:[%s9601_s22 + $0xfc8] sm:$0xff]  ;;  %v8481_v8 = vcombine.high %v740_v2, %v748_v3  ;;  %v8480_v16 = vcombine.low %v740_v2, %v748_v3 }
  0xd3   : > { %v8483_v9 = vcombine.high %v741_v4, %v749_v5  ;;  %v8482_v17 = vcombine.low %v741_v4, %v749_v5  ;;  %v853_v2 = vld [vmem:[%s9601_s22 + $0x1308] sm:$0xff]  ;;  %v8578_v5 = vcombine.low %v837_v58, %v845_v59 }
  0xd4   : > { %6556 = vmatpush1.bf16.msra.mxu0 %v8352_v10  ;;  %6720 = vmatpush1.bf16.msra.mxu1 %v8354_v11  ;;  %v756_v10 = vld [vmem:[%s9601_s22 + $0x1000] sm:$0xff]  ;;  %v861_v3 = vld [vmem:[%s9601_s22 + $0x1348] sm:$0xff] }
  0xd5   : > { %6557 = vmatprep.subr.bf16.mxu0 %v8369_v13  ;;  %6721 = vmatprep.subr.bf16.mxu1 %v8371_v14  ;;  %v764_v11 = vld [vmem:[%s9601_s22 + $0x1040] sm:$0xff]  ;;  %v757_v13 = vld [vmem:[%s9601_s22 + $0x1008] sm:$0xff] }
  0xd6   : > { %v765_v14 = vld [vmem:[%s9601_s22 + $0x1048] sm:$0xff]  ;;  %v8497_v18 = vcombine.high %v756_v10, %v764_v11  ;;  %v8496_v26 = vcombine.low %v756_v10, %v764_v11 }
  0xd7   : > { %v8499_v19 = vcombine.high %v757_v13, %v765_v14  ;;  %v8498_v27 = vcombine.low %v757_v13, %v765_v14  ;;  %v869_v10 = vld [vmem:[%s9601_s22 + $0x1388] sm:$0xff]  ;;  %v8594_v14 = vcombine.low %v853_v2, %v861_v3 }
  0xd8   : > { %6558 = vmatpush1.bf16.msra.mxu0 %v8368_v20  ;;  %6722 = vmatpush1.bf16.msra.mxu1 %v8370_v21  ;;  %v772_v20 = vld [vmem:[%s9601_s22 + $0x1080] sm:$0xff]  ;;  %v877_v11 = vld [vmem:[%s9601_s22 + $0x13c8] sm:$0xff] }
  0xd9   : > { %6559 = vmatprep.subr.bf16.mxu0 %v8385_v22  ;;  %6723 = vmatprep.subr.bf16.mxu1 %v8387_v23  ;;  %v780_v21 = vld [vmem:[%s9601_s22 + $0x10c0] sm:$0xff]  ;;  %v9765_v22 = vcombine.low %v9691_v15, %v9691_v15  ;;  %v773_v23 = vld [vmem:[%s9601_s22 + $0x1088] sm:$0xff]  ;;  %v9775_v15 = vcombine.high %v9769_v25, %v9769_v25 }
  0xda   : > { %v8512_v34 = vcombine.low %v772_v20, %v780_v21  ;;  %v8514_v35 = vcombine.low %v773_v23, %v781_v24 }
  0xdc   : > { %6560 = vmatpush1.bf16.msra.mxu0 %v8384_v28  ;;  %6724 = vmatpush1.bf16.msra.mxu1 %v8386_v29  ;;  %v8513_v28 = vcombine.high %v772_v20, %v780_v21  ;;  %v8515_v29 = vcombine.high %v773_v23, %v781_v24  ;;  %v885_v20 = vld [vmem:[%s9601_s22 + $0x1408] sm:$0xff]  ;;  %v8610_v24 = vcombine.low %v869_v10, %v877_v11 }
  0xdd   : > { %6561 = vmatprep.subr.bf16.mxu0 %v8401_v30  ;;  %6725 = vmatprep.subr.bf16.mxu1 %v8403_v31  ;;  %v788_v30 = vld [vmem:[%s9601_s22 + $0x1100] sm:$0xff]  ;;  %v893_v21 = vld [vmem:[%s9601_s22 + $0x1448] sm:$0xff] }
  0xde   : > { %v796_v31 = vld [vmem:[%s9601_s22 + $0x1140] sm:$0xff] }
  0xdf   : > { %v8528_v42 = vcombine.low %v788_v30, %v796_v31 }
  0xe0   : > { %6562 = vmatpush1.bf16.msra.mxu0 %v8400_v36  ;;  %6726 = vmatpush1.bf16.msra.mxu1 %v8402_v37  ;;  %v8529_v36 = vcombine.high %v788_v30, %v796_v31  ;;  %v8531_v37 = vcombine.high %v789_v32, %v797_v33  ;;  %v901_v30 = vld [vmem:[%s9601_s22 + $0x1488] sm:$0xff]  ;;  %v8626_v33 = vcombine.low %v885_v20, %v893_v21 }
  0xe1   : > { %6563 = vmatprep.subr.bf16.mxu0 %v8417_v38  ;;  %6727 = vmatprep.subr.bf16.mxu1 %v8419_v39  ;;  %v804_v38 = vld [vmem:[%s9601_s22 + $0x1180] sm:$0xff]  ;;  %v909_v31 = vld [vmem:[%s9601_s22 + $0x14c8] sm:$0xff] }
  0xe2   : > { %v812_v39 = vld [vmem:[%s9601_s22 + $0x11c0] sm:$0xff] }
  0xe3   : > { %v8544_v50 = vcombine.low %v804_v38, %v812_v39 }
  0xe4   : > { %6564 = vmatpush1.bf16.msra.mxu0 %v8416_v44  ;;  %6728 = vmatpush1.bf16.msra.mxu1 %v8418_v45  ;;  %v8545_v44 = vcombine.high %v804_v38, %v812_v39  ;;  %v8547_v45 = vcombine.high %v805_v40, %v813_v41  ;;  %v917_v38 = vld [vmem:[%s9601_s22 + $0x1508] sm:$0xff]  ;;  %v8642_v41 = vcombine.low %v901_v30, %v909_v31 }
  0xe5   : > { %6565 = vmatprep.subr.bf16.mxu0 %v8433_v46  ;;  %6729 = vmatprep.subr.bf16.mxu1 %v8435_v47  ;;  %v820_v46 = vld [vmem:[%s9601_s22 + $0x1200] sm:$0xff]  ;;  %v925_v39 = vld [vmem:[%s9601_s22 + $0x1548] sm:$0xff] }
  0xe6   : > { %v828_v47 = vld [vmem:[%s9601_s22 + $0x1240] sm:$0xff] }
  0xe7   : > { %v8560_v60 = vcombine.low %v820_v46, %v828_v47 }
  0xe8   : > { %6566 = vmatpush1.bf16.msra.mxu0 %v8432_v52  ;;  %6730 = vmatpush1.bf16.msra.mxu1 %v8434_v54  ;;  %v8561_v52 = vcombine.high %v820_v46, %v828_v47  ;;  %v8563_v54 = vcombine.high %v821_v48, %v829_v49  ;;  %v933_v46 = vld [vmem:[%s9601_s22 + $0x1588] sm:$0xff]  ;;  %v8658_v49 = vcombine.low %v917_v38, %v925_v39 }
  0xe9   : > { %6567 = vmatprep.subr.bf16.mxu0 %v8449_v55  ;;  %6731 = vmatprep.subr.bf16.mxu1 %v8451_v56  ;;  %v836_v55 = vld [vmem:[%s9601_s22 + $0x1280] sm:$0xff]  ;;  %v941_v47 = vld [vmem:[%s9601_s22 + $0x15c8] sm:$0xff] }
  0xea   : > { %v844_v56 = vld [vmem:[%s9601_s22 + $0x12c0] sm:$0xff] }
  0xeb   : > { %v8576_v4 = vcombine.low %v836_v55, %v844_v56 }
  0xec   : > { %6568 = vmatpush1.bf16.msra.mxu0 %v8448_v62  ;;  %6732 = vmatpush1.bf16.msra.mxu1 %v8450_v63  ;;  %v8577_v62 = vcombine.high %v836_v55, %v844_v56  ;;  %v8579_v63 = vcombine.high %v837_v58, %v845_v59  ;;  %v949_v55 = vld [vmem:[%s9601_s22 + $0x1608] sm:$0xff]  ;;  %v8674_v59 = vcombine.low %v933_v46, %v941_v47 }
  0xed   : > { %6569 = vmatprep.subr.bf16.mxu0 %v8465_v0  ;;  %6733 = vmatprep.subr.bf16.mxu1 %v8467_v1  ;;  %v852_v0 = vld [vmem:[%s9601_s22 + $0x1300] sm:$0xff]  ;;  %v957_v56 = vld [vmem:[%s9601_s22 + $0x1648] sm:$0xff] }
  0xee   : > { %v860_v1 = vld [vmem:[%s9601_s22 + $0x1340] sm:$0xff] }
  0xef   : > { %v8592_v13 = vcombine.low %v852_v0, %v860_v1 }
  0xf0   : > { %6570 = vmatpush1.bf16.msra.mxu0 %v8464_v6  ;;  %6734 = vmatpush1.bf16.msra.mxu1 %v8466_v7  ;;  %v8593_v6 = vcombine.high %v852_v0, %v860_v1  ;;  %v8595_v7 = vcombine.high %v853_v2, %v861_v3  ;;  %v965_v0 = vld [vmem:[%s9601_s22 + $0x1688] sm:$0xff]  ;;  %v8690_v3 = vcombine.low %v949_v55, %v957_v56 }
  0xf1   : > { %6571 = vmatprep.subr.bf16.mxu0 %v8481_v8  ;;  %6735 = vmatprep.subr.bf16.mxu1 %v8483_v9  ;;  %v868_v8 = vld [vmem:[%s9601_s22 + $0x1380] sm:$0xff]  ;;  %v973_v1 = vld [vmem:[%s9601_s22 + $0x16c8] sm:$0xff] }
  0xf2   : > { %v876_v9 = vld [vmem:[%s9601_s22 + $0x13c0] sm:$0xff] }
  0xf3   : > { %v8608_v23 = vcombine.low %v868_v8, %v876_v9 }
  0xf4   : > { %6572 = vmatpush1.bf16.msra.mxu0 %v8480_v16  ;;  %6736 = vmatpush1.bf16.msra.mxu1 %v8482_v17  ;;  %v8609_v16 = vcombine.high %v868_v8, %v876_v9  ;;  %v8611_v17 = vcombine.high %v869_v10, %v877_v11  ;;  %v981_v8 = vld [vmem:[%s9601_s22 + $0x1708] sm:$0xff]  ;;  %v8706_v11 = vcombine.low %v965_v0, %v973_v1 }
  0xf5   : > { %6582 = vmatprep.subr.bf16.mxu0 %v8497_v18  ;;  %6746 = vmatprep.subr.bf16.mxu1 %v8499_v19  ;;  %v884_v18 = vld [vmem:[%s9601_s22 + $0x1400] sm:$0xff]  ;;  %v989_v9 = vld [vmem:[%s9601_s22 + $0x1748] sm:$0xff] }
  0xf6   : > { %v892_v19 = vld [vmem:[%s9601_s22 + $0x1440] sm:$0xff] }
  0xf7   : > { %6574 = vmatmul.mubr.bf16.vlgmr.msra.gmra.mrb[0].mxu0 %v9765_v22  ;;  %6738 = vmatmul.mubr.bf16.vlgmr.msra.gmra.mrb[0].mxu1 %v9765_v22  ;;  %v8624_v32 = vcombine.low %v884_v18, %v892_v19 }
  0xf8   : > { %6583 = vmatpush1.bf16.msra.mxu0 %v8496_v26  ;;  %6747 = vmatpush1.bf16.msra.mxu1 %v8498_v27  ;;  %v8625_v26 = vcombine.high %v884_v18, %v892_v19  ;;  %v8627_v27 = vcombine.high %v885_v20, %v893_v21  ;;  %v997_v18 = vld [vmem:[%s9601_s22 + $0x1788] sm:$0xff]  ;;  %v8722_v21 = vcombine.low %v981_v8, %v989_v9 }
  0xf9   : > { %6584 = vmatprep.subr.bf16.mxu0 %v8513_v28  ;;  %6748 = vmatprep.subr.bf16.mxu1 %v8515_v29  ;;  %v900_v28 = vld [vmem:[%s9601_s22 + $0x1480] sm:$0xff]  ;;  %v1005_v19 = vld [vmem:[%s9601_s22 + $0x17c8] sm:$0xff] }
  0xfa   : > { %6614 = vmatprep.mubr.bf16.mxu0 %v9775_v15  ;;  %6778 = vmatprep.mubr.bf16.mxu1 %v9775_v15  ;;  %v908_v29 = vld [vmem:[%s9601_s22 + $0x14c0] sm:$0xff] }
  0xfb   : > { %v8640_v40 = vcombine.low %v900_v28, %v908_v29 }
  0xfc   : > { %6585 = vmatpush1.bf16.msra.mxu0 %v8512_v34  ;;  %6749 = vmatpush1.bf16.msra.mxu1 %v8514_v35  ;;  %v8641_v34 = vcombine.high %v900_v28, %v908_v29  ;;  %v8643_v35 = vcombine.high %v901_v30, %v909_v31  ;;  %v1013_v28 = vld [vmem:[%s9601_s22 + $0x1808] sm:$0xff]  ;;  %v8738_v31 = vcombine.low %v997_v18, %v1005_v19 }
  0xfd   : > { %6586 = vmatprep.subr.bf16.mxu0 %v8529_v36  ;;  %6750 = vmatprep.subr.bf16.mxu1 %v8531_v37  ;;  %v916_v36 = vld [vmem:[%s9601_s22 + $0x1500] sm:$0xff]  ;;  %v1021_v29 = vld [vmem:[%s9601_s22 + $0x1848] sm:$0xff] }
  0xfe   : > { %v924_v37 = vld [vmem:[%s9601_s22 + $0x1540] sm:$0xff] }
  0xff   : > { %v8656_v48 = vcombine.low %v916_v36, %v924_v37 }
 0x100   : > { %6587 = vmatpush1.bf16.msra.mxu0 %v8528_v42  ;;  %6751 = vmatpush1.bf16.msra.mxu1 %v8530_v43  ;;  %v8657_v42 = vcombine.high %v916_v36, %v924_v37  ;;  %v8659_v43 = vcombine.high %v917_v38, %v925_v39  ;;  %v9843_v36 = vcombine.low %v9769_v25, %v9769_v25  ;;  %v1029_v37 = vld [vmem:[%s9601_s22 + $0x1888] sm:$0xff]  ;;  %v9847_v39 = vld [vmem:[#allocation2 + $0x18] sm:$0xff] }
 0x101   : > { %6588 = vmatprep.subr.bf16.mxu0 %v8545_v44  ;;  %6752 = vmatprep.subr.bf16.mxu1 %v8547_v45  ;;  %v932_v44 = vld [vmem:[%s9601_s22 + $0x1580] sm:$0xff]  ;;  %v1037_v38 = vld [vmem:[%s9601_s22 + $0x18c8] sm:$0xff]  ;;  %v9853_v25 = vcombine.high %v9847_v39, %v9847_v39 }
 0x102   : > { %v940_v45 = vld [vmem:[%s9601_s22 + $0x15c0] sm:$0xff] }
 0x103   : > { %v8672_v58 = vcombine.low %v932_v44, %v940_v45 }
 0x104   : > { %6589 = vmatpush1.bf16.msra.mxu0 %v8544_v50  ;;  %6753 = vmatpush1.bf16.msra.mxu1 %v8546_v51  ;;  %v8673_v50 = vcombine.high %v932_v44, %v940_v45  ;;  %v8675_v51 = vcombine.high %v933_v46, %v941_v47  ;;  %v1044_v44 = vld [vmem:[%s9601_s22 + $0x1900] sm:$0xff]  ;;  %v1045_v46 = vld [vmem:[%s9601_s22 + $0x1908] sm:$0xff] }
 0x105   : > { %6590 = vmatprep.subr.bf16.mxu0 %v8561_v52  ;;  %6754 = vmatprep.subr.bf16.mxu1 %v8563_v54  ;;  %v948_v52 = vld [vmem:[%s9601_s22 + $0x1600] sm:$0xff]  ;;  %v1053_v47 = vld [vmem:[%s9601_s22 + $0x1948] sm:$0xff] }
 0x106   : > { %v956_v54 = vld [vmem:[%s9601_s22 + $0x1640] sm:$0xff] }
 0x107   : > { %v8688_v2 = vcombine.low %v948_v52, %v956_v54  ;;  %v1052_v45 = vld [vmem:[%s9601_s22 + $0x1940] sm:$0xff] }
 0x108   : > { %6591 = vmatpush1.bf16.msra.mxu0 %v8560_v60  ;;  %6755 = vmatpush1.bf16.msra.mxu1 %v8562_v61  ;;  %v8689_v60 = vcombine.high %v948_v52, %v956_v54  ;;  %v8691_v61 = vcombine.high %v949_v55, %v957_v56  ;;  %v1060_v52 = vld [vmem:[%s9601_s22 + $0x1980] sm:$0xff]  ;;  %v1061_v55 = vld [vmem:[%s9601_s22 + $0x1988] sm:$0xff] }
 0x109   : > { %6592 = vmatprep.subr.bf16.mxu0 %v8577_v62  ;;  %6756 = vmatprep.subr.bf16.mxu1 %v8579_v63  ;;  %v964_v62 = vld [vmem:[%s9601_s22 + $0x1680] sm:$0xff]  ;;  %v1069_v56 = vld [vmem:[%s9601_s22 + $0x19c8] sm:$0xff] }
 0x10a   : > { %v972_v63 = vld [vmem:[%s9601_s22 + $0x16c0] sm:$0xff] }
 0x10b   : > { %v8704_v10 = vcombine.low %v964_v62, %v972_v63  ;;  %v1068_v54 = vld [vmem:[%s9601_s22 + $0x19c0] sm:$0xff] }
 0x10c   : > { %6593 = vmatpush1.bf16.msra.mxu0 %v8576_v4  ;;  %6757 = vmatpush1.bf16.msra.mxu1 %v8578_v5  ;;  %v8705_v4 = vcombine.high %v964_v62, %v972_v63  ;;  %v8707_v5 = vcombine.high %v965_v0, %v973_v1  ;;  %v1076_v62 = vld [vmem:[%s9601_s22 + $0x1a00] sm:$0xff]  ;;  %v1077_v0 = vld [vmem:[%s9601_s22 + $0x1a08] sm:$0xff] }
 0x10d   : > { %6594 = vmatprep.subr.bf16.mxu0 %v8593_v6  ;;  %6758 = vmatprep.subr.bf16.mxu1 %v8595_v7  ;;  %v980_v6 = vld [vmem:[%s9601_s22 + $0x1700] sm:$0xff]  ;;  %v1085_v1 = vld [vmem:[%s9601_s22 + $0x1a48] sm:$0xff] }
 0x10e   : > { %v988_v7 = vld [vmem:[%s9601_s22 + $0x1740] sm:$0xff] }
 0x10f   : > { %v8720_v20 = vcombine.low %v980_v6, %v988_v7  ;;  %v1084_v63 = vld [vmem:[%s9601_s22 + $0x1a40] sm:$0xff] }
 0x110   : > { %6595 = vmatpush1.bf16.msra.mxu0 %v8592_v13  ;;  %6759 = vmatpush1.bf16.msra.mxu1 %v8594_v14  ;;  %v8721_v13 = vcombine.high %v980_v6, %v988_v7  ;;  %v8723_v14 = vcombine.high %v981_v8, %v989_v9  ;;  %v1092_v6 = vld [vmem:[%s9601_s22 + $0x1a80] sm:$0xff]  ;;  %v1093_v8 = vld [vmem:[%s9601_s22 + $0x1a88] sm:$0xff] }
 0x111   : > { %6596 = vmatprep.subr.bf16.mxu0 %v8609_v16  ;;  %6760 = vmatprep.subr.bf16.mxu1 %v8611_v17  ;;  %v996_v16 = vld [vmem:[%s9601_s22 + $0x1780] sm:$0xff]  ;;  %v1101_v9 = vld [vmem:[%s9601_s22 + $0x1ac8] sm:$0xff] }
 0x112   : > { %v1004_v17 = vld [vmem:[%s9601_s22 + $0x17c0] sm:$0xff] }
 0x113   : > { %v8736_v30 = vcombine.low %v996_v16, %v1004_v17  ;;  %v1100_v7 = vld [vmem:[%s9601_s22 + $0x1ac0] sm:$0xff] }
 0x114   : > { %6597 = vmatpush1.bf16.msra.mxu0 %v8608_v23  ;;  %6761 = vmatpush1.bf16.msra.mxu1 %v8610_v24  ;;  %v8737_v23 = vcombine.high %v996_v16, %v1004_v17  ;;  %v8739_v24 = vcombine.high %v997_v18, %v1005_v19  ;;  %v1108_v16 = vld [vmem:[%s9601_s22 + $0x1b00] sm:$0xff]  ;;  %v1109_v18 = vld [vmem:[%s9601_s22 + $0x1b08] sm:$0xff] }
 0x115   : > { %6598 = vmatprep.subr.bf16.mxu0 %v8625_v26  ;;  %6762 = vmatprep.subr.bf16.mxu1 %v8627_v27  ;;  %v1012_v26 = vld [vmem:[%s9601_s22 + $0x1800] sm:$0xff]  ;;  %v1117_v19 = vld [vmem:[%s9601_s22 + $0x1b48] sm:$0xff] }
 0x116   : > { %v1020_v27 = vld [vmem:[%s9601_s22 + $0x1840] sm:$0xff] }
 0x117   : > { %v1116_v17 = vld [vmem:[%s9601_s22 + $0x1b40] sm:$0xff] }
 0x118   : > { %6599 = vmatpush1.bf16.msra.mxu0 %v8624_v32  ;;  %6763 = vmatpush1.bf16.msra.mxu1 %v8626_v33  ;;  %v8753_v32 = vcombine.high %v1012_v26, %v1020_v27  ;;  %v8755_v33 = vcombine.high %v1013_v28, %v1021_v29 }
 0x119   : > { %6600 = vmatprep.subr.bf16.mxu0 %v8641_v34  ;;  %6764 = vmatprep.subr.bf16.mxu1 %v8643_v35  ;;  %v1028_v34 = vld [vmem:[%s9601_s22 + $0x1880] sm:$0xff] }
 0x11a   : > { %v1036_v35 = vld [vmem:[%s9601_s22 + $0x18c0] sm:$0xff] }
 0x11c   : > { %6601 = vmatpush1.bf16.msra.mxu0 %v8640_v40  ;;  %6765 = vmatpush1.bf16.msra.mxu1 %v8642_v41  ;;  %v8752_v40 = vcombine.low %v1012_v26, %v1020_v27  ;;  %v8754_v41 = vcombine.low %v1013_v28, %v1021_v29  ;;  %v1124_v26 = vld [vmem:[%s9601_s22 + $0x1b80] sm:$0xff]  ;;  %v1125_v28 = vld [vmem:[%s9601_s22 + $0x1b88] sm:$0xff] }
 0x11d   : > { %6602 = vmatprep.subr.bf16.mxu0 %v8657_v42  ;;  %6766 = vmatprep.subr.bf16.mxu1 %v8659_v43  ;;  %v8769_v42 = vcombine.high %v1028_v34, %v1036_v35  ;;  %v8771_v43 = vcombine.high %v1029_v37, %v1037_v38  ;;  %v1132_v27 = vld [vmem:[%s9601_s22 + $0x1bc0] sm:$0xff]  ;;  %v1133_v29 = vld [vmem:[%s9601_s22 + $0x1bc8] sm:$0xff] }
 0x120   : > { %6603 = vmatpush1.bf16.msra.mxu0 %v8656_v48  ;;  %6767 = vmatpush1.bf16.msra.mxu1 %v8658_v49  ;;  %v8768_v48 = vcombine.low %v1028_v34, %v1036_v35  ;;  %v8770_v49 = vcombine.low %v1029_v37, %v1037_v38  ;;  %v1140_v34 = vld [vmem:[%s9601_s22 + $0x1c00] sm:$0xff]  ;;  %v1141_v37 = vld [vmem:[%s9601_s22 + $0x1c08] sm:$0xff] }
 0x121   : > { %6604 = vmatprep.subr.bf16.mxu0 %v8673_v50  ;;  %6768 = vmatprep.subr.bf16.mxu1 %v8675_v51  ;;  %v8785_v50 = vcombine.high %v1044_v44, %v1052_v45  ;;  %v8787_v51 = vcombine.high %v1045_v46, %v1053_v47  ;;  %v1148_v35 = vld [vmem:[%s9601_s22 + $0x1c40] sm:$0xff]  ;;  %v1149_v38 = vld [vmem:[%s9601_s22 + $0x1c48] sm:$0xff] }
 0x124   : > { %6605 = vmatpush1.bf16.msra.mxu0 %v8672_v58  ;;  %6769 = vmatpush1.bf16.msra.mxu1 %v8674_v59  ;;  %v8784_v58 = vcombine.low %v1044_v44, %v1052_v45  ;;  %v8786_v59 = vcombine.low %v1045_v46, %v1053_v47  ;;  %v1156_v44 = vld [vmem:[%s9601_s22 + $0x1c80] sm:$0xff]  ;;  %v1157_v46 = vld [vmem:[%s9601_s22 + $0x1c88] sm:$0xff] }
 0x125   : > { %6606 = vmatprep.subr.bf16.mxu0 %v8689_v60  ;;  %6770 = vmatprep.subr.bf16.mxu1 %v8691_v61  ;;  %v8801_v60 = vcombine.high %v1060_v52, %v1068_v54  ;;  %v8803_v61 = vcombine.high %v1061_v55, %v1069_v56  ;;  %v1164_v45 = vld [vmem:[%s9601_s22 + $0x1cc0] sm:$0xff]  ;;  %v1165_v47 = vld [vmem:[%s9601_s22 + $0x1cc8] sm:$0xff] }
 0x128   : > { %6607 = vmatpush1.bf16.msra.mxu0 %v8688_v2  ;;  %6771 = vmatpush1.bf16.msra.mxu1 %v8690_v3  ;;  %v8800_v2 = vcombine.low %v1060_v52, %v1068_v54  ;;  %v8802_v3 = vcombine.low %v1061_v55, %v1069_v56  ;;  %v1172_v52 = vld [vmem:[%s9601_s22 + $0x1d00] sm:$0xff]  ;;  %v1173_v55 = vld [vmem:[%s9601_s22 + $0x1d08] sm:$0xff] }
 0x129   : > { %6608 = vmatprep.subr.bf16.mxu0 %v8705_v4  ;;  %6772 = vmatprep.subr.bf16.mxu1 %v8707_v5  ;;  %v8817_v4 = vcombine.high %v1076_v62, %v1084_v63  ;;  %v8819_v5 = vcombine.high %v1077_v0, %v1085_v1  ;;  %v1180_v54 = vld [vmem:[%s9601_s22 + $0x1d40] sm:$0xff]  ;;  %v1181_v56 = vld [vmem:[%s9601_s22 + $0x1d48] sm:$0xff] }
 0x12c   : > { %6609 = vmatpush1.bf16.msra.mxu0 %v8704_v10  ;;  %6773 = vmatpush1.bf16.msra.mxu1 %v8706_v11  ;;  %v8816_v10 = vcombine.low %v1076_v62, %v1084_v63  ;;  %v8818_v11 = vcombine.low %v1077_v0, %v1085_v1  ;;  %v1188_v62 = vld [vmem:[%s9601_s22 + $0x1d80] sm:$0xff]  ;;  %v1189_v0 = vld [vmem:[%s9601_s22 + $0x1d88] sm:$0xff] }
 0x12d   : > { %6610 = vmatprep.subr.bf16.mxu0 %v8721_v13  ;;  %6774 = vmatprep.subr.bf16.mxu1 %v8723_v14  ;;  %v8833_v13 = vcombine.high %v1092_v6, %v1100_v7  ;;  %v8835_v14 = vcombine.high %v1093_v8, %v1101_v9  ;;  %v1196_v63 = vld [vmem:[%s9601_s22 + $0x1dc0] sm:$0xff]  ;;  %v1197_v1 = vld [vmem:[%s9601_s22 + $0x1dc8] sm:$0xff] }
 0x130   : > { %6611 = vmatpush1.bf16.msra.mxu0 %v8720_v20  ;;  %6775 = vmatpush1.bf16.msra.mxu1 %v8722_v21  ;;  %v8832_v20 = vcombine.low %v1092_v6, %v1100_v7  ;;  %v8834_v21 = vcombine.low %v1093_v8, %v1101_v9  ;;  %v1204_v6 = vld [vmem:[%s9601_s22 + $0x1e00] sm:$0xff]  ;;  %v1205_v8 = vld [vmem:[%s9601_s22 + $0x1e08] sm:$0xff] }
 0x131   : > { %6612 = vmatprep.subr.bf16.mxu0 %v8737_v23  ;;  %6776 = vmatprep.subr.bf16.mxu1 %v8739_v24  ;;  %v8849_v23 = vcombine.high %v1108_v16, %v1116_v17  ;;  %v8851_v24 = vcombine.high %v1109_v18, %v1117_v19  ;;  %v1212_v7 = vld [vmem:[%s9601_s22 + $0x1e40] sm:$0xff]  ;;  %v1213_v9 = vld [vmem:[%s9601_s22 + $0x1e48] sm:$0xff] }
 0x134   : > { %6613 = vmatpush1.bf16.msra.mxu0 %v8736_v30  ;;  %6777 = vmatpush1.bf16.msra.mxu1 %v8738_v31  ;;  %v8848_v30 = vcombine.low %v1108_v16, %v1116_v17  ;;  %v8850_v31 = vcombine.low %v1109_v18, %v1117_v19  ;;  %v1220_v16 = vld [vmem:[%s9601_s22 + $0x1e80] sm:$0xff]  ;;  %v1221_v18 = vld [vmem:[%s9601_s22 + $0x1e88] sm:$0xff] }
 0x135   : > { %6623 = vmatprep.subr.bf16.mxu0 %v8753_v32  ;;  %6787 = vmatprep.subr.bf16.mxu1 %v8755_v33  ;;  %v8865_v32 = vcombine.high %v1124_v26, %v1132_v27  ;;  %v8867_v33 = vcombine.high %v1125_v28, %v1133_v29  ;;  %v1228_v17 = vld [vmem:[%s9601_s22 + $0x1ec0] sm:$0xff]  ;;  %v1229_v19 = vld [vmem:[%s9601_s22 + $0x1ec8] sm:$0xff] }
 0x137   : > { %6615 = vmatmul.mubr.bf16.vlgmr.msra.gmra.mrb[0].mxu0 %v9843_v36  ;;  %6779 = vmatmul.mubr.bf16.vlgmr.msra.gmra.mrb[0].mxu1 %v9843_v36 }
 0x138   : > { %6624 = vmatpush1.bf16.msra.mxu0 %v8752_v40  ;;  %6788 = vmatpush1.bf16.msra.mxu1 %v8754_v41  ;;  %v8864_v40 = vcombine.low %v1124_v26, %v1132_v27  ;;  %v8866_v41 = vcombine.low %v1125_v28, %v1133_v29  ;;  %v1236_v26 = vld [vmem:[%s9601_s22 + $0x1f00] sm:$0xff]  ;;  %v1237_v28 = vld [vmem:[%s9601_s22 + $0x1f08] sm:$0xff] }
 0x139   : > { %6625 = vmatprep.subr.bf16.mxu0 %v8769_v42  ;;  %6789 = vmatprep.subr.bf16.mxu1 %v8771_v43  ;;  %v8881_v42 = vcombine.high %v1140_v34, %v1148_v35  ;;  %v8883_v43 = vcombine.high %v1141_v37, %v1149_v38  ;;  %v1244_v27 = vld [vmem:[%s9601_s22 + $0x1f40] sm:$0xff]  ;;  %v1245_v29 = vld [vmem:[%s9601_s22 + $0x1f48] sm:$0xff] }
 0x13a   : > { %6655 = vmatprep.mubr.bf16.mxu0 %v9853_v25  ;;  %6819 = vmatprep.mubr.bf16.mxu1 %v9853_v25 }
 0x13c   : > { %6626 = vmatpush1.bf16.msra.mxu0 %v8768_v48  ;;  %6790 = vmatpush1.bf16.msra.mxu1 %v8770_v49  ;;  %v8880_v48 = vcombine.low %v1140_v34, %v1148_v35  ;;  %v8882_v49 = vcombine.low %v1141_v37, %v1149_v38  ;;  %v1252_v34 = vld [vmem:[%s9601_s22 + $0x1f80] sm:$0xff]  ;;  %v1253_v37 = vld [vmem:[%s9601_s22 + $0x1f88] sm:$0xff] }
 0x13d   : > { %6627 = vmatprep.subr.bf16.mxu0 %v8785_v50  ;;  %6791 = vmatprep.subr.bf16.mxu1 %v8787_v51  ;;  %v8897_v50 = vcombine.high %v1156_v44, %v1164_v45  ;;  %v8899_v51 = vcombine.high %v1157_v46, %v1165_v47  ;;  %v1260_v35 = vld [vmem:[%s9601_s22 + $0x1fc0] sm:$0xff]  ;;  %v1261_v38 = vld [vmem:[%s9601_s22 + $0x1fc8] sm:$0xff] }
 0x140   : > { %6628 = vmatpush1.bf16.msra.mxu0 %v8784_v58  ;;  %6792 = vmatpush1.bf16.msra.mxu1 %v8786_v59  ;;  %v8896_v58 = vcombine.low %v1156_v44, %v1164_v45  ;;  %v8898_v59 = vcombine.low %v1157_v46, %v1165_v47  ;;  %v246_v44 = vld [vmem:[%s9601_s22 + $0x10] sm:$0xff]  ;;  %v247_v46 = vld [vmem:[%s9601_s22 + $0x18] sm:$0xff] }
 0x141   : > { %6629 = vmatprep.subr.bf16.mxu0 %v8801_v60  ;;  %6793 = vmatprep.subr.bf16.mxu1 %v8803_v61  ;;  %v8913_v60 = vcombine.high %v1172_v52, %v1180_v54  ;;  %v8915_v61 = vcombine.high %v1173_v55, %v1181_v56  ;;  %v254_v45 = vld [vmem:[%s9601_s22 + $0x50] sm:$0xff]  ;;  %v255_v47 = vld [vmem:[%s9601_s22 + $0x58] sm:$0xff] }
 0x144   : > { %6630 = vmatpush1.bf16.msra.mxu0 %v8800_v2  ;;  %6794 = vmatpush1.bf16.msra.mxu1 %v8802_v3  ;;  %v8912_v2 = vcombine.low %v1172_v52, %v1180_v54  ;;  %v8914_v3 = vcombine.low %v1173_v55, %v1181_v56  ;;  %v262_v52 = vld [vmem:[%s9601_s22 + $0x90] sm:$0xff]  ;;  %v9921_v55 = vcombine.low %v9847_v39, %v9847_v39  ;;  %v263_v56 = vld [vmem:[%s9601_s22 + $0x98] sm:$0xff] }
 0x145   : > { %6631 = vmatprep.subr.bf16.mxu0 %v8817_v4  ;;  %6795 = vmatprep.subr.bf16.mxu1 %v8819_v5  ;;  %v8929_v4 = vcombine.high %v1188_v62, %v1196_v63  ;;  %v8931_v5 = vcombine.high %v1189_v0, %v1197_v1  ;;  %v270_v54 = vld [vmem:[%s9601_s22 + $0xd0] sm:$0xff]  ;;  %v279_v39 = vld [vmem:[%s9601_s22 + $0x118] sm:$0xff] }
 0x148   : > { %6632 = vmatpush1.bf16.msra.mxu0 %v8816_v10  ;;  %6796 = vmatpush1.bf16.msra.mxu1 %v8818_v11  ;;  %v8928_v10 = vcombine.low %v1188_v62, %v1196_v63  ;;  %v8930_v11 = vcombine.low %v1189_v0, %v1197_v1  ;;  %v278_v63 = vld [vmem:[%s9601_s22 + $0x110] sm:$0xff]  ;;  %v287_v1 = vld [vmem:[%s9601_s22 + $0x158] sm:$0xff] }
 0x149   : > { %6633 = vmatprep.subr.bf16.mxu0 %v8833_v13  ;;  %6797 = vmatprep.subr.bf16.mxu1 %v8835_v14  ;;  %v8945_v13 = vcombine.high %v1204_v6, %v1212_v7  ;;  %v8947_v14 = vcombine.high %v1205_v8, %v1213_v9  ;;  %v286_v0 = vld [vmem:[%s9601_s22 + $0x150] sm:$0xff] }
 0x14c   : > { %6634 = vmatpush1.bf16.msra.mxu0 %v8832_v20  ;;  %6798 = vmatpush1.bf16.msra.mxu1 %v8834_v21  ;;  %v8944_v20 = vcombine.low %v1204_v6, %v1212_v7  ;;  %v8946_v21 = vcombine.low %v1205_v8, %v1213_v9  ;;  %v294_v6 = vld [vmem:[%s9601_s22 + $0x190] sm:$0xff]  ;;  %v295_v8 = vld [vmem:[%s9601_s22 + $0x198] sm:$0xff] }
 0x14d   : > { %6635 = vmatprep.subr.bf16.mxu0 %v8849_v23  ;;  %6799 = vmatprep.subr.bf16.mxu1 %v8851_v24  ;;  %v8961_v23 = vcombine.high %v1220_v16, %v1228_v17  ;;  %v8963_v24 = vcombine.high %v1221_v18, %v1229_v19  ;;  %v302_v7 = vld [vmem:[%s9601_s22 + $0x1d0] sm:$0xff]  ;;  %v303_v9 = vld [vmem:[%s9601_s22 + $0x1d8] sm:$0xff] }
 0x150   : > { %6636 = vmatpush1.bf16.msra.mxu0 %v8848_v30  ;;  %6800 = vmatpush1.bf16.msra.mxu1 %v8850_v31  ;;  %v8960_v30 = vcombine.low %v1220_v16, %v1228_v17  ;;  %v8962_v31 = vcombine.low %v1221_v18, %v1229_v19  ;;  %v310_v16 = vld [vmem:[%s9601_s22 + $0x210] sm:$0xff]  ;;  %v311_v18 = vld [vmem:[%s9601_s22 + $0x218] sm:$0xff] }
 0x151   : > { %6637 = vmatprep.subr.bf16.mxu0 %v8865_v32  ;;  %6801 = vmatprep.subr.bf16.mxu1 %v8867_v33  ;;  %v8977_v32 = vcombine.high %v1236_v26, %v1244_v27  ;;  %v8979_v33 = vcombine.high %v1237_v28, %v1245_v29  ;;  %v318_v17 = vld [vmem:[%s9601_s22 + $0x250] sm:$0xff]  ;;  %v319_v19 = vld [vmem:[%s9601_s22 + $0x258] sm:$0xff] }
 0x154   : > { %6638 = vmatpush1.bf16.msra.mxu0 %v8864_v40  ;;  %6802 = vmatpush1.bf16.msra.mxu1 %v8866_v41  ;;  %v8976_v40 = vcombine.low %v1236_v26, %v1244_v27  ;;  %v8978_v41 = vcombine.low %v1237_v28, %v1245_v29  ;;  %v326_v26 = vld [vmem:[%s9601_s22 + $0x290] sm:$0xff]  ;;  %v327_v28 = vld [vmem:[%s9601_s22 + $0x298] sm:$0xff] }
 0x155   : > { %6639 = vmatprep.subr.bf16.mxu0 %v8881_v42  ;;  %6803 = vmatprep.subr.bf16.mxu1 %v8883_v43  ;;  %v8993_v42 = vcombine.high %v1252_v34, %v1260_v35  ;;  %v8995_v43 = vcombine.high %v1253_v37, %v1261_v38  ;;  %v334_v27 = vld [vmem:[%s9601_s22 + $0x2d0] sm:$0xff]  ;;  %v335_v29 = vld [vmem:[%s9601_s22 + $0x2d8] sm:$0xff] }
 0x158   : > { %6640 = vmatpush1.bf16.msra.mxu0 %v8880_v48  ;;  %6804 = vmatpush1.bf16.msra.mxu1 %v8882_v49  ;;  %v8992_v48 = vcombine.low %v1252_v34, %v1260_v35  ;;  %v8994_v49 = vcombine.low %v1253_v37, %v1261_v38  ;;  %v342_v34 = vld [vmem:[%s9601_s22 + $0x310] sm:$0xff]  ;;  %v343_v37 = vld [vmem:[%s9601_s22 + $0x318] sm:$0xff] }
 0x159   : > { %6641 = vmatprep.subr.bf16.mxu0 %v8897_v50  ;;  %6805 = vmatprep.subr.bf16.mxu1 %v8899_v51  ;;  %v7989_v50 = vcombine.high %v246_v44, %v254_v45  ;;  %v7991_v51 = vcombine.high %v247_v46, %v255_v47  ;;  %v350_v35 = vld [vmem:[%s9601_s22 + $0x350] sm:$0xff]  ;;  %v351_v38 = vld [vmem:[%s9601_s22 + $0x358] sm:$0xff] }
 0x15c   : > { %6642 = vmatpush1.bf16.msra.mxu0 %v8896_v58  ;;  %6806 = vmatpush1.bf16.msra.mxu1 %v8898_v59  ;;  %v271_v58 = vld [vmem:[%s9601_s22 + $0xd8] sm:$0xff]  ;;  %v7988_v59 = vcombine.low %v246_v44, %v254_v45  ;;  %v358_v44 = vld [vmem:[%s9601_s22 + $0x390] sm:$0xff] }
 0x15d   : > { %6643 = vmatprep.subr.bf16.mxu0 %v8913_v60  ;;  %6807 = vmatprep.subr.bf16.mxu1 %v8915_v61  ;;  %v7990_v60 = vcombine.low %v247_v46, %v255_v47  ;;  %v8005_v61 = vcombine.high %v262_v52, %v270_v54  ;;  %v8007_v62 = vcombine.high %v263_v56, %v271_v58  ;;  %v366_v45 = vld [vmem:[%s9601_s22 + $0x3d0] sm:$0xff]  ;;  %v359_v46 = vld [vmem:[%s9601_s22 + $0x398] sm:$0xff] }
 0x15e   : > { %v367_v47 = vld [vmem:[%s9601_s22 + $0x3d8] sm:$0xff] }
 0x160   : > { %6644 = vmatpush1.bf16.msra.mxu0 %v8912_v2  ;;  %6808 = vmatpush1.bf16.msra.mxu1 %v8914_v3  ;;  %v8004_v2 = vcombine.low %v262_v52, %v270_v54  ;;  %v8006_v3 = vcombine.low %v263_v56, %v271_v58  ;;  %v374_v52 = vld [vmem:[%s9601_s22 + $0x410] sm:$0xff]  ;;  %v375_v56 = vld [vmem:[%s9601_s22 + $0x418] sm:$0xff] }
 0x161   : > { %6645 = vmatprep.subr.bf16.mxu0 %v8929_v4  ;;  %6809 = vmatprep.subr.bf16.mxu1 %v8931_v5  ;;  %v8021_v4 = vcombine.high %v278_v63, %v286_v0  ;;  %v8023_v5 = vcombine.high %v279_v39, %v287_v1  ;;  %v382_v54 = vld [vmem:[%s9601_s22 + $0x450] sm:$0xff]  ;;  %v383_v58 = vld [vmem:[%s9601_s22 + $0x458] sm:$0xff] }
 0x164   : > { %6646 = vmatpush1.bf16.msra.mxu0 %v8928_v10  ;;  %6810 = vmatpush1.bf16.msra.mxu1 %v8930_v11  ;;  %v8020_v10 = vcombine.low %v278_v63, %v286_v0  ;;  %v8022_v11 = vcombine.low %v279_v39, %v287_v1  ;;  %v390_v63 = vld [vmem:[%s9601_s22 + $0x490] sm:$0xff]  ;;  %v391_v39 = vld [vmem:[%s9601_s22 + $0x498] sm:$0xff] }
 0x165   : > { %6647 = vmatprep.subr.bf16.mxu0 %v8945_v13  ;;  %6811 = vmatprep.subr.bf16.mxu1 %v8947_v14  ;;  %v8037_v13 = vcombine.high %v294_v6, %v302_v7  ;;  %v8039_v14 = vcombine.high %v295_v8, %v303_v9  ;;  %v398_v0 = vld [vmem:[%s9601_s22 + $0x4d0] sm:$0xff]  ;;  %v399_v1 = vld [vmem:[%s9601_s22 + $0x4d8] sm:$0xff] }
 0x168   : > { %6648 = vmatpush1.bf16.msra.mxu0 %v8944_v20  ;;  %6812 = vmatpush1.bf16.msra.mxu1 %v8946_v21  ;;  %v8036_v20 = vcombine.low %v294_v6, %v302_v7  ;;  %v8038_v21 = vcombine.low %v295_v8, %v303_v9  ;;  %v406_v6 = vld [vmem:[%s9601_s22 + $0x510] sm:$0xff]  ;;  %v407_v8 = vld [vmem:[%s9601_s22 + $0x518] sm:$0xff] }
 0x169   : > { %6649 = vmatprep.subr.bf16.mxu0 %v8961_v23  ;;  %6813 = vmatprep.subr.bf16.mxu1 %v8963_v24  ;;  %v8053_v23 = vcombine.high %v310_v16, %v318_v17  ;;  %v8055_v24 = vcombine.high %v311_v18, %v319_v19  ;;  %v414_v7 = vld [vmem:[%s9601_s22 + $0x550] sm:$0xff]  ;;  %v415_v9 = vld [vmem:[%s9601_s22 + $0x558] sm:$0xff] }
 0x16c   : > { %6650 = vmatpush1.bf16.msra.mxu0 %v8960_v30  ;;  %6814 = vmatpush1.bf16.msra.mxu1 %v8962_v31  ;;  %v8052_v30 = vcombine.low %v310_v16, %v318_v17  ;;  %v8054_v31 = vcombine.low %v311_v18, %v319_v19  ;;  %v422_v16 = vld [vmem:[%s9601_s22 + $0x590] sm:$0xff]  ;;  %v423_v18 = vld [vmem:[%s9601_s22 + $0x598] sm:$0xff] }
 0x16d   : > { %6651 = vmatprep.subr.bf16.mxu0 %v8977_v32  ;;  %6815 = vmatprep.subr.bf16.mxu1 %v8979_v33  ;;  %v8069_v32 = vcombine.high %v326_v26, %v334_v27  ;;  %v8071_v33 = vcombine.high %v327_v28, %v335_v29  ;;  %v430_v17 = vld [vmem:[%s9601_s22 + $0x5d0] sm:$0xff]  ;;  %v431_v19 = vld [vmem:[%s9601_s22 + $0x5d8] sm:$0xff] }
 0x170   : > { %6652 = vmatpush1.bf16.msra.mxu0 %v8976_v40  ;;  %6816 = vmatpush1.bf16.msra.mxu1 %v8978_v41  ;;  %v8068_v40 = vcombine.low %v326_v26, %v334_v27  ;;  %v8070_v41 = vcombine.low %v327_v28, %v335_v29  ;;  %v438_v26 = vld [vmem:[%s9601_s22 + $0x610] sm:$0xff]  ;;  %v439_v28 = vld [vmem:[%s9601_s22 + $0x618] sm:$0xff] }
 0x171   : > { %6653 = vmatprep.subr.bf16.mxu0 %v8993_v42  ;;  %6817 = vmatprep.subr.bf16.mxu1 %v8995_v43  ;;  %v8085_v42 = vcombine.high %v342_v34, %v350_v35  ;;  %v8087_v43 = vcombine.high %v343_v37, %v351_v38  ;;  %v446_v27 = vld [vmem:[%s9601_s22 + $0x650] sm:$0xff]  ;;  %v447_v29 = vld [vmem:[%s9601_s22 + $0x658] sm:$0xff] }
 0x174   : > { %6654 = vmatpush1.bf16.msra.mxu0 %v8992_v48  ;;  %6818 = vmatpush1.bf16.msra.mxu1 %v8994_v49  ;;  %v8084_v48 = vcombine.low %v342_v34, %v350_v35  ;;  %v8086_v49 = vcombine.low %v343_v37, %v351_v38  ;;  %v454_v34 = vld [vmem:[%s9601_s22 + $0x690] sm:$0xff]  ;;  %v455_v37 = vld [vmem:[%s9601_s22 + $0x698] sm:$0xff] }
 0x175   : > { %6828 = vmatprep.subr.bf16.mxu0 %v7989_v50  ;;  %6992 = vmatprep.subr.bf16.mxu1 %v7991_v51  ;;  %v8101_v50 = vcombine.high %v358_v44, %v366_v45  ;;  %v8103_v51 = vcombine.high %v359_v46, %v367_v47  ;;  %v462_v35 = vld [vmem:[%s9601_s22 + $0x6d0] sm:$0xff]  ;;  %v463_v38 = vld [vmem:[%s9601_s22 + $0x6d8] sm:$0xff] }
 0x177   : > { %6656 = vmatmul.mubr.bf16.vlgmr.msra.gmra.mrb[0].mxu0 %v9921_v55  ;;  %6820 = vmatmul.mubr.bf16.vlgmr.msra.gmra.mrb[0].mxu1 %v9921_v55 }
 0x178   : > { %6829 = vmatpush1.bf16.msra.mxu0 %v7988_v59  ;;  %6993 = vmatpush1.bf16.msra.mxu1 %v7990_v60  ;;  %v8100_v59 = vcombine.low %v358_v44, %v366_v45  ;;  %v8102_v60 = vcombine.low %v359_v46, %v367_v47  ;;  %v470_v44 = vld [vmem:[%s9601_s22 + $0x710] sm:$0xff]  ;;  %v471_v46 = vld [vmem:[%s9601_s22 + $0x718] sm:$0xff] }
 0x179   : > { %6830 = vmatprep.subr.bf16.mxu0 %v8005_v61  ;;  %6994 = vmatprep.subr.bf16.mxu1 %v8007_v62  ;;  %v8117_v61 = vcombine.high %v374_v52, %v382_v54  ;;  %v8119_v62 = vcombine.high %v375_v56, %v383_v58  ;;  %v478_v45 = vld [vmem:[%s9601_s22 + $0x750] sm:$0xff]  ;;  %v479_v47 = vld [vmem:[%s9601_s22 + $0x758] sm:$0xff] }
 0x17a   : > { %6860 = vmatprep.mubr.bf16.mxu0 %v9641_v57  ;;  %7024 = vmatprep.mubr.bf16.mxu1 %v9641_v57 }
 0x17c   : > { %6831 = vmatpush1.bf16.msra.mxu0 %v8004_v2  ;;  %6995 = vmatpush1.bf16.msra.mxu1 %v8006_v3  ;;  %v8116_v2 = vcombine.low %v374_v52, %v382_v54  ;;  %v8118_v3 = vcombine.low %v375_v56, %v383_v58  ;;  %v486_v52 = vld [vmem:[%s9601_s22 + $0x790] sm:$0xff]  ;;  %v487_v56 = vld [vmem:[%s9601_s22 + $0x798] sm:$0xff] }
 0x17d   : > { %6832 = vmatprep.subr.bf16.mxu0 %v8021_v4  ;;  %6996 = vmatprep.subr.bf16.mxu1 %v8023_v5  ;;  %v8133_v4 = vcombine.high %v390_v63, %v398_v0  ;;  %v8135_v5 = vcombine.high %v391_v39, %v399_v1  ;;  %v494_v54 = vld [vmem:[%s9601_s22 + $0x7d0] sm:$0xff]  ;;  %v495_v58 = vld [vmem:[%s9601_s22 + $0x7d8] sm:$0xff] }
 0x180   : > { %6833 = vmatpush1.bf16.msra.mxu0 %v8020_v10  ;;  %6997 = vmatpush1.bf16.msra.mxu1 %v8022_v11  ;;  %v8132_v10 = vcombine.low %v390_v63, %v398_v0  ;;  %v8134_v11 = vcombine.low %v391_v39, %v399_v1  ;;  %v502_v63 = vld [vmem:[%s9601_s22 + $0x810] sm:$0xff]  ;;  %v503_v39 = vld [vmem:[%s9601_s22 + $0x818] sm:$0xff] }
 0x181   : > { %6834 = vmatprep.subr.bf16.mxu0 %v8037_v13  ;;  %6998 = vmatprep.subr.bf16.mxu1 %v8039_v14  ;;  %v8149_v13 = vcombine.high %v406_v6, %v414_v7  ;;  %v8151_v14 = vcombine.high %v407_v8, %v415_v9  ;;  %v510_v0 = vld [vmem:[%s9601_s22 + $0x850] sm:$0xff]  ;;  %v511_v1 = vld [vmem:[%s9601_s22 + $0x858] sm:$0xff] }
 0x184   : > { %6835 = vmatpush1.bf16.msra.mxu0 %v8036_v20  ;;  %6999 = vmatpush1.bf16.msra.mxu1 %v8038_v21  ;;  %v8148_v20 = vcombine.low %v406_v6, %v414_v7  ;;  %v8150_v21 = vcombine.low %v407_v8, %v415_v9  ;;  %v518_v6 = vld [vmem:[%s9601_s22 + $0x890] sm:$0xff]  ;;  %v519_v8 = vld [vmem:[%s9601_s22 + $0x898] sm:$0xff] }
 0x185   : > { %6836 = vmatprep.subr.bf16.mxu0 %v8053_v23  ;;  %7000 = vmatprep.subr.bf16.mxu1 %v8055_v24  ;;  %v8165_v23 = vcombine.high %v422_v16, %v430_v17  ;;  %v8167_v24 = vcombine.high %v423_v18, %v431_v19  ;;  %v526_v7 = vld [vmem:[%s9601_s22 + $0x8d0] sm:$0xff]  ;;  %v527_v9 = vld [vmem:[%s9601_s22 + $0x8d8] sm:$0xff] }
 0x188   : > { %6837 = vmatpush1.bf16.msra.mxu0 %v8052_v30  ;;  %7001 = vmatpush1.bf16.msra.mxu1 %v8054_v31  ;;  %v8164_v30 = vcombine.low %v422_v16, %v430_v17  ;;  %v8166_v31 = vcombine.low %v423_v18, %v431_v19  ;;  %v534_v16 = vld [vmem:[%s9601_s22 + $0x910] sm:$0xff]  ;;  %v535_v18 = vld [vmem:[%s9601_s22 + $0x918] sm:$0xff] }
 0x189   : > { %6838 = vmatprep.subr.bf16.mxu0 %v8069_v32  ;;  %7002 = vmatprep.subr.bf16.mxu1 %v8071_v33  ;;  %v8181_v32 = vcombine.high %v438_v26, %v446_v27  ;;  %v8183_v33 = vcombine.high %v439_v28, %v447_v29  ;;  %v542_v17 = vld [vmem:[%s9601_s22 + $0x950] sm:$0xff]  ;;  %v543_v19 = vld [vmem:[%s9601_s22 + $0x958] sm:$0xff] }
 0x18c   : > { %6839 = vmatpush1.bf16.msra.mxu0 %v8068_v40  ;;  %7003 = vmatpush1.bf16.msra.mxu1 %v8070_v41  ;;  %v8180_v40 = vcombine.low %v438_v26, %v446_v27  ;;  %v8182_v41 = vcombine.low %v439_v28, %v447_v29  ;;  %v550_v26 = vld [vmem:[%s9601_s22 + $0x990] sm:$0xff]  ;;  %v551_v28 = vld [vmem:[%s9601_s22 + $0x998] sm:$0xff] }
 0x18d   : > { %6840 = vmatprep.subr.bf16.mxu0 %v8085_v42  ;;  %7004 = vmatprep.subr.bf16.mxu1 %v8087_v43  ;;  %v8197_v42 = vcombine.high %v454_v34, %v462_v35  ;;  %v8199_v43 = vcombine.high %v455_v37, %v463_v38  ;;  %v558_v27 = vld [vmem:[%s9601_s22 + $0x9d0] sm:$0xff]  ;;  %v559_v29 = vld [vmem:[%s9601_s22 + $0x9d8] sm:$0xff] }
 0x190   : > { %6841 = vmatpush1.bf16.msra.mxu0 %v8084_v48  ;;  %7005 = vmatpush1.bf16.msra.mxu1 %v8086_v49  ;;  %v8196_v48 = vcombine.low %v454_v34, %v462_v35  ;;  %v8198_v49 = vcombine.low %v455_v37, %v463_v38  ;;  %v566_v34 = vld [vmem:[%s9601_s22 + $0xa10] sm:$0xff]  ;;  %v567_v37 = vld [vmem:[%s9601_s22 + $0xa18] sm:$0xff] }
 0x191   : > { %6842 = vmatprep.subr.bf16.mxu0 %v8101_v50  ;;  %7006 = vmatprep.subr.bf16.mxu1 %v8103_v51  ;;  %v8213_v50 = vcombine.high %v470_v44, %v478_v45  ;;  %v8215_v51 = vcombine.high %v471_v46, %v479_v47  ;;  %v574_v35 = vld [vmem:[%s9601_s22 + $0xa50] sm:$0xff]  ;;  %v575_v38 = vld [vmem:[%s9601_s22 + $0xa58] sm:$0xff] }
 0x194   : > { %6843 = vmatpush1.bf16.msra.mxu0 %v8100_v59  ;;  %7007 = vmatpush1.bf16.msra.mxu1 %v8102_v60  ;;  %v8212_v59 = vcombine.low %v470_v44, %v478_v45  ;;  %v8214_v60 = vcombine.low %v471_v46, %v479_v47  ;;  %v582_v44 = vld [vmem:[%s9601_s22 + $0xa90] sm:$0xff]  ;;  %v583_v46 = vld [vmem:[%s9601_s22 + $0xa98] sm:$0xff] }
 0x195   : > { %6844 = vmatprep.subr.bf16.mxu0 %v8117_v61  ;;  %7008 = vmatprep.subr.bf16.mxu1 %v8119_v62  ;;  %v8229_v61 = vcombine.high %v486_v52, %v494_v54  ;;  %v8231_v62 = vcombine.high %v487_v56, %v495_v58  ;;  %v590_v45 = vld [vmem:[%s9601_s22 + $0xad0] sm:$0xff]  ;;  %v591_v47 = vld [vmem:[%s9601_s22 + $0xad8] sm:$0xff] }
 0x198   : > { %6845 = vmatpush1.bf16.msra.mxu0 %v8116_v2  ;;  %7009 = vmatpush1.bf16.msra.mxu1 %v8118_v3  ;;  %v8228_v2 = vcombine.low %v486_v52, %v494_v54  ;;  %v8230_v3 = vcombine.low %v487_v56, %v495_v58  ;;  %v598_v52 = vld [vmem:[%s9601_s22 + $0xb10] sm:$0xff]  ;;  %v599_v56 = vld [vmem:[%s9601_s22 + $0xb18] sm:$0xff] }
 0x199   : > { %6846 = vmatprep.subr.bf16.mxu0 %v8133_v4  ;;  %7010 = vmatprep.subr.bf16.mxu1 %v8135_v5  ;;  %v8245_v4 = vcombine.high %v502_v63, %v510_v0  ;;  %v8247_v5 = vcombine.high %v503_v39, %v511_v1  ;;  %v606_v54 = vld [vmem:[%s9601_s22 + $0xb50] sm:$0xff]  ;;  %v607_v58 = vld [vmem:[%s9601_s22 + $0xb58] sm:$0xff] }
 0x19c   : > { %6847 = vmatpush1.bf16.msra.mxu0 %v8132_v10  ;;  %7011 = vmatpush1.bf16.msra.mxu1 %v8134_v11  ;;  %v8244_v10 = vcombine.low %v502_v63, %v510_v0  ;;  %v8246_v11 = vcombine.low %v503_v39, %v511_v1  ;;  %v614_v63 = vld [vmem:[%s9601_s22 + $0xb90] sm:$0xff]  ;;  %v615_v39 = vld [vmem:[%s9601_s22 + $0xb98] sm:$0xff] }
 0x19d   : > { %6848 = vmatprep.subr.bf16.mxu0 %v8149_v13  ;;  %7012 = vmatprep.subr.bf16.mxu1 %v8151_v14  ;;  %v8261_v13 = vcombine.high %v518_v6, %v526_v7  ;;  %v8263_v14 = vcombine.high %v519_v8, %v527_v9  ;;  %v622_v0 = vld [vmem:[%s9601_s22 + $0xbd0] sm:$0xff]  ;;  %v623_v1 = vld [vmem:[%s9601_s22 + $0xbd8] sm:$0xff] }
 0x1a0   : > { %6849 = vmatpush1.bf16.msra.mxu0 %v8148_v20  ;;  %7013 = vmatpush1.bf16.msra.mxu1 %v8150_v21  ;;  %v8260_v20 = vcombine.low %v518_v6, %v526_v7  ;;  %v8262_v21 = vcombine.low %v519_v8, %v527_v9  ;;  %v630_v6 = vld [vmem:[%s9601_s22 + $0xc10] sm:$0xff]  ;;  %v631_v8 = vld [vmem:[%s9601_s22 + $0xc18] sm:$0xff] }
 0x1a1   : > { %6850 = vmatprep.subr.bf16.mxu0 %v8165_v23  ;;  %7014 = vmatprep.subr.bf16.mxu1 %v8167_v24  ;;  %v8277_v23 = vcombine.high %v534_v16, %v542_v17  ;;  %v8279_v24 = vcombine.high %v535_v18, %v543_v19  ;;  %v638_v7 = vld [vmem:[%s9601_s22 + $0xc50] sm:$0xff]  ;;  %v639_v9 = vld [vmem:[%s9601_s22 + $0xc58] sm:$0xff] }
 0x1a4   : > { %6851 = vmatpush1.bf16.msra.mxu0 %v8164_v30  ;;  %7015 = vmatpush1.bf16.msra.mxu1 %v8166_v31  ;;  %v8276_v30 = vcombine.low %v534_v16, %v542_v17  ;;  %v8278_v31 = vcombine.low %v535_v18, %v543_v19  ;;  %v646_v16 = vld [vmem:[%s9601_s22 + $0xc90] sm:$0xff]  ;;  %v647_v18 = vld [vmem:[%s9601_s22 + $0xc98] sm:$0xff] }
 0x1a5   : > { %6852 = vmatprep.subr.bf16.mxu0 %v8181_v32  ;;  %7016 = vmatprep.subr.bf16.mxu1 %v8183_v33  ;;  %v8293_v32 = vcombine.high %v550_v26, %v558_v27  ;;  %v8295_v33 = vcombine.high %v551_v28, %v559_v29  ;;  %v654_v17 = vld [vmem:[%s9601_s22 + $0xcd0] sm:$0xff]  ;;  %v655_v19 = vld [vmem:[%s9601_s22 + $0xcd8] sm:$0xff] }
 0x1a8   : > { %6853 = vmatpush1.bf16.msra.mxu0 %v8180_v40  ;;  %7017 = vmatpush1.bf16.msra.mxu1 %v8182_v41  ;;  %v8292_v40 = vcombine.low %v550_v26, %v558_v27  ;;  %v8294_v41 = vcombine.low %v551_v28, %v559_v29  ;;  %v662_v26 = vld [vmem:[%s9601_s22 + $0xd10] sm:$0xff]  ;;  %v663_v28 = vld [vmem:[%s9601_s22 + $0xd18] sm:$0xff] }
 0x1a9   : > { %6854 = vmatprep.subr.bf16.mxu0 %v8197_v42  ;;  %7018 = vmatprep.subr.bf16.mxu1 %v8199_v43  ;;  %v8309_v42 = vcombine.high %v566_v34, %v574_v35  ;;  %v8311_v43 = vcombine.high %v567_v37, %v575_v38  ;;  %v670_v27 = vld [vmem:[%s9601_s22 + $0xd50] sm:$0xff]  ;;  %v671_v29 = vld [vmem:[%s9601_s22 + $0xd58] sm:$0xff] }
 0x1ac   : > { %6855 = vmatpush1.bf16.msra.mxu0 %v8196_v48  ;;  %7019 = vmatpush1.bf16.msra.mxu1 %v8198_v49  ;;  %v8308_v48 = vcombine.low %v566_v34, %v574_v35  ;;  %v8310_v49 = vcombine.low %v567_v37, %v575_v38  ;;  %v678_v34 = vld [vmem:[%s9601_s22 + $0xd90] sm:$0xff]  ;;  %v679_v37 = vld [vmem:[%s9601_s22 + $0xd98] sm:$0xff] }
 0x1ad   : > { %6856 = vmatprep.subr.bf16.mxu0 %v8213_v50  ;;  %7020 = vmatprep.subr.bf16.mxu1 %v8215_v51  ;;  %v8325_v50 = vcombine.high %v582_v44, %v590_v45  ;;  %v8327_v51 = vcombine.high %v583_v46, %v591_v47  ;;  %v686_v35 = vld [vmem:[%s9601_s22 + $0xdd0] sm:$0xff]  ;;  %v687_v38 = vld [vmem:[%s9601_s22 + $0xdd8] sm:$0xff] }
 0x1b0   : > { %6857 = vmatpush1.bf16.msra.mxu0 %v8212_v59  ;;  %7021 = vmatpush1.bf16.msra.mxu1 %v8214_v60  ;;  %v8324_v59 = vcombine.low %v582_v44, %v590_v45  ;;  %v8326_v60 = vcombine.low %v583_v46, %v591_v47  ;;  %v694_v44 = vld [vmem:[%s9601_s22 + $0xe10] sm:$0xff]  ;;  %v695_v46 = vld [vmem:[%s9601_s22 + $0xe18] sm:$0xff] }
 0x1b1   : > { %6858 = vmatprep.subr.bf16.mxu0 %v8229_v61  ;;  %7022 = vmatprep.subr.bf16.mxu1 %v8231_v62  ;;  %v8341_v61 = vcombine.high %v598_v52, %v606_v54  ;;  %v8343_v62 = vcombine.high %v599_v56, %v607_v58  ;;  %v702_v45 = vld [vmem:[%s9601_s22 + $0xe50] sm:$0xff]  ;;  %v703_v47 = vld [vmem:[%s9601_s22 + $0xe58] sm:$0xff] }
 0x1b4   : > { %6859 = vmatpush1.bf16.msra.mxu0 %v8228_v2  ;;  %7023 = vmatpush1.bf16.msra.mxu1 %v8230_v3  ;;  %v8340_v2 = vcombine.low %v598_v52, %v606_v54  ;;  %v8342_v3 = vcombine.low %v599_v56, %v607_v58  ;;  %v710_v52 = vld [vmem:[%s9601_s22 + $0xe90] sm:$0xff]  ;;  %v711_v56 = vld [vmem:[%s9601_s22 + $0xe98] sm:$0xff] }
 0x1b5   : > { %6869 = vmatprep.subr.bf16.mxu0 %v8245_v4  ;;  %7033 = vmatprep.subr.bf16.mxu1 %v8247_v5  ;;  %v8357_v4 = vcombine.high %v614_v63, %v622_v0  ;;  %v8359_v5 = vcombine.high %v615_v39, %v623_v1  ;;  %v718_v54 = vld [vmem:[%s9601_s22 + $0xed0] sm:$0xff]  ;;  %v719_v58 = vld [vmem:[%s9601_s22 + $0xed8] sm:$0xff] }
 0x1b7   : > { %6861 = vmatmul.mubr.bf16.vlgmr.msra.gmra.mrb[4].mxu0 %v9687_v12  ;;  %7025 = vmatmul.mubr.bf16.vlgmr.msra.gmra.mrb[4].mxu1 %v9687_v12 }
 0x1b8   : > { %6870 = vmatpush1.bf16.msra.mxu0 %v8244_v10  ;;  %7034 = vmatpush1.bf16.msra.mxu1 %v8246_v11  ;;  %v8356_v10 = vcombine.low %v614_v63, %v622_v0  ;;  %v8358_v11 = vcombine.low %v615_v39, %v623_v1  ;;  %v726_v63 = vld [vmem:[%s9601_s22 + $0xf10] sm:$0xff]  ;;  %v727_v39 = vld [vmem:[%s9601_s22 + $0xf18] sm:$0xff] }
 0x1b9   : > { %6871 = vmatprep.subr.bf16.mxu0 %v8261_v13  ;;  %7035 = vmatprep.subr.bf16.mxu1 %v8263_v14  ;;  %v8373_v13 = vcombine.high %v630_v6, %v638_v7  ;;  %v8375_v14 = vcombine.high %v631_v8, %v639_v9  ;;  %v734_v0 = vld [vmem:[%s9601_s22 + $0xf50] sm:$0xff]  ;;  %v735_v1 = vld [vmem:[%s9601_s22 + $0xf58] sm:$0xff] }
 0x1ba   : > { %6901 = vmatprep.mubr.bf16.mxu0 %v9697_v53  ;;  %7065 = vmatprep.mubr.bf16.mxu1 %v9697_v53 }
 0x1bc   : > { %6872 = vmatpush1.bf16.msra.mxu0 %v8260_v20  ;;  %7036 = vmatpush1.bf16.msra.mxu1 %v8262_v21  ;;  %v8372_v20 = vcombine.low %v630_v6, %v638_v7  ;;  %v8374_v21 = vcombine.low %v631_v8, %v639_v9  ;;  %v742_v6 = vld [vmem:[%s9601_s22 + $0xf90] sm:$0xff]  ;;  %v743_v8 = vld [vmem:[%s9601_s22 + $0xf98] sm:$0xff] }
 0x1bd   : > { %6873 = vmatprep.subr.bf16.mxu0 %v8277_v23  ;;  %7037 = vmatprep.subr.bf16.mxu1 %v8279_v24  ;;  %v8389_v23 = vcombine.high %v646_v16, %v654_v17  ;;  %v8391_v24 = vcombine.high %v647_v18, %v655_v19  ;;  %v750_v7 = vld [vmem:[%s9601_s22 + $0xfd0] sm:$0xff]  ;;  %v751_v9 = vld [vmem:[%s9601_s22 + $0xfd8] sm:$0xff] }
 0x1c0   : > { %6874 = vmatpush1.bf16.msra.mxu0 %v8276_v30  ;;  %7038 = vmatpush1.bf16.msra.mxu1 %v8278_v31  ;;  %v8388_v30 = vcombine.low %v646_v16, %v654_v17  ;;  %v8390_v31 = vcombine.low %v647_v18, %v655_v19  ;;  %v758_v16 = vld [vmem:[%s9601_s22 + $0x1010] sm:$0xff]  ;;  %v759_v18 = vld [vmem:[%s9601_s22 + $0x1018] sm:$0xff] }
 0x1c1   : > { %6875 = vmatprep.subr.bf16.mxu0 %v8293_v32  ;;  %7039 = vmatprep.subr.bf16.mxu1 %v8295_v33  ;;  %v8405_v32 = vcombine.high %v662_v26, %v670_v27  ;;  %v8407_v33 = vcombine.high %v663_v28, %v671_v29  ;;  %v766_v17 = vld [vmem:[%s9601_s22 + $0x1050] sm:$0xff]  ;;  %v767_v19 = vld [vmem:[%s9601_s22 + $0x1058] sm:$0xff] }
 0x1c4   : > { %6876 = vmatpush1.bf16.msra.mxu0 %v8292_v40  ;;  %7040 = vmatpush1.bf16.msra.mxu1 %v8294_v41  ;;  %v8404_v40 = vcombine.low %v662_v26, %v670_v27  ;;  %v8406_v41 = vcombine.low %v663_v28, %v671_v29  ;;  %v774_v26 = vld [vmem:[%s9601_s22 + $0x1090] sm:$0xff]  ;;  %v775_v28 = vld [vmem:[%s9601_s22 + $0x1098] sm:$0xff] }
 0x1c5   : > { %6877 = vmatprep.subr.bf16.mxu0 %v8309_v42  ;;  %7041 = vmatprep.subr.bf16.mxu1 %v8311_v43  ;;  %v8421_v42 = vcombine.high %v678_v34, %v686_v35  ;;  %v8423_v43 = vcombine.high %v679_v37, %v687_v38  ;;  %v782_v27 = vld [vmem:[%s9601_s22 + $0x10d0] sm:$0xff]  ;;  %v783_v29 = vld [vmem:[%s9601_s22 + $0x10d8] sm:$0xff] }
 0x1c8   : > { %6878 = vmatpush1.bf16.msra.mxu0 %v8308_v48  ;;  %7042 = vmatpush1.bf16.msra.mxu1 %v8310_v49  ;;  %v8420_v48 = vcombine.low %v678_v34, %v686_v35  ;;  %v8422_v49 = vcombine.low %v679_v37, %v687_v38  ;;  %v790_v34 = vld [vmem:[%s9601_s22 + $0x1110] sm:$0xff]  ;;  %v791_v37 = vld [vmem:[%s9601_s22 + $0x1118] sm:$0xff] }
 0x1c9   : > { %6879 = vmatprep.subr.bf16.mxu0 %v8325_v50  ;;  %7043 = vmatprep.subr.bf16.mxu1 %v8327_v51  ;;  %v8437_v50 = vcombine.high %v694_v44, %v702_v45  ;;  %v8439_v51 = vcombine.high %v695_v46, %v703_v47  ;;  %v798_v35 = vld [vmem:[%s9601_s22 + $0x1150] sm:$0xff]  ;;  %v799_v38 = vld [vmem:[%s9601_s22 + $0x1158] sm:$0xff] }
 0x1cc   : > { %6880 = vmatpush1.bf16.msra.mxu0 %v8324_v59  ;;  %7044 = vmatpush1.bf16.msra.mxu1 %v8326_v60  ;;  %v8436_v59 = vcombine.low %v694_v44, %v702_v45  ;;  %v8438_v60 = vcombine.low %v695_v46, %v703_v47  ;;  %v806_v44 = vld [vmem:[%s9601_s22 + $0x1190] sm:$0xff]  ;;  %v807_v46 = vld [vmem:[%s9601_s22 + $0x1198] sm:$0xff] }
 0x1cd   : > { %6881 = vmatprep.subr.bf16.mxu0 %v8341_v61  ;;  %7045 = vmatprep.subr.bf16.mxu1 %v8343_v62  ;;  %v8453_v61 = vcombine.high %v710_v52, %v718_v54  ;;  %v8455_v62 = vcombine.high %v711_v56, %v719_v58  ;;  %v814_v45 = vld [vmem:[%s9601_s22 + $0x11d0] sm:$0xff]  ;;  %v815_v47 = vld [vmem:[%s9601_s22 + $0x11d8] sm:$0xff] }
 0x1d0   : > { %6882 = vmatpush1.bf16.msra.mxu0 %v8340_v2  ;;  %7046 = vmatpush1.bf16.msra.mxu1 %v8342_v3  ;;  %v8452_v2 = vcombine.low %v710_v52, %v718_v54  ;;  %v8454_v3 = vcombine.low %v711_v56, %v719_v58  ;;  %v822_v52 = vld [vmem:[%s9601_s22 + $0x1210] sm:$0xff]  ;;  %v823_v56 = vld [vmem:[%s9601_s22 + $0x1218] sm:$0xff] }
 0x1d1   : > { %6883 = vmatprep.subr.bf16.mxu0 %v8357_v4  ;;  %7047 = vmatprep.subr.bf16.mxu1 %v8359_v5  ;;  %v8469_v4 = vcombine.high %v726_v63, %v734_v0  ;;  %v8471_v5 = vcombine.high %v727_v39, %v735_v1  ;;  %v830_v54 = vld [vmem:[%s9601_s22 + $0x1250] sm:$0xff]  ;;  %v831_v58 = vld [vmem:[%s9601_s22 + $0x1258] sm:$0xff] }
 0x1d4   : > { %6884 = vmatpush1.bf16.msra.mxu0 %v8356_v10  ;;  %7048 = vmatpush1.bf16.msra.mxu1 %v8358_v11  ;;  %v8468_v10 = vcombine.low %v726_v63, %v734_v0  ;;  %v8470_v11 = vcombine.low %v727_v39, %v735_v1  ;;  %v838_v63 = vld [vmem:[%s9601_s22 + $0x1290] sm:$0xff]  ;;  %v839_v39 = vld [vmem:[%s9601_s22 + $0x1298] sm:$0xff] }
 0x1d5   : > { %6885 = vmatprep.subr.bf16.mxu0 %v8373_v13  ;;  %7049 = vmatprep.subr.bf16.mxu1 %v8375_v14  ;;  %v8485_v13 = vcombine.high %v742_v6, %v750_v7  ;;  %v8487_v14 = vcombine.high %v743_v8, %v751_v9  ;;  %v846_v0 = vld [vmem:[%s9601_s22 + $0x12d0] sm:$0xff]  ;;  %v847_v1 = vld [vmem:[%s9601_s22 + $0x12d8] sm:$0xff] }
 0x1d8   : > { %6886 = vmatpush1.bf16.msra.mxu0 %v8372_v20  ;;  %7050 = vmatpush1.bf16.msra.mxu1 %v8374_v21  ;;  %v8484_v20 = vcombine.low %v742_v6, %v750_v7  ;;  %v8486_v21 = vcombine.low %v743_v8, %v751_v9  ;;  %v854_v6 = vld [vmem:[%s9601_s22 + $0x1310] sm:$0xff]  ;;  %v855_v8 = vld [vmem:[%s9601_s22 + $0x1318] sm:$0xff] }
 0x1d9   : > { %6887 = vmatprep.subr.bf16.mxu0 %v8389_v23  ;;  %7051 = vmatprep.subr.bf16.mxu1 %v8391_v24  ;;  %v8501_v23 = vcombine.high %v758_v16, %v766_v17  ;;  %v8503_v24 = vcombine.high %v759_v18, %v767_v19  ;;  %v862_v7 = vld [vmem:[%s9601_s22 + $0x1350] sm:$0xff]  ;;  %v863_v9 = vld [vmem:[%s9601_s22 + $0x1358] sm:$0xff] }
 0x1dc   : > { %6888 = vmatpush1.bf16.msra.mxu0 %v8388_v30  ;;  %7052 = vmatpush1.bf16.msra.mxu1 %v8390_v31  ;;  %v8500_v30 = vcombine.low %v758_v16, %v766_v17  ;;  %v8502_v31 = vcombine.low %v759_v18, %v767_v19  ;;  %v870_v16 = vld [vmem:[%s9601_s22 + $0x1390] sm:$0xff]  ;;  %v871_v18 = vld [vmem:[%s9601_s22 + $0x1398] sm:$0xff] }
 0x1dd   : > { %6889 = vmatprep.subr.bf16.mxu0 %v8405_v32  ;;  %7053 = vmatprep.subr.bf16.mxu1 %v8407_v33  ;;  %v8517_v32 = vcombine.high %v774_v26, %v782_v27  ;;  %v8519_v33 = vcombine.high %v775_v28, %v783_v29  ;;  %v878_v17 = vld [vmem:[%s9601_s22 + $0x13d0] sm:$0xff]  ;;  %v879_v19 = vld [vmem:[%s9601_s22 + $0x13d8] sm:$0xff] }
 0x1e0   : > { %6890 = vmatpush1.bf16.msra.mxu0 %v8404_v40  ;;  %7054 = vmatpush1.bf16.msra.mxu1 %v8406_v41  ;;  %v8516_v40 = vcombine.low %v774_v26, %v782_v27  ;;  %v8518_v41 = vcombine.low %v775_v28, %v783_v29  ;;  %v886_v26 = vld [vmem:[%s9601_s22 + $0x1410] sm:$0xff]  ;;  %v887_v28 = vld [vmem:[%s9601_s22 + $0x1418] sm:$0xff] }
 0x1e1   : > { %6891 = vmatprep.subr.bf16.mxu0 %v8421_v42  ;;  %7055 = vmatprep.subr.bf16.mxu1 %v8423_v43  ;;  %v8533_v42 = vcombine.high %v790_v34, %v798_v35  ;;  %v8535_v43 = vcombine.high %v791_v37, %v799_v38  ;;  %v894_v27 = vld [vmem:[%s9601_s22 + $0x1450] sm:$0xff]  ;;  %v895_v29 = vld [vmem:[%s9601_s22 + $0x1458] sm:$0xff] }
 0x1e4   : > { %6892 = vmatpush1.bf16.msra.mxu0 %v8420_v48  ;;  %7056 = vmatpush1.bf16.msra.mxu1 %v8422_v49  ;;  %v8532_v48 = vcombine.low %v790_v34, %v798_v35  ;;  %v8534_v49 = vcombine.low %v791_v37, %v799_v38  ;;  %v902_v34 = vld [vmem:[%s9601_s22 + $0x1490] sm:$0xff]  ;;  %v903_v37 = vld [vmem:[%s9601_s22 + $0x1498] sm:$0xff] }
 0x1e5   : > { %6893 = vmatprep.subr.bf16.mxu0 %v8437_v50  ;;  %7057 = vmatprep.subr.bf16.mxu1 %v8439_v51  ;;  %v8549_v50 = vcombine.high %v806_v44, %v814_v45  ;;  %v8551_v51 = vcombine.high %v807_v46, %v815_v47  ;;  %v910_v35 = vld [vmem:[%s9601_s22 + $0x14d0] sm:$0xff]  ;;  %v911_v38 = vld [vmem:[%s9601_s22 + $0x14d8] sm:$0xff] }
 0x1e8   : > { %6894 = vmatpush1.bf16.msra.mxu0 %v8436_v59  ;;  %7058 = vmatpush1.bf16.msra.mxu1 %v8438_v60  ;;  %v8548_v59 = vcombine.low %v806_v44, %v814_v45  ;;  %v8550_v60 = vcombine.low %v807_v46, %v815_v47  ;;  %v918_v44 = vld [vmem:[%s9601_s22 + $0x1510] sm:$0xff]  ;;  %v919_v46 = vld [vmem:[%s9601_s22 + $0x1518] sm:$0xff] }
 0x1e9   : > { %6895 = vmatprep.subr.bf16.mxu0 %v8453_v61  ;;  %7059 = vmatprep.subr.bf16.mxu1 %v8455_v62  ;;  %v8565_v61 = vcombine.high %v822_v52, %v830_v54  ;;  %v8567_v62 = vcombine.high %v823_v56, %v831_v58  ;;  %v926_v45 = vld [vmem:[%s9601_s22 + $0x1550] sm:$0xff]  ;;  %v927_v47 = vld [vmem:[%s9601_s22 + $0x1558] sm:$0xff] }
 0x1ec   : > { %6896 = vmatpush1.bf16.msra.mxu0 %v8452_v2  ;;  %7060 = vmatpush1.bf16.msra.mxu1 %v8454_v3  ;;  %v8564_v2 = vcombine.low %v822_v52, %v830_v54  ;;  %v8566_v3 = vcombine.low %v823_v56, %v831_v58  ;;  %v934_v52 = vld [vmem:[%s9601_s22 + $0x1590] sm:$0xff]  ;;  %v935_v56 = vld [vmem:[%s9601_s22 + $0x1598] sm:$0xff] }
 0x1ed   : > { %6897 = vmatprep.subr.bf16.mxu0 %v8469_v4  ;;  %7061 = vmatprep.subr.bf16.mxu1 %v8471_v5  ;;  %v8581_v4 = vcombine.high %v838_v63, %v846_v0  ;;  %v8583_v5 = vcombine.high %v839_v39, %v847_v1  ;;  %v942_v54 = vld [vmem:[%s9601_s22 + $0x15d0] sm:$0xff]  ;;  %v943_v58 = vld [vmem:[%s9601_s22 + $0x15d8] sm:$0xff] }
 0x1f0   : > { %6898 = vmatpush1.bf16.msra.mxu0 %v8468_v10  ;;  %7062 = vmatpush1.bf16.msra.mxu1 %v8470_v11  ;;  %v8580_v10 = vcombine.low %v838_v63, %v846_v0  ;;  %v8582_v11 = vcombine.low %v839_v39, %v847_v1  ;;  %v950_v63 = vld [vmem:[%s9601_s22 + $0x1610] sm:$0xff]  ;;  %v951_v39 = vld [vmem:[%s9601_s22 + $0x1618] sm:$0xff] }
 0x1f1   : > { %6899 = vmatprep.subr.bf16.mxu0 %v8485_v13  ;;  %7063 = vmatprep.subr.bf16.mxu1 %v8487_v14  ;;  %v8597_v13 = vcombine.high %v854_v6, %v862_v7  ;;  %v8599_v14 = vcombine.high %v855_v8, %v863_v9  ;;  %v958_v0 = vld [vmem:[%s9601_s22 + $0x1650] sm:$0xff]  ;;  %v959_v1 = vld [vmem:[%s9601_s22 + $0x1658] sm:$0xff] }
 0x1f4   : > { %6900 = vmatpush1.bf16.msra.mxu0 %v8484_v20  ;;  %7064 = vmatpush1.bf16.msra.mxu1 %v8486_v21  ;;  %v8596_v20 = vcombine.low %v854_v6, %v862_v7  ;;  %v8598_v21 = vcombine.low %v855_v8, %v863_v9  ;;  %v966_v6 = vld [vmem:[%s9601_s22 + $0x1690] sm:$0xff]  ;;  %v967_v8 = vld [vmem:[%s9601_s22 + $0x1698] sm:$0xff] }
 0x1f5   : > { %6910 = vmatprep.subr.bf16.mxu0 %v8501_v23  ;;  %7074 = vmatprep.subr.bf16.mxu1 %v8503_v24  ;;  %v8613_v23 = vcombine.high %v870_v16, %v878_v17  ;;  %v8615_v24 = vcombine.high %v871_v18, %v879_v19  ;;  %v974_v7 = vld [vmem:[%s9601_s22 + $0x16d0] sm:$0xff]  ;;  %v975_v9 = vld [vmem:[%s9601_s22 + $0x16d8] sm:$0xff] }
 0x1f7   : > { %6902 = vmatmul.mubr.bf16.vlgmr.msra.gmra.mrb[4].mxu0 %v9765_v22  ;;  %7066 = vmatmul.mubr.bf16.vlgmr.msra.gmra.mrb[4].mxu1 %v9765_v22 }
 0x1f8   : > { %6911 = vmatpush1.bf16.msra.mxu0 %v8500_v30  ;;  %7075 = vmatpush1.bf16.msra.mxu1 %v8502_v31  ;;  %v8612_v30 = vcombine.low %v870_v16, %v878_v17  ;;  %v8614_v31 = vcombine.low %v871_v18, %v879_v19  ;;  %v982_v16 = vld [vmem:[%s9601_s22 + $0x1710] sm:$0xff]  ;;  %v983_v18 = vld [vmem:[%s9601_s22 + $0x1718] sm:$0xff] }
 0x1f9   : > { %6912 = vmatprep.subr.bf16.mxu0 %v8517_v32  ;;  %7076 = vmatprep.subr.bf16.mxu1 %v8519_v33  ;;  %v8629_v32 = vcombine.high %v886_v26, %v894_v27  ;;  %v8631_v33 = vcombine.high %v887_v28, %v895_v29  ;;  %v990_v17 = vld [vmem:[%s9601_s22 + $0x1750] sm:$0xff]  ;;  %v991_v19 = vld [vmem:[%s9601_s22 + $0x1758] sm:$0xff] }
 0x1fa   : > { %6942 = vmatprep.mubr.bf16.mxu0 %v9775_v15  ;;  %7106 = vmatprep.mubr.bf16.mxu1 %v9775_v15 }
 0x1fc   : > { %6913 = vmatpush1.bf16.msra.mxu0 %v8516_v40  ;;  %7077 = vmatpush1.bf16.msra.mxu1 %v8518_v41  ;;  %v8628_v40 = vcombine.low %v886_v26, %v894_v27  ;;  %v8630_v41 = vcombine.low %v887_v28, %v895_v29  ;;  %v998_v26 = vld [vmem:[%s9601_s22 + $0x1790] sm:$0xff]  ;;  %v999_v28 = vld [vmem:[%s9601_s22 + $0x1798] sm:$0xff] }
 0x1fd   : > { %6914 = vmatprep.subr.bf16.mxu0 %v8533_v42  ;;  %7078 = vmatprep.subr.bf16.mxu1 %v8535_v43  ;;  %v8645_v42 = vcombine.high %v902_v34, %v910_v35  ;;  %v8647_v43 = vcombine.high %v903_v37, %v911_v38  ;;  %v1006_v27 = vld [vmem:[%s9601_s22 + $0x17d0] sm:$0xff]  ;;  %v1007_v29 = vld [vmem:[%s9601_s22 + $0x17d8] sm:$0xff] }
 0x200   : > { %6915 = vmatpush1.bf16.msra.mxu0 %v8532_v48  ;;  %7079 = vmatpush1.bf16.msra.mxu1 %v8534_v49  ;;  %v8644_v48 = vcombine.low %v902_v34, %v910_v35  ;;  %v8646_v49 = vcombine.low %v903_v37, %v911_v38  ;;  %v1014_v34 = vld [vmem:[%s9601_s22 + $0x1810] sm:$0xff]  ;;  %v1015_v37 = vld [vmem:[%s9601_s22 + $0x1818] sm:$0xff] }
 0x201   : > { %6916 = vmatprep.subr.bf16.mxu0 %v8549_v50  ;;  %7080 = vmatprep.subr.bf16.mxu1 %v8551_v51  ;;  %v8661_v50 = vcombine.high %v918_v44, %v926_v45  ;;  %v8663_v51 = vcombine.high %v919_v46, %v927_v47  ;;  %v1022_v35 = vld [vmem:[%s9601_s22 + $0x1850] sm:$0xff]  ;;  %v1023_v38 = vld [vmem:[%s9601_s22 + $0x1858] sm:$0xff] }
 0x204   : > { %6917 = vmatpush1.bf16.msra.mxu0 %v8548_v59  ;;  %7081 = vmatpush1.bf16.msra.mxu1 %v8550_v60  ;;  %v8660_v59 = vcombine.low %v918_v44, %v926_v45  ;;  %v8662_v60 = vcombine.low %v919_v46, %v927_v47  ;;  %v1030_v44 = vld [vmem:[%s9601_s22 + $0x1890] sm:$0xff]  ;;  %v1031_v46 = vld [vmem:[%s9601_s22 + $0x1898] sm:$0xff] }
 0x205   : > { %6918 = vmatprep.subr.bf16.mxu0 %v8565_v61  ;;  %7082 = vmatprep.subr.bf16.mxu1 %v8567_v62  ;;  %v8677_v61 = vcombine.high %v934_v52, %v942_v54  ;;  %v8679_v62 = vcombine.high %v935_v56, %v943_v58  ;;  %v1038_v45 = vld [vmem:[%s9601_s22 + $0x18d0] sm:$0xff]  ;;  %v1039_v47 = vld [vmem:[%s9601_s22 + $0x18d8] sm:$0xff] }
 0x208   : > { %6919 = vmatpush1.bf16.msra.mxu0 %v8564_v2  ;;  %7083 = vmatpush1.bf16.msra.mxu1 %v8566_v3  ;;  %v8676_v2 = vcombine.low %v934_v52, %v942_v54  ;;  %v8678_v3 = vcombine.low %v935_v56, %v943_v58  ;;  %v1046_v52 = vld [vmem:[%s9601_s22 + $0x1910] sm:$0xff]  ;;  %v1047_v56 = vld [vmem:[%s9601_s22 + $0x1918] sm:$0xff] }
 0x209   : > { %6920 = vmatprep.subr.bf16.mxu0 %v8581_v4  ;;  %7084 = vmatprep.subr.bf16.mxu1 %v8583_v5  ;;  %v8693_v4 = vcombine.high %v950_v63, %v958_v0  ;;  %v8695_v5 = vcombine.high %v951_v39, %v959_v1  ;;  %v1054_v54 = vld [vmem:[%s9601_s22 + $0x1950] sm:$0xff]  ;;  %v1055_v58 = vld [vmem:[%s9601_s22 + $0x1958] sm:$0xff] }
 0x20c   : > { %6921 = vmatpush1.bf16.msra.mxu0 %v8580_v10  ;;  %7085 = vmatpush1.bf16.msra.mxu1 %v8582_v11  ;;  %v8692_v10 = vcombine.low %v950_v63, %v958_v0  ;;  %v8694_v11 = vcombine.low %v951_v39, %v959_v1  ;;  %v1062_v63 = vld [vmem:[%s9601_s22 + $0x1990] sm:$0xff]  ;;  %v1063_v39 = vld [vmem:[%s9601_s22 + $0x1998] sm:$0xff] }
 0x20d   : > { %6922 = vmatprep.subr.bf16.mxu0 %v8597_v13  ;;  %7086 = vmatprep.subr.bf16.mxu1 %v8599_v14  ;;  %v8709_v13 = vcombine.high %v966_v6, %v974_v7  ;;  %v8711_v14 = vcombine.high %v967_v8, %v975_v9  ;;  %v1070_v0 = vld [vmem:[%s9601_s22 + $0x19d0] sm:$0xff]  ;;  %v1071_v1 = vld [vmem:[%s9601_s22 + $0x19d8] sm:$0xff] }
 0x210   : > { %6923 = vmatpush1.bf16.msra.mxu0 %v8596_v20  ;;  %7087 = vmatpush1.bf16.msra.mxu1 %v8598_v21  ;;  %v8708_v20 = vcombine.low %v966_v6, %v974_v7  ;;  %v8710_v21 = vcombine.low %v967_v8, %v975_v9  ;;  %v8807_v6 = vcombine.high %v1063_v39, %v1071_v1  ;;  %v1078_v7 = vld [vmem:[%s9601_s22 + $0x1a10] sm:$0xff]  ;;  %v1079_v9 = vld [vmem:[%s9601_s22 + $0x1a18] sm:$0xff] }
 0x211   : > { %6924 = vmatprep.subr.bf16.mxu0 %v8613_v23  ;;  %7088 = vmatprep.subr.bf16.mxu1 %v8615_v24  ;;  %v8725_v23 = vcombine.high %v982_v16, %v990_v17  ;;  %v8727_v24 = vcombine.high %v983_v18, %v991_v19  ;;  %v1086_v8 = vld [vmem:[%s9601_s22 + $0x1a50] sm:$0xff] }
 0x214   : > { %6925 = vmatpush1.bf16.msra.mxu0 %v8612_v30  ;;  %7089 = vmatpush1.bf16.msra.mxu1 %v8614_v31  ;;  %v8724_v30 = vcombine.low %v982_v16, %v990_v17  ;;  %v8726_v31 = vcombine.low %v983_v18, %v991_v19  ;;  %v8821_v16 = vcombine.high %v1078_v7, %v1086_v8  ;;  %v1094_v18 = vld [vmem:[%s9601_s22 + $0x1a90] sm:$0xff] }
 0x215   : > { %6926 = vmatprep.subr.bf16.mxu0 %v8629_v32  ;;  %7090 = vmatprep.subr.bf16.mxu1 %v8631_v33  ;;  %v8741_v32 = vcombine.high %v998_v26, %v1006_v27  ;;  %v8743_v33 = vcombine.high %v999_v28, %v1007_v29  ;;  %v1102_v19 = vld [vmem:[%s9601_s22 + $0x1ad0] sm:$0xff] }
 0x218   : > { %6927 = vmatpush1.bf16.msra.mxu0 %v8628_v40  ;;  %7091 = vmatpush1.bf16.msra.mxu1 %v8630_v41  ;;  %v8740_v40 = vcombine.low %v998_v26, %v1006_v27  ;;  %v8742_v41 = vcombine.low %v999_v28, %v1007_v29  ;;  %v1268_v26 = vld [vmem:[%s10153_s27] sm:$0xff] }
 0x219   : > { %6928 = vmatprep.subr.bf16.mxu0 %v8645_v42  ;;  %7092 = vmatprep.subr.bf16.mxu1 %v8647_v43  ;;  %v8757_v42 = vcombine.high %v1014_v34, %v1022_v35  ;;  %v8759_v43 = vcombine.high %v1015_v37, %v1023_v38 }
 0x21c   : > { %6929 = vmatpush1.bf16.msra.mxu0 %v8644_v48  ;;  %7093 = vmatpush1.bf16.msra.mxu1 %v8646_v49  ;;  %v8756_v48 = vcombine.low %v1014_v34, %v1022_v35  ;;  %v8758_v49 = vcombine.low %v1015_v37, %v1023_v38  ;;  %v1118_v34 = vld [vmem:[%s9601_s22 + $0x1b50] sm:$0xff]  ;;  %v1111_v37 = vld [vmem:[%s9601_s22 + $0x1b18] sm:$0xff] }
 0x21d   : > { %6930 = vmatprep.subr.bf16.mxu0 %v8661_v50  ;;  %7094 = vmatprep.subr.bf16.mxu1 %v8663_v51  ;;  %v8773_v50 = vcombine.high %v1030_v44, %v1038_v45  ;;  %v8775_v51 = vcombine.high %v1031_v46, %v1039_v47  ;;  %v1119_v38 = vld [vmem:[%s9601_s22 + $0x1b58] sm:$0xff] }
 0x220   : > { %6931 = vmatpush1.bf16.msra.mxu0 %v8660_v59  ;;  %7095 = vmatpush1.bf16.msra.mxu1 %v8662_v60  ;;  %v8772_v59 = vcombine.low %v1030_v44, %v1038_v45  ;;  %v8774_v60 = vcombine.low %v1031_v46, %v1039_v47  ;;  %v8855_v47 = vcombine.high %v1111_v37, %v1119_v38 }
 0x221   : > { %6932 = vmatprep.subr.bf16.mxu0 %v8677_v61  ;;  %7096 = vmatprep.subr.bf16.mxu1 %v8679_v62  ;;  %v8789_v61 = vcombine.high %v1046_v52, %v1054_v54  ;;  %v8791_v62 = vcombine.high %v1047_v56, %v1055_v58 }
 0x224   : > { %6933 = vmatpush1.bf16.msra.mxu0 %v8676_v2  ;;  %7097 = vmatpush1.bf16.msra.mxu1 %v8678_v3  ;;  %v1272_v2 = vlaneseq  ;;  %v8788_v3 = vcombine.low %v1046_v52, %v1054_v54  ;;  %v1127_v54 = vld [vmem:[%s9601_s22 + $0x1b98] sm:$0xff] }
 0x225   : > { %6934 = vmatprep.subr.bf16.mxu0 %v8693_v4  ;;  %7098 = vmatprep.subr.bf16.mxu1 %v8695_v5  ;;  %v8790_v4 = vcombine.low %v1047_v56, %v1055_v58  ;;  %v8805_v5 = vcombine.high %v1062_v63, %v1070_v0  ;;  %v1135_v56 = vld [vmem:[%s9601_s22 + $0x1bd8] sm:$0xff] }
 0x228   : > { %6935 = vmatpush1.bf16.msra.mxu0 %v8692_v10  ;;  %7099 = vmatpush1.bf16.msra.mxu1 %v8694_v11  ;;  %v1087_v10 = vld [vmem:[%s9601_s22 + $0x1a58] sm:$0xff]  ;;  %v10146_v11 = vshrl.u32 %v1272_v2, 7 }
 0x229   : > { %6936 = vmatprep.subr.bf16.mxu0 %v8709_v13  ;;  %7100 = vmatprep.subr.bf16.mxu1 %v8711_v14  ;;  %v8804_v13 = vcombine.low %v1062_v63, %v1070_v0  ;;  %v8806_v14 = vcombine.low %v1063_v39, %v1071_v1  ;;  %v8823_v17 = vcombine.high %v1079_v9, %v1087_v10 }
 0x22a   : > { %v1282_v27 = vsub.s32 2, %v10146_v11  ;;  %v1278_v28 = vsub.s32 1, %v10146_v11  ;;  %v8822_v29 = vcombine.low %v1079_v9, %v1087_v10  ;;  %v8854_v1 = vcombine.low %v1111_v37, %v1119_v38 }
 0x22b   : > { %v8870_v10 = vcombine.low %v1127_v54, %v1135_v56 }
 0x22c   : > { %6937 = vmatpush1.bf16.msra.mxu0 %v8708_v20  ;;  %7101 = vmatpush1.bf16.msra.mxu1 %v8710_v21  ;;  %v1274_v20 = vsub.s32 0, %v10146_v11  ;;  %v1095_v21 = vld [vmem:[%s9601_s22 + $0x1a98] sm:$0xff] }
 0x22d   : > { %6938 = vmatprep.subr.bf16.mxu0 %v8725_v23  ;;  %7102 = vmatprep.subr.bf16.mxu1 %v8727_v24  ;;  %v1103_v23 = vld [vmem:[%s9601_s22 + $0x1ad8] sm:$0xff]  ;;  %v8820_v24 = vcombine.low %v1078_v7, %v1086_v8 }
 0x22e   : > { %v1275_v35 = vrot.slane %v1268_v26, %v1274_v20  ;;  %v8838_v44 = vcombine.low %v1095_v21, %v1103_v23  ;;  %v1143_v7 = vld [vmem:[%s9601_s22 + $0x1c18] sm:$0xff] }
 0x22f   : > { %v1151_v8 = vld [vmem:[%s9601_s22 + $0x1c58] sm:$0xff] }
 0x230   : > { %6939 = vmatpush1.bf16.msra.mxu0 %v8724_v30  ;;  %7103 = vmatpush1.bf16.msra.mxu1 %v8726_v31  ;;  %v1286_v30 = vsub.s32 3, %v10146_v11  ;;  %v8837_v31 = vcombine.high %v1094_v18, %v1102_v19 }
 0x231   : > { %6940 = vmatprep.subr.bf16.mxu0 %v8741_v32  ;;  %7104 = vmatprep.subr.bf16.mxu1 %v8743_v33  ;;  %v8839_v32 = vcombine.high %v1095_v21, %v1103_v23  ;;  %v1110_v33 = vld [vmem:[%s9601_s22 + $0x1b10] sm:$0xff]  ;;  %v8886_v23 = vcombine.low %v1143_v7, %v1151_v8 }
 0x232   : > { %v8853_v45 = vcombine.high %v1110_v33, %v1118_v34 }
 0x234   : > { %6941 = vmatpush1.bf16.msra.mxu0 %v8740_v40  ;;  %7105 = vmatpush1.bf16.msra.mxu1 %v8742_v41  ;;  %v1283_v40 = vrot.slane %v1268_v26, %v1282_v27  ;;  %v1279_v41 = vrot.slane %v1268_v26, %v1278_v28 }
 0x235   : > { %6951 = vmatprep.subr.bf16.mxu0 %v8757_v42  ;;  %7115 = vmatprep.subr.bf16.mxu1 %v8759_v43  ;;  %v8836_v42 = vcombine.low %v1094_v18, %v1102_v19  ;;  %v1287_v43 = vrot.slane %v1268_v26, %v1286_v30  ;;  %v1159_v18 = vld [vmem:[%s9601_s22 + $0x1c98] sm:$0xff] }
 0x236   : > { %v1167_v19 = vld [vmem:[%s9601_s22 + $0x1cd8] sm:$0xff] }
 0x237   : > { %6943 = vmatmul.mubr.bf16.vlgmr.msra.gmra.mrb[4].mxu0 %v9843_v36  ;;  %7107 = vmatmul.mubr.bf16.vlgmr.msra.gmra.mrb[4].mxu1 %v9843_v36  ;;  %v8903_v26 = vcombine.high %v1159_v18, %v1167_v19 }
 0x238   : > { %6952 = vmatpush1.bf16.msra.mxu0 %v8756_v48  ;;  %7116 = vmatpush1.bf16.msra.mxu1 %v8758_v49  ;;  %v1126_v48 = vld [vmem:[%s9601_s22 + $0x1b90] sm:$0xff] }
 0x239   : > { %6953 = vmatprep.subr.bf16.mxu0 %v8773_v50  ;;  %7117 = vmatprep.subr.bf16.mxu1 %v8775_v51  ;;  %v1134_v49 = vld [vmem:[%s9601_s22 + $0x1bd0] sm:$0xff] }
 0x23a   : > { %6983 = vmatprep.mubr.bf16.mxu0 %v9853_v25  ;;  %7147 = vmatprep.mubr.bf16.mxu1 %v9853_v25  ;;  %v8869_v2 = vcombine.high %v1126_v48, %v1134_v49  ;;  %v8868_v9 = vcombine.low %v1126_v48, %v1134_v49 }
 0x23c   : > { %6954 = vmatpush1.bf16.msra.mxu0 %v8772_v59  ;;  %7118 = vmatpush1.bf16.msra.mxu1 %v8774_v60 }
 0x23d   : > { %6955 = vmatprep.subr.bf16.mxu0 %v8789_v61  ;;  %7119 = vmatprep.subr.bf16.mxu1 %v8791_v62  ;;  %v8852_v62 = vcombine.low %v1110_v33, %v1118_v34  ;;  %v1175_v33 = vld [vmem:[%s9601_s22 + $0x1d18] sm:$0xff] }
 0x23e   : > { %v1183_v34 = vld [vmem:[%s9601_s22 + $0x1d58] sm:$0xff] }
 0x23f   : > { %v8918_v49 = vcombine.low %v1175_v33, %v1183_v34 }
 0x240   : > { %6956 = vmatpush1.bf16.msra.mxu0 %v8788_v3  ;;  %7120 = vmatpush1.bf16.msra.mxu1 %v8790_v4  ;;  %v8871_v4 = vcombine.high %v1127_v54, %v1135_v56  ;;  %v1214_v54 = vld [vmem:[%s9601_s22 + $0x1e50] sm:$0xff]  ;;  %v1207_v56 = vld [vmem:[%s9601_s22 + $0x1e18] sm:$0xff] }
 0x241   : > { %6957 = vmatprep.subr.bf16.mxu0 %v8805_v5  ;;  %7121 = vmatprep.subr.bf16.mxu1 %v8807_v6  ;;  %v1142_v5 = vld [vmem:[%s9601_s22 + $0x1c10] sm:$0xff] }
 0x242   : > { %v1150_v6 = vld [vmem:[%s9601_s22 + $0x1c50] sm:$0xff] }
 0x243   : > { %v8884_v21 = vcombine.low %v1142_v5, %v1150_v6 }
 0x244   : > { %6958 = vmatpush1.bf16.msra.mxu0 %v8804_v13  ;;  %7122 = vmatpush1.bf16.msra.mxu1 %v8806_v14  ;;  %v8885_v13 = vcombine.high %v1142_v5, %v1150_v6  ;;  %v8887_v14 = vcombine.high %v1143_v7, %v1151_v8  ;;  %v1238_v6 = vld [vmem:[%s9601_s22 + $0x1f10] sm:$0xff]  ;;  %v1239_v8 = vld [vmem:[%s9601_s22 + $0x1f18] sm:$0xff] }
 0x245   : > { %6959 = vmatprep.subr.bf16.mxu0 %v8821_v16  ;;  %7123 = vmatprep.subr.bf16.mxu1 %v8823_v17  ;;  %v1158_v16 = vld [vmem:[%s9601_s22 + $0x1c90] sm:$0xff] }
 0x246   : > { %v1166_v17 = vld [vmem:[%s9601_s22 + $0x1cd0] sm:$0xff] }
 0x247   : > { %v8900_v37 = vcombine.low %v1158_v16, %v1166_v17  ;;  %v1246_v7 = vld [vmem:[%s9601_s22 + $0x1f50] sm:$0xff] }
 0x248   : > { %6960 = vmatpush1.bf16.msra.mxu0 %v8820_v24  ;;  %7124 = vmatpush1.bf16.msra.mxu1 %v8822_v29  ;;  %v8901_v24 = vcombine.high %v1158_v16, %v1166_v17  ;;  %v1174_v29 = vld [vmem:[%s9601_s22 + $0x1d10] sm:$0xff] }
 0x249   : > { %6961 = vmatprep.subr.bf16.mxu0 %v8837_v31  ;;  %7125 = vmatprep.subr.bf16.mxu1 %v8839_v32  ;;  %v1182_v31 = vld [vmem:[%s9601_s22 + $0x1d50] sm:$0xff] }
 0x24a   : > { %v6657_v46 = vpop.f32.mrb[0].mxu0  ;;  %v6821_v51 = vpop.f32.mrb[0].mxu1  ;;  %v8916_v48 = vcombine.low %v1174_v29, %v1182_v31  ;;  %v1254_v17 = vld [vmem:[%s9601_s22 + $0x1f90] sm:$0xff] }
 0x24b   : > { %v9016_v50 = vadd.f32 %v6657_v46, %v1275_v35  ;;  %v6659_v52 = vpop.f32.mrb[1].mxu0  ;;  %v9018_v58 = vadd.f32 %v6821_v51, %v1283_v40  ;;  %v6823_v60 = vpop.f32.mrb[1].mxu1  ;;  %v8902_v40 = vcombine.low %v1159_v18, %v1167_v19  ;;  %v1191_v46 = vld [vmem:[%s9601_s22 + $0x1d98] sm:$0xff]  ;;  %v1262_v18 = vld [vmem:[%s9601_s22 + $0x1fd0] sm:$0xff] }
 0x24c   : > { %v9017_v59 = vadd.f32 %v6659_v52, %v1279_v41  ;;  %v6661_v61 = vpop.f32.mrb[2].mxu0  ;;  %6962 = vmatpush1.bf16.msra.mxu0 %v8836_v42  ;;  %v9019_v63 = vadd.f32 %v6823_v60, %v1287_v43  ;;  %v6825_v0 = vpop.f32.mrb[2].mxu1  ;;  %7126 = vmatpush1.bf16.msra.mxu1 %v8838_v44  ;;  %v8917_v41 = vcombine.high %v1174_v29, %v1182_v31  ;;  %v1190_v44 = vld [vmem:[%s9601_s22 + $0x1d90] sm:$0xff]  ;;  %v1255_v19 = vld [vmem:[%s9601_s22 + $0x1f98] sm:$0xff]  ;;  %v248_v31 = vld [vmem:[%s9601_s22 + $0x20] sm:$0xff] }
 0x24d   : > { %9201 = vtanh.f32 %v9016_v50  ;;  %v6662_v39 = vpop.f32.mrb[3].mxu0  ;;  %6963 = vmatprep.subr.bf16.mxu0 %v8853_v45  ;;  %v6826_v3 = vpop.f32.mrb[3].mxu1  ;;  %7127 = vmatprep.subr.bf16.mxu1 %v8855_v47  ;;  %v8919_v43 = vcombine.high %v1175_v33, %v1183_v34  ;;  %v1198_v45 = vld [vmem:[%s9601_s22 + $0x1dd0] sm:$0xff]  ;;  %v1199_v47 = vld [vmem:[%s9601_s22 + $0x1dd8] sm:$0xff]  ;;  %v249_v33 = vld [vmem:[%s9601_s22 + $0x28] sm:$0xff] }
 0x24e   : > { %9203 = vtanh.f32 %v9018_v58  ;;  %v8933_v50 = vcombine.high %v1190_v44, %v1198_v45  ;;  %v8935_v51 = vcombine.high %v1191_v46, %v1199_v47  ;;  %v1206_v52 = vld [vmem:[%s9601_s22 + $0x1e10] sm:$0xff]  ;;  %v1215_v58 = vld [vmem:[%s9601_s22 + $0x1e58] sm:$0xff]  ;;  %v8934_v60 = vcombine.low %v1191_v46, %v1199_v47  ;;  %v257_v34 = vld [vmem:[%s9601_s22 + $0x68] sm:$0xff] }
 0x24f   : > { %9205 = vtanh.f32 %v9017_v59  ;;  %v8932_v59 = vcombine.low %v1190_v44, %v1198_v45  ;;  %v8949_v61 = vcombine.high %v1206_v52, %v1214_v54  ;;  %v1230_v0 = vld [vmem:[%s9601_s22 + $0x1ed0] sm:$0xff]  ;;  %v1223_v39 = vld [vmem:[%s9601_s22 + $0x1e98] sm:$0xff]  ;;  %v8950_v3 = vcombine.low %v1207_v56, %v1215_v58  ;;  %v273_v44 = vld [vmem:[%s9601_s22 + $0xe8] sm:$0xff] }
 0x250   : > { %9207 = vtanh.f32 %v9019_v63  ;;  %6964 = vmatpush1.bf16.msra.mxu0 %v8852_v62  ;;  %7128 = vmatpush1.bf16.msra.mxu1 %v8854_v1  ;;  %v8951_v62 = vcombine.high %v1207_v56, %v1215_v58  ;;  %v1222_v63 = vld [vmem:[%s9601_s22 + $0x1e90] sm:$0xff]  ;;  %v1231_v1 = vld [vmem:[%s9601_s22 + $0x1ed8] sm:$0xff]  ;;  %v7994_v46 = vcombine.low %v249_v33, %v257_v34 }
 0x251   : > { %6965 = vmatprep.subr.bf16.mxu0 %v8869_v2  ;;  %7129 = vmatprep.subr.bf16.mxu1 %v8871_v4  ;;  %v8948_v2 = vcombine.low %v1206_v52, %v1214_v54  ;;  %v8965_v4 = vcombine.high %v1222_v63, %v1230_v0  ;;  %v8967_v5 = vcombine.high %v1223_v39, %v1231_v1  ;;  %v289_v52 = vld [vmem:[%s9601_s22 + $0x168] sm:$0xff] }
 0x254   : > { %6966 = vmatpush1.bf16.msra.mxu0 %v8868_v9  ;;  %7130 = vmatpush1.bf16.msra.mxu1 %v8870_v10  ;;  %v1247_v9 = vld [vmem:[%s9601_s22 + $0x1f58] sm:$0xff]  ;;  %v8964_v10 = vcombine.low %v1222_v63, %v1230_v0  ;;  %v305_v63 = vld [vmem:[%s9601_s22 + $0x1e8] sm:$0xff] }
 0x255   : > { %6967 = vmatprep.subr.bf16.mxu0 %v8885_v13  ;;  %7131 = vmatprep.subr.bf16.mxu1 %v8887_v14  ;;  %v8966_v13 = vcombine.low %v1223_v39, %v1231_v1  ;;  %v8981_v14 = vcombine.high %v1238_v6, %v1246_v7  ;;  %v8983_v16 = vcombine.high %v1239_v8, %v1247_v9 }
 0x257   : > { %v9202_v32 = vpop.eup %9201 }
 0x258   : > { %v9204_v35 = vpop.eup %9203  ;;  %7828 = vst [vmem:[%s10188_s10] sm:$0xff] %v9202_v32  ;;  %6968 = vmatpush1.bf16.msra.mxu0 %v8884_v21  ;;  %7132 = vmatpush1.bf16.msra.mxu1 %v8886_v23  ;;  %v1263_v21 = vld [vmem:[%s9601_s22 + $0x1fd8] sm:$0xff]  ;;  %v8980_v23 = vcombine.low %v1238_v6, %v1246_v7  ;;  %v256_v32 = vld [vmem:[%s9601_s22 + $0x60] sm:$0xff]  ;;  %v321_v6 = vld [vmem:[%s9601_s22 + $0x268] sm:$0xff] }
 0x259   : > { %v9206_v38 = vpop.eup %9205  ;;  %7830 = vst [vmem:[%s10188_s10 + $0x10] sm:$0xff] %v9204_v35  ;;  %6969 = vmatprep.subr.bf16.mxu0 %v8901_v24  ;;  %7133 = vmatprep.subr.bf16.mxu1 %v8903_v26  ;;  %v8982_v24 = vcombine.low %v1239_v8, %v1247_v9  ;;  %v8997_v26 = vcombine.high %v1254_v17, %v1262_v18 }
 0x25a   : > { %v9208_v42 = vpop.eup %9207  ;;  %7829 = vst [vmem:[%s10188_s10 + $0x8] sm:$0xff] %v9206_v38  ;;  %v8999_v29 = vcombine.high %v1255_v19, %v1263_v21  ;;  %v8996_v35 = vcombine.low %v1254_v17, %v1262_v18  ;;  %v7993_v38 = vcombine.high %v248_v31, %v256_v32  ;;  %v7992_v45 = vcombine.low %v248_v31, %v256_v32  ;;  %v337_v17 = vld [vmem:[%s9601_s22 + $0x2e8] sm:$0xff] }
 0x25b   : > { %7831 = vst [vmem:[%s10188_s10 + $0x18] sm:$0xff] %v9208_v42  ;;  %v272_v42 = vld [vmem:[%s9601_s22 + $0xe0] sm:$0xff]  ;;  %v353_v31 = vld [vmem:[%s9601_s22 + $0x368] sm:$0xff] }
 0x25c   : > { %6970 = vmatpush1.bf16.msra.mxu0 %v8900_v37  ;;  %7134 = vmatpush1.bf16.msra.mxu1 %v8902_v40  ;;  %v8998_v37 = vcombine.low %v1255_v19, %v1263_v21  ;;  %v7995_v40 = vcombine.high %v249_v33, %v257_v34 }
 0x25d   : > { %6971 = vmatprep.subr.bf16.mxu0 %v8917_v41  ;;  %7135 = vmatprep.subr.bf16.mxu1 %v8919_v43  ;;  %v264_v41 = vld [vmem:[%s9601_s22 + $0xa0] sm:$0xff]  ;;  %v265_v43 = vld [vmem:[%s9601_s22 + $0xa8] sm:$0xff] }
 0x25e   : > { %v8009_v47 = vcombine.high %v264_v41, %v272_v42  ;;  %v8008_v54 = vcombine.low %v264_v41, %v272_v42  ;;  %v8010_v56 = vcombine.low %v265_v43, %v273_v44  ;;  %v369_v41 = vld [vmem:[%s9601_s22 + $0x3e8] sm:$0xff] }
 0x260   : > { %6972 = vmatpush1.bf16.msra.mxu0 %v8916_v48  ;;  %7136 = vmatpush1.bf16.msra.mxu1 %v8918_v49  ;;  %v8011_v48 = vcombine.high %v265_v43, %v273_v44  ;;  %v280_v49 = vld [vmem:[%s9601_s22 + $0x120] sm:$0xff] }
 0x261   : > { %6973 = vmatprep.subr.bf16.mxu0 %v8933_v50  ;;  %7137 = vmatprep.subr.bf16.mxu1 %v8935_v51  ;;  %v288_v50 = vld [vmem:[%s9601_s22 + $0x160] sm:$0xff]  ;;  %v281_v51 = vld [vmem:[%s9601_s22 + $0x128] sm:$0xff] }
 0x262   : > { %v8025_v58 = vcombine.high %v280_v49, %v288_v50  ;;  %v8024_v0 = vcombine.low %v280_v49, %v288_v50  ;;  %v8026_v39 = vcombine.low %v281_v51, %v289_v52  ;;  %v385_v49 = vld [vmem:[%s9601_s22 + $0x468] sm:$0xff] }
 0x264   : > { %6974 = vmatpush1.bf16.msra.mxu0 %v8932_v59  ;;  %7138 = vmatpush1.bf16.msra.mxu1 %v8934_v60  ;;  %v8027_v59 = vcombine.high %v281_v51, %v289_v52  ;;  %v296_v60 = vld [vmem:[%s9601_s22 + $0x1a0] sm:$0xff] }
 0x265   : > { %6975 = vmatprep.subr.bf16.mxu0 %v8949_v61  ;;  %7139 = vmatprep.subr.bf16.mxu1 %v8951_v62  ;;  %v304_v61 = vld [vmem:[%s9601_s22 + $0x1e0] sm:$0xff]  ;;  %v297_v62 = vld [vmem:[%s9601_s22 + $0x1a8] sm:$0xff] }
 0x266   : > { %v8041_v1 = vcombine.high %v296_v60, %v304_v61  ;;  %v8040_v7 = vcombine.low %v296_v60, %v304_v61  ;;  %v8042_v8 = vcombine.low %v297_v62, %v305_v63  ;;  %v401_v60 = vld [vmem:[%s9601_s22 + $0x4e8] sm:$0xff] }
 0x268   : > { %6976 = vmatpush1.bf16.msra.mxu0 %v8948_v2  ;;  %7140 = vmatpush1.bf16.msra.mxu1 %v8950_v3  ;;  %v8043_v2 = vcombine.high %v297_v62, %v305_v63  ;;  %v312_v3 = vld [vmem:[%s9601_s22 + $0x220] sm:$0xff] }
 0x269   : > { %6977 = vmatprep.subr.bf16.mxu0 %v8965_v4  ;;  %7141 = vmatprep.subr.bf16.mxu1 %v8967_v5  ;;  %v320_v4 = vld [vmem:[%s9601_s22 + $0x260] sm:$0xff]  ;;  %v313_v5 = vld [vmem:[%s9601_s22 + $0x228] sm:$0xff] }
 0x26a   : > { %v8057_v9 = vcombine.high %v312_v3, %v320_v4  ;;  %v8056_v18 = vcombine.low %v312_v3, %v320_v4  ;;  %v8058_v19 = vcombine.low %v313_v5, %v321_v6  ;;  %v417_v3 = vld [vmem:[%s9601_s22 + $0x568] sm:$0xff] }
 0x26c   : > { %6978 = vmatpush1.bf16.msra.mxu0 %v8964_v10  ;;  %7142 = vmatpush1.bf16.msra.mxu1 %v8966_v13  ;;  %v8059_v10 = vcombine.high %v313_v5, %v321_v6  ;;  %v328_v13 = vld [vmem:[%s9601_s22 + $0x2a0] sm:$0xff] }
 0x26d   : > { %6979 = vmatprep.subr.bf16.mxu0 %v8981_v14  ;;  %7143 = vmatprep.subr.bf16.mxu1 %v8983_v16  ;;  %v336_v14 = vld [vmem:[%s9601_s22 + $0x2e0] sm:$0xff]  ;;  %v329_v16 = vld [vmem:[%s9601_s22 + $0x2a8] sm:$0xff] }
 0x26e   : > { %v8073_v21 = vcombine.high %v328_v13, %v336_v14  ;;  %v8072_v32 = vcombine.low %v328_v13, %v336_v14  ;;  %v8074_v33 = vcombine.low %v329_v16, %v337_v17  ;;  %v433_v13 = vld [vmem:[%s9601_s22 + $0x5e8] sm:$0xff] }
 0x270   : > { %6980 = vmatpush1.bf16.msra.mxu0 %v8980_v23  ;;  %7144 = vmatpush1.bf16.msra.mxu1 %v8982_v24  ;;  %v8075_v23 = vcombine.high %v329_v16, %v337_v17  ;;  %v344_v24 = vld [vmem:[%s9601_s22 + $0x320] sm:$0xff] }
 0x271   : > { %6981 = vmatprep.subr.bf16.mxu0 %v8997_v26  ;;  %7145 = vmatprep.subr.bf16.mxu1 %v8999_v29  ;;  %v352_v26 = vld [vmem:[%s9601_s22 + $0x360] sm:$0xff]  ;;  %v345_v29 = vld [vmem:[%s9601_s22 + $0x328] sm:$0xff] }
 0x272   : > { %v8089_v34 = vcombine.high %v344_v24, %v352_v26  ;;  %v8088_v42 = vcombine.low %v344_v24, %v352_v26  ;;  %v8090_v43 = vcombine.low %v345_v29, %v353_v31  ;;  %v449_v24 = vld [vmem:[%s9601_s22 + $0x668] sm:$0xff] }
 0x274   : > { %6982 = vmatpush1.bf16.msra.mxu0 %v8996_v35  ;;  %7146 = vmatpush1.bf16.msra.mxu1 %v8998_v37  ;;  %v8091_v35 = vcombine.high %v345_v29, %v353_v31  ;;  %v360_v37 = vld [vmem:[%s9601_s22 + $0x3a0] sm:$0xff] }
 0x275   : > { %7156 = vmatprep.subr.bf16.mxu0 %v7993_v38  ;;  %7320 = vmatprep.subr.bf16.mxu1 %v7995_v40  ;;  %v368_v38 = vld [vmem:[%s9601_s22 + $0x3e0] sm:$0xff]  ;;  %v361_v40 = vld [vmem:[%s9601_s22 + $0x3a8] sm:$0xff] }
 0x276   : > { %v8105_v44 = vcombine.high %v360_v37, %v368_v38  ;;  %v8104_v50 = vcombine.low %v360_v37, %v368_v38  ;;  %v8106_v51 = vcombine.low %v361_v40, %v369_v41  ;;  %v465_v37 = vld [vmem:[%s9601_s22 + $0x6e8] sm:$0xff] }
 0x277   : > { %6984 = vmatmul.mubr.bf16.vlgmr.msra.gmra.mrb[4].mxu0 %v9921_v55  ;;  %7148 = vmatmul.mubr.bf16.vlgmr.msra.gmra.mrb[4].mxu1 %v9921_v55 }
 0x278   : > { %7157 = vmatpush1.bf16.msra.mxu0 %v7992_v45  ;;  %7321 = vmatpush1.bf16.msra.mxu1 %v7994_v46  ;;  %v8107_v45 = vcombine.high %v361_v40, %v369_v41  ;;  %v376_v46 = vld [vmem:[%s9601_s22 + $0x420] sm:$0xff] }
 0x279   : > { %7158 = vmatprep.subr.bf16.mxu0 %v8009_v47  ;;  %7322 = vmatprep.subr.bf16.mxu1 %v8011_v48  ;;  %v384_v47 = vld [vmem:[%s9601_s22 + $0x460] sm:$0xff]  ;;  %v377_v48 = vld [vmem:[%s9601_s22 + $0x428] sm:$0xff] }
 0x27a   : > { %7188 = vmatprep.mubr.bf16.mxu0 %v9641_v57  ;;  %7352 = vmatprep.mubr.bf16.mxu1 %v9641_v57  ;;  %v8121_v52 = vcombine.high %v376_v46, %v384_v47  ;;  %v8120_v61 = vcombine.low %v376_v46, %v384_v47  ;;  %v8122_v62 = vcombine.low %v377_v48, %v385_v49  ;;  %v481_v46 = vld [vmem:[%s9601_s22 + $0x768] sm:$0xff] }
 0x27c   : > { %7159 = vmatpush1.bf16.msra.mxu0 %v8008_v54  ;;  %7323 = vmatpush1.bf16.msra.mxu1 %v8010_v56  ;;  %v8123_v54 = vcombine.high %v377_v48, %v385_v49  ;;  %v392_v56 = vld [vmem:[%s9601_s22 + $0x4a0] sm:$0xff] }
 0x27d   : > { %7160 = vmatprep.subr.bf16.mxu0 %v8025_v58  ;;  %7324 = vmatprep.subr.bf16.mxu1 %v8027_v59  ;;  %v400_v58 = vld [vmem:[%s9601_s22 + $0x4e0] sm:$0xff]  ;;  %v393_v59 = vld [vmem:[%s9601_s22 + $0x4a8] sm:$0xff] }
 0x27e   : > { %v8137_v63 = vcombine.high %v392_v56, %v400_v58  ;;  %v8136_v4 = vcombine.low %v392_v56, %v400_v58  ;;  %v8138_v5 = vcombine.low %v393_v59, %v401_v60  ;;  %v497_v56 = vld [vmem:[%s9601_s22 + $0x7e8] sm:$0xff] }
 0x280   : > { %7161 = vmatpush1.bf16.msra.mxu0 %v8024_v0  ;;  %7325 = vmatpush1.bf16.msra.mxu1 %v8026_v39  ;;  %v8139_v0 = vcombine.high %v393_v59, %v401_v60  ;;  %v408_v39 = vld [vmem:[%s9601_s22 + $0x520] sm:$0xff] }
 0x281   : > { %7162 = vmatprep.subr.bf16.mxu0 %v8041_v1  ;;  %7326 = vmatprep.subr.bf16.mxu1 %v8043_v2  ;;  %v416_v1 = vld [vmem:[%s9601_s22 + $0x560] sm:$0xff]  ;;  %v409_v2 = vld [vmem:[%s9601_s22 + $0x528] sm:$0xff] }
 0x282   : > { %v8153_v6 = vcombine.high %v408_v39, %v416_v1  ;;  %v8152_v14 = vcombine.low %v408_v39, %v416_v1  ;;  %v8154_v16 = vcombine.low %v409_v2, %v417_v3  ;;  %v513_v39 = vld [vmem:[%s9601_s22 + $0x868] sm:$0xff] }
 0x284   : > { %7163 = vmatpush1.bf16.msra.mxu0 %v8040_v7  ;;  %7327 = vmatpush1.bf16.msra.mxu1 %v8042_v8  ;;  %v8155_v7 = vcombine.high %v409_v2, %v417_v3  ;;  %v424_v8 = vld [vmem:[%s9601_s22 + $0x5a0] sm:$0xff] }
 0x285   : > { %7164 = vmatprep.subr.bf16.mxu0 %v8057_v9  ;;  %7328 = vmatprep.subr.bf16.mxu1 %v8059_v10  ;;  %v432_v9 = vld [vmem:[%s9601_s22 + $0x5e0] sm:$0xff]  ;;  %v425_v10 = vld [vmem:[%s9601_s22 + $0x5a8] sm:$0xff] }
 0x286   : > { %v8169_v17 = vcombine.high %v424_v8, %v432_v9  ;;  %v8168_v26 = vcombine.low %v424_v8, %v432_v9  ;;  %v8170_v29 = vcombine.low %v425_v10, %v433_v13  ;;  %v529_v8 = vld [vmem:[%s9601_s22 + $0x8e8] sm:$0xff] }
 0x288   : > { %7165 = vmatpush1.bf16.msra.mxu0 %v8056_v18  ;;  %7329 = vmatpush1.bf16.msra.mxu1 %v8058_v19  ;;  %v8171_v18 = vcombine.high %v425_v10, %v433_v13  ;;  %v440_v19 = vld [vmem:[%s9601_s22 + $0x620] sm:$0xff] }
 0x289   : > { %7166 = vmatprep.subr.bf16.mxu0 %v8073_v21  ;;  %7330 = vmatprep.subr.bf16.mxu1 %v8075_v23  ;;  %v448_v21 = vld [vmem:[%s9601_s22 + $0x660] sm:$0xff]  ;;  %v441_v23 = vld [vmem:[%s9601_s22 + $0x628] sm:$0xff] }
 0x28a   : > { %v8185_v31 = vcombine.high %v440_v19, %v448_v21  ;;  %v8184_v38 = vcombine.low %v440_v19, %v448_v21  ;;  %v8186_v40 = vcombine.low %v441_v23, %v449_v24  ;;  %v545_v19 = vld [vmem:[%s9601_s22 + $0x968] sm:$0xff] }
 0x28c   : > { %7167 = vmatpush1.bf16.msra.mxu0 %v8072_v32  ;;  %7331 = vmatpush1.bf16.msra.mxu1 %v8074_v33  ;;  %v8187_v32 = vcombine.high %v441_v23, %v449_v24  ;;  %v456_v33 = vld [vmem:[%s9601_s22 + $0x6a0] sm:$0xff] }
 0x28d   : > { %7168 = vmatprep.subr.bf16.mxu0 %v8089_v34  ;;  %7332 = vmatprep.subr.bf16.mxu1 %v8091_v35  ;;  %v464_v34 = vld [vmem:[%s9601_s22 + $0x6e0] sm:$0xff]  ;;  %v457_v35 = vld [vmem:[%s9601_s22 + $0x6a8] sm:$0xff] }
 0x28e   : > { %v8201_v41 = vcombine.high %v456_v33, %v464_v34  ;;  %v8200_v47 = vcombine.low %v456_v33, %v464_v34  ;;  %v8202_v48 = vcombine.low %v457_v35, %v465_v37  ;;  %v561_v33 = vld [vmem:[%s9601_s22 + $0x9e8] sm:$0xff] }
 0x290   : > { %7169 = vmatpush1.bf16.msra.mxu0 %v8088_v42  ;;  %7333 = vmatpush1.bf16.msra.mxu1 %v8090_v43  ;;  %v8203_v42 = vcombine.high %v457_v35, %v465_v37  ;;  %v472_v43 = vld [vmem:[%s9601_s22 + $0x720] sm:$0xff] }
 0x291   : > { %7170 = vmatprep.subr.bf16.mxu0 %v8105_v44  ;;  %7334 = vmatprep.subr.bf16.mxu1 %v8107_v45  ;;  %v480_v44 = vld [vmem:[%s9601_s22 + $0x760] sm:$0xff]  ;;  %v473_v45 = vld [vmem:[%s9601_s22 + $0x728] sm:$0xff] }
 0x292   : > { %v8217_v49 = vcombine.high %v472_v43, %v480_v44  ;;  %v8216_v58 = vcombine.low %v472_v43, %v480_v44  ;;  %v8218_v59 = vcombine.low %v473_v45, %v481_v46  ;;  %v577_v43 = vld [vmem:[%s9601_s22 + $0xa68] sm:$0xff] }
 0x294   : > { %7171 = vmatpush1.bf16.msra.mxu0 %v8104_v50  ;;  %7335 = vmatpush1.bf16.msra.mxu1 %v8106_v51  ;;  %v8219_v50 = vcombine.high %v473_v45, %v481_v46  ;;  %v488_v51 = vld [vmem:[%s9601_s22 + $0x7a0] sm:$0xff] }
 0x295   : > { %7172 = vmatprep.subr.bf16.mxu0 %v8121_v52  ;;  %7336 = vmatprep.subr.bf16.mxu1 %v8123_v54  ;;  %v496_v52 = vld [vmem:[%s9601_s22 + $0x7e0] sm:$0xff]  ;;  %v489_v54 = vld [vmem:[%s9601_s22 + $0x7a8] sm:$0xff] }
 0x296   : > { %v8233_v60 = vcombine.high %v488_v51, %v496_v52  ;;  %v8232_v1 = vcombine.low %v488_v51, %v496_v52  ;;  %v8234_v2 = vcombine.low %v489_v54, %v497_v56  ;;  %v593_v51 = vld [vmem:[%s9601_s22 + $0xae8] sm:$0xff] }
 0x298   : > { %7173 = vmatpush1.bf16.msra.mxu0 %v8120_v61  ;;  %7337 = vmatpush1.bf16.msra.mxu1 %v8122_v62  ;;  %v8235_v61 = vcombine.high %v489_v54, %v497_v56  ;;  %v504_v62 = vld [vmem:[%s9601_s22 + $0x820] sm:$0xff] }
 0x299   : > { %7174 = vmatprep.subr.bf16.mxu0 %v8137_v63  ;;  %7338 = vmatprep.subr.bf16.mxu1 %v8139_v0  ;;  %v512_v63 = vld [vmem:[%s9601_s22 + $0x860] sm:$0xff]  ;;  %v505_v0 = vld [vmem:[%s9601_s22 + $0x828] sm:$0xff] }
 0x29a   : > { %v8249_v3 = vcombine.high %v504_v62, %v512_v63  ;;  %v8248_v9 = vcombine.low %v504_v62, %v512_v63  ;;  %v8250_v10 = vcombine.low %v505_v0, %v513_v39  ;;  %v609_v62 = vld [vmem:[%s9601_s22 + $0xb68] sm:$0xff] }
 0x29c   : > { %7175 = vmatpush1.bf16.msra.mxu0 %v8136_v4  ;;  %7339 = vmatpush1.bf16.msra.mxu1 %v8138_v5  ;;  %v8251_v4 = vcombine.high %v505_v0, %v513_v39  ;;  %v520_v5 = vld [vmem:[%s9601_s22 + $0x8a0] sm:$0xff] }
 0x29d   : > { %7176 = vmatprep.subr.bf16.mxu0 %v8153_v6  ;;  %7340 = vmatprep.subr.bf16.mxu1 %v8155_v7  ;;  %v528_v6 = vld [vmem:[%s9601_s22 + $0x8e0] sm:$0xff]  ;;  %v521_v7 = vld [vmem:[%s9601_s22 + $0x8a8] sm:$0xff] }
 0x29e   : > { %v8265_v13 = vcombine.high %v520_v5, %v528_v6  ;;  %v8264_v21 = vcombine.low %v520_v5, %v528_v6  ;;  %v8266_v23 = vcombine.low %v521_v7, %v529_v8  ;;  %v625_v5 = vld [vmem:[%s9601_s22 + $0xbe8] sm:$0xff] }
 0x2a0   : > { %7177 = vmatpush1.bf16.msra.mxu0 %v8152_v14  ;;  %7341 = vmatpush1.bf16.msra.mxu1 %v8154_v16  ;;  %v8267_v14 = vcombine.high %v521_v7, %v529_v8  ;;  %v536_v16 = vld [vmem:[%s9601_s22 + $0x920] sm:$0xff] }
 0x2a1   : > { %7178 = vmatprep.subr.bf16.mxu0 %v8169_v17  ;;  %7342 = vmatprep.subr.bf16.mxu1 %v8171_v18  ;;  %v544_v17 = vld [vmem:[%s9601_s22 + $0x960] sm:$0xff]  ;;  %v537_v18 = vld [vmem:[%s9601_s22 + $0x928] sm:$0xff] }
 0x2a2   : > { %v8281_v24 = vcombine.high %v536_v16, %v544_v17  ;;  %v8280_v34 = vcombine.low %v536_v16, %v544_v17  ;;  %v8282_v35 = vcombine.low %v537_v18, %v545_v19  ;;  %v641_v16 = vld [vmem:[%s9601_s22 + $0xc68] sm:$0xff] }
 0x2a4   : > { %7179 = vmatpush1.bf16.msra.mxu0 %v8168_v26  ;;  %7343 = vmatpush1.bf16.msra.mxu1 %v8170_v29  ;;  %v8283_v26 = vcombine.high %v537_v18, %v545_v19  ;;  %v552_v29 = vld [vmem:[%s9601_s22 + $0x9a0] sm:$0xff] }
 0x2a5   : > { %7180 = vmatprep.subr.bf16.mxu0 %v8185_v31  ;;  %7344 = vmatprep.subr.bf16.mxu1 %v8187_v32  ;;  %v560_v31 = vld [vmem:[%s9601_s22 + $0x9e0] sm:$0xff]  ;;  %v553_v32 = vld [vmem:[%s9601_s22 + $0x9a8] sm:$0xff] }
 0x2a6   : > { %v8297_v37 = vcombine.high %v552_v29, %v560_v31  ;;  %v8296_v44 = vcombine.low %v552_v29, %v560_v31  ;;  %v8298_v45 = vcombine.low %v553_v32, %v561_v33  ;;  %v657_v29 = vld [vmem:[%s9601_s22 + $0xce8] sm:$0xff] }
 0x2a8   : > { %7181 = vmatpush1.bf16.msra.mxu0 %v8184_v38  ;;  %7345 = vmatpush1.bf16.msra.mxu1 %v8186_v40  ;;  %v8299_v38 = vcombine.high %v553_v32, %v561_v33  ;;  %v568_v40 = vld [vmem:[%s9601_s22 + $0xa20] sm:$0xff] }
 0x2a9   : > { %7182 = vmatprep.subr.bf16.mxu0 %v8201_v41  ;;  %7346 = vmatprep.subr.bf16.mxu1 %v8203_v42  ;;  %v576_v41 = vld [vmem:[%s9601_s22 + $0xa60] sm:$0xff]  ;;  %v569_v42 = vld [vmem:[%s9601_s22 + $0xa28] sm:$0xff] }
 0x2aa   : > { %v8313_v46 = vcombine.high %v568_v40, %v576_v41  ;;  %v8312_v52 = vcombine.low %v568_v40, %v576_v41  ;;  %v8314_v54 = vcombine.low %v569_v42, %v577_v43  ;;  %v673_v40 = vld [vmem:[%s9601_s22 + $0xd68] sm:$0xff] }
 0x2ac   : > { %7183 = vmatpush1.bf16.msra.mxu0 %v8200_v47  ;;  %7347 = vmatpush1.bf16.msra.mxu1 %v8202_v48  ;;  %v8315_v47 = vcombine.high %v569_v42, %v577_v43  ;;  %v584_v48 = vld [vmem:[%s9601_s22 + $0xaa0] sm:$0xff] }
 0x2ad   : > { %7184 = vmatprep.subr.bf16.mxu0 %v8217_v49  ;;  %7348 = vmatprep.subr.bf16.mxu1 %v8219_v50  ;;  %v592_v49 = vld [vmem:[%s9601_s22 + $0xae0] sm:$0xff]  ;;  %v585_v50 = vld [vmem:[%s9601_s22 + $0xaa8] sm:$0xff] }
 0x2ae   : > { %v8329_v56 = vcombine.high %v584_v48, %v592_v49  ;;  %v8328_v63 = vcombine.low %v584_v48, %v592_v49  ;;  %v8330_v0 = vcombine.low %v585_v50, %v593_v51  ;;  %v689_v48 = vld [vmem:[%s9601_s22 + $0xde8] sm:$0xff] }
 0x2b0   : > { %7185 = vmatpush1.bf16.msra.mxu0 %v8216_v58  ;;  %7349 = vmatpush1.bf16.msra.mxu1 %v8218_v59  ;;  %v8331_v58 = vcombine.high %v585_v50, %v593_v51  ;;  %v600_v59 = vld [vmem:[%s9601_s22 + $0xb20] sm:$0xff] }
 0x2b1   : > { %7186 = vmatprep.subr.bf16.mxu0 %v8233_v60  ;;  %7350 = vmatprep.subr.bf16.mxu1 %v8235_v61  ;;  %v608_v60 = vld [vmem:[%s9601_s22 + $0xb60] sm:$0xff]  ;;  %v601_v61 = vld [vmem:[%s9601_s22 + $0xb28] sm:$0xff] }
 0x2b2   : > { %v8345_v39 = vcombine.high %v600_v59, %v608_v60  ;;  %v8344_v6 = vcombine.low %v600_v59, %v608_v60  ;;  %v8346_v7 = vcombine.low %v601_v61, %v609_v62  ;;  %v705_v59 = vld [vmem:[%s9601_s22 + $0xe68] sm:$0xff] }
 0x2b4   : > { %7187 = vmatpush1.bf16.msra.mxu0 %v8232_v1  ;;  %7351 = vmatpush1.bf16.msra.mxu1 %v8234_v2  ;;  %v8347_v1 = vcombine.high %v601_v61, %v609_v62  ;;  %v616_v2 = vld [vmem:[%s9601_s22 + $0xba0] sm:$0xff] }
 0x2b5   : > { %7197 = vmatprep.subr.bf16.mxu0 %v8249_v3  ;;  %7361 = vmatprep.subr.bf16.mxu1 %v8251_v4  ;;  %v624_v3 = vld [vmem:[%s9601_s22 + $0xbe0] sm:$0xff]  ;;  %v617_v4 = vld [vmem:[%s9601_s22 + $0xba8] sm:$0xff] }
 0x2b6   : > { %v8361_v8 = vcombine.high %v616_v2, %v624_v3  ;;  %v8360_v17 = vcombine.low %v616_v2, %v624_v3  ;;  %v8362_v18 = vcombine.low %v617_v4, %v625_v5  ;;  %v721_v2 = vld [vmem:[%s9601_s22 + $0xee8] sm:$0xff] }
 0x2b7   : > { %7189 = vmatmul.mubr.bf16.vlgmr.msra.gmra.mrb[8].mxu0 %v9687_v12  ;;  %7353 = vmatmul.mubr.bf16.vlgmr.msra.gmra.mrb[8].mxu1 %v9687_v12 }
 0x2b8   : > { %7198 = vmatpush1.bf16.msra.mxu0 %v8248_v9  ;;  %7362 = vmatpush1.bf16.msra.mxu1 %v8250_v10  ;;  %v8363_v9 = vcombine.high %v617_v4, %v625_v5  ;;  %v632_v10 = vld [vmem:[%s9601_s22 + $0xc20] sm:$0xff] }
 0x2b9   : > { %7199 = vmatprep.subr.bf16.mxu0 %v8265_v13  ;;  %7363 = vmatprep.subr.bf16.mxu1 %v8267_v14  ;;  %v640_v13 = vld [vmem:[%s9601_s22 + $0xc60] sm:$0xff]  ;;  %v633_v14 = vld [vmem:[%s9601_s22 + $0xc28] sm:$0xff] }
 0x2ba   : > { %7229 = vmatprep.mubr.bf16.mxu0 %v9697_v53  ;;  %7393 = vmatprep.mubr.bf16.mxu1 %v9697_v53  ;;  %v8377_v19 = vcombine.high %v632_v10, %v640_v13  ;;  %v8376_v31 = vcombine.low %v632_v10, %v640_v13  ;;  %v8378_v32 = vcombine.low %v633_v14, %v641_v16  ;;  %v737_v10 = vld [vmem:[%s9601_s22 + $0xf68] sm:$0xff] }
 0x2bc   : > { %7200 = vmatpush1.bf16.msra.mxu0 %v8264_v21  ;;  %7364 = vmatpush1.bf16.msra.mxu1 %v8266_v23  ;;  %v8379_v21 = vcombine.high %v633_v14, %v641_v16  ;;  %v648_v23 = vld [vmem:[%s9601_s22 + $0xca0] sm:$0xff] }
 0x2bd   : > { %7201 = vmatprep.subr.bf16.mxu0 %v8281_v24  ;;  %7365 = vmatprep.subr.bf16.mxu1 %v8283_v26  ;;  %v656_v24 = vld [vmem:[%s9601_s22 + $0xce0] sm:$0xff]  ;;  %v649_v26 = vld [vmem:[%s9601_s22 + $0xca8] sm:$0xff] }
 0x2be   : > { %v8393_v33 = vcombine.high %v648_v23, %v656_v24  ;;  %v8392_v41 = vcombine.low %v648_v23, %v656_v24  ;;  %v8394_v42 = vcombine.low %v649_v26, %v657_v29  ;;  %v753_v23 = vld [vmem:[%s9601_s22 + $0xfe8] sm:$0xff] }
 0x2c0   : > { %7202 = vmatpush1.bf16.msra.mxu0 %v8280_v34  ;;  %7366 = vmatpush1.bf16.msra.mxu1 %v8282_v35  ;;  %v8395_v34 = vcombine.high %v649_v26, %v657_v29  ;;  %v664_v35 = vld [vmem:[%s9601_s22 + $0xd20] sm:$0xff] }
 0x2c1   : > { %7203 = vmatprep.subr.bf16.mxu0 %v8297_v37  ;;  %7367 = vmatprep.subr.bf16.mxu1 %v8299_v38  ;;  %v672_v37 = vld [vmem:[%s9601_s22 + $0xd60] sm:$0xff]  ;;  %v665_v38 = vld [vmem:[%s9601_s22 + $0xd28] sm:$0xff] }
 0x2c2   : > { %v8409_v43 = vcombine.high %v664_v35, %v672_v37  ;;  %v8408_v49 = vcombine.low %v664_v35, %v672_v37  ;;  %v8410_v50 = vcombine.low %v665_v38, %v673_v40  ;;  %v769_v35 = vld [vmem:[%s9601_s22 + $0x1068] sm:$0xff] }
 0x2c4   : > { %7204 = vmatpush1.bf16.msra.mxu0 %v8296_v44  ;;  %7368 = vmatpush1.bf16.msra.mxu1 %v8298_v45  ;;  %v8411_v44 = vcombine.high %v665_v38, %v673_v40  ;;  %v680_v45 = vld [vmem:[%s9601_s22 + $0xda0] sm:$0xff] }
 0x2c5   : > { %7205 = vmatprep.subr.bf16.mxu0 %v8313_v46  ;;  %7369 = vmatprep.subr.bf16.mxu1 %v8315_v47  ;;  %v688_v46 = vld [vmem:[%s9601_s22 + $0xde0] sm:$0xff]  ;;  %v681_v47 = vld [vmem:[%s9601_s22 + $0xda8] sm:$0xff] }
 0x2c6   : > { %v8425_v51 = vcombine.high %v680_v45, %v688_v46  ;;  %v8424_v60 = vcombine.low %v680_v45, %v688_v46  ;;  %v8426_v61 = vcombine.low %v681_v47, %v689_v48  ;;  %v785_v45 = vld [vmem:[%s9601_s22 + $0x10e8] sm:$0xff] }
 0x2c8   : > { %7206 = vmatpush1.bf16.msra.mxu0 %v8312_v52  ;;  %7370 = vmatpush1.bf16.msra.mxu1 %v8314_v54  ;;  %v8427_v52 = vcombine.high %v681_v47, %v689_v48  ;;  %v696_v54 = vld [vmem:[%s9601_s22 + $0xe20] sm:$0xff] }
 0x2c9   : > { %7207 = vmatprep.subr.bf16.mxu0 %v8329_v56  ;;  %7371 = vmatprep.subr.bf16.mxu1 %v8331_v58  ;;  %v704_v56 = vld [vmem:[%s9601_s22 + $0xe60] sm:$0xff]  ;;  %v697_v58 = vld [vmem:[%s9601_s22 + $0xe28] sm:$0xff] }
 0x2ca   : > { %v8441_v62 = vcombine.high %v696_v54, %v704_v56  ;;  %v8440_v3 = vcombine.low %v696_v54, %v704_v56  ;;  %v8442_v4 = vcombine.low %v697_v58, %v705_v59  ;;  %v801_v54 = vld [vmem:[%s9601_s22 + $0x1168] sm:$0xff] }
 0x2cc   : > { %7208 = vmatpush1.bf16.msra.mxu0 %v8328_v63  ;;  %7372 = vmatpush1.bf16.msra.mxu1 %v8330_v0  ;;  %v8443_v63 = vcombine.high %v697_v58, %v705_v59  ;;  %v712_v0 = vld [vmem:[%s9601_s22 + $0xea0] sm:$0xff] }
 0x2cd   : > { %7209 = vmatprep.subr.bf16.mxu0 %v8345_v39  ;;  %7373 = vmatprep.subr.bf16.mxu1 %v8347_v1  ;;  %v720_v39 = vld [vmem:[%s9601_s22 + $0xee0] sm:$0xff]  ;;  %v713_v1 = vld [vmem:[%s9601_s22 + $0xea8] sm:$0xff] }
 0x2ce   : > { %v8457_v5 = vcombine.high %v712_v0, %v720_v39  ;;  %v8456_v13 = vcombine.low %v712_v0, %v720_v39  ;;  %v8458_v14 = vcombine.low %v713_v1, %v721_v2  ;;  %v817_v0 = vld [vmem:[%s9601_s22 + $0x11e8] sm:$0xff] }
 0x2d0   : > { %7210 = vmatpush1.bf16.msra.mxu0 %v8344_v6  ;;  %7374 = vmatpush1.bf16.msra.mxu1 %v8346_v7  ;;  %v8459_v6 = vcombine.high %v713_v1, %v721_v2  ;;  %v728_v7 = vld [vmem:[%s9601_s22 + $0xf20] sm:$0xff] }
 0x2d1   : > { %7211 = vmatprep.subr.bf16.mxu0 %v8361_v8  ;;  %7375 = vmatprep.subr.bf16.mxu1 %v8363_v9  ;;  %v736_v8 = vld [vmem:[%s9601_s22 + $0xf60] sm:$0xff]  ;;  %v729_v9 = vld [vmem:[%s9601_s22 + $0xf28] sm:$0xff] }
 0x2d2   : > { %v8473_v16 = vcombine.high %v728_v7, %v736_v8  ;;  %v8472_v24 = vcombine.low %v728_v7, %v736_v8  ;;  %v8474_v26 = vcombine.low %v729_v9, %v737_v10  ;;  %v833_v7 = vld [vmem:[%s9601_s22 + $0x1268] sm:$0xff] }
 0x2d4   : > { %7212 = vmatpush1.bf16.msra.mxu0 %v8360_v17  ;;  %7376 = vmatpush1.bf16.msra.mxu1 %v8362_v18  ;;  %v8475_v17 = vcombine.high %v729_v9, %v737_v10  ;;  %v744_v18 = vld [vmem:[%s9601_s22 + $0xfa0] sm:$0xff] }
 0x2d5   : > { %7213 = vmatprep.subr.bf16.mxu0 %v8377_v19  ;;  %7377 = vmatprep.subr.bf16.mxu1 %v8379_v21  ;;  %v752_v19 = vld [vmem:[%s9601_s22 + $0xfe0] sm:$0xff]  ;;  %v745_v21 = vld [vmem:[%s9601_s22 + $0xfa8] sm:$0xff] }
 0x2d6   : > { %v8489_v29 = vcombine.high %v744_v18, %v752_v19  ;;  %v8488_v37 = vcombine.low %v744_v18, %v752_v19  ;;  %v8490_v38 = vcombine.low %v745_v21, %v753_v23  ;;  %v849_v18 = vld [vmem:[%s9601_s22 + $0x12e8] sm:$0xff] }
 0x2d8   : > { %7214 = vmatpush1.bf16.msra.mxu0 %v8376_v31  ;;  %7378 = vmatpush1.bf16.msra.mxu1 %v8378_v32  ;;  %v8491_v31 = vcombine.high %v745_v21, %v753_v23  ;;  %v760_v32 = vld [vmem:[%s9601_s22 + $0x1020] sm:$0xff] }
 0x2d9   : > { %7215 = vmatprep.subr.bf16.mxu0 %v8393_v33  ;;  %7379 = vmatprep.subr.bf16.mxu1 %v8395_v34  ;;  %v768_v33 = vld [vmem:[%s9601_s22 + $0x1060] sm:$0xff]  ;;  %v761_v34 = vld [vmem:[%s9601_s22 + $0x1028] sm:$0xff] }
 0x2da   : > { %v8505_v40 = vcombine.high %v760_v32, %v768_v33  ;;  %v8504_v46 = vcombine.low %v760_v32, %v768_v33  ;;  %v8506_v47 = vcombine.low %v761_v34, %v769_v35  ;;  %v865_v32 = vld [vmem:[%s9601_s22 + $0x1368] sm:$0xff] }
 0x2dc   : > { %7216 = vmatpush1.bf16.msra.mxu0 %v8392_v41  ;;  %7380 = vmatpush1.bf16.msra.mxu1 %v8394_v42  ;;  %v8507_v41 = vcombine.high %v761_v34, %v769_v35  ;;  %v776_v42 = vld [vmem:[%s9601_s22 + $0x10a0] sm:$0xff] }
 0x2dd   : > { %7217 = vmatprep.subr.bf16.mxu0 %v8409_v43  ;;  %7381 = vmatprep.subr.bf16.mxu1 %v8411_v44  ;;  %v784_v43 = vld [vmem:[%s9601_s22 + $0x10e0] sm:$0xff]  ;;  %v777_v44 = vld [vmem:[%s9601_s22 + $0x10a8] sm:$0xff] }
 0x2de   : > { %v8521_v48 = vcombine.high %v776_v42, %v784_v43  ;;  %v8520_v56 = vcombine.low %v776_v42, %v784_v43  ;;  %v8522_v58 = vcombine.low %v777_v44, %v785_v45  ;;  %v881_v42 = vld [vmem:[%s9601_s22 + $0x13e8] sm:$0xff] }
 0x2e0   : > { %7218 = vmatpush1.bf16.msra.mxu0 %v8408_v49  ;;  %7382 = vmatpush1.bf16.msra.mxu1 %v8410_v50  ;;  %v8523_v49 = vcombine.high %v777_v44, %v785_v45  ;;  %v792_v50 = vld [vmem:[%s9601_s22 + $0x1120] sm:$0xff] }
 0x2e1   : > { %7219 = vmatprep.subr.bf16.mxu0 %v8425_v51  ;;  %7383 = vmatprep.subr.bf16.mxu1 %v8427_v52  ;;  %v800_v51 = vld [vmem:[%s9601_s22 + $0x1160] sm:$0xff]  ;;  %v793_v52 = vld [vmem:[%s9601_s22 + $0x1128] sm:$0xff] }
 0x2e2   : > { %v8537_v59 = vcombine.high %v792_v50, %v800_v51  ;;  %v8536_v39 = vcombine.low %v792_v50, %v800_v51  ;;  %v8538_v1 = vcombine.low %v793_v52, %v801_v54  ;;  %v897_v50 = vld [vmem:[%s9601_s22 + $0x1468] sm:$0xff] }
 0x2e4   : > { %7220 = vmatpush1.bf16.msra.mxu0 %v8424_v60  ;;  %7384 = vmatpush1.bf16.msra.mxu1 %v8426_v61  ;;  %v8539_v60 = vcombine.high %v793_v52, %v801_v54  ;;  %v808_v61 = vld [vmem:[%s9601_s22 + $0x11a0] sm:$0xff] }
 0x2e5   : > { %7221 = vmatprep.subr.bf16.mxu0 %v8441_v62  ;;  %7385 = vmatprep.subr.bf16.mxu1 %v8443_v63  ;;  %v816_v62 = vld [vmem:[%s9601_s22 + $0x11e0] sm:$0xff]  ;;  %v809_v63 = vld [vmem:[%s9601_s22 + $0x11a8] sm:$0xff] }
 0x2e6   : > { %v8553_v2 = vcombine.high %v808_v61, %v816_v62  ;;  %v8552_v8 = vcombine.low %v808_v61, %v816_v62  ;;  %v8554_v9 = vcombine.low %v809_v63, %v817_v0  ;;  %v913_v61 = vld [vmem:[%s9601_s22 + $0x14e8] sm:$0xff] }
 0x2e8   : > { %7222 = vmatpush1.bf16.msra.mxu0 %v8440_v3  ;;  %7386 = vmatpush1.bf16.msra.mxu1 %v8442_v4  ;;  %v8555_v3 = vcombine.high %v809_v63, %v817_v0  ;;  %v824_v4 = vld [vmem:[%s9601_s22 + $0x1220] sm:$0xff] }
 0x2e9   : > { %7223 = vmatprep.subr.bf16.mxu0 %v8457_v5  ;;  %7387 = vmatprep.subr.bf16.mxu1 %v8459_v6  ;;  %v832_v5 = vld [vmem:[%s9601_s22 + $0x1260] sm:$0xff]  ;;  %v825_v6 = vld [vmem:[%s9601_s22 + $0x1228] sm:$0xff] }
 0x2ea   : > { %v8569_v10 = vcombine.high %v824_v4, %v832_v5  ;;  %v8568_v19 = vcombine.low %v824_v4, %v832_v5  ;;  %v8570_v21 = vcombine.low %v825_v6, %v833_v7  ;;  %v929_v4 = vld [vmem:[%s9601_s22 + $0x1568] sm:$0xff] }
 0x2ec   : > { %7224 = vmatpush1.bf16.msra.mxu0 %v8456_v13  ;;  %7388 = vmatpush1.bf16.msra.mxu1 %v8458_v14  ;;  %v8571_v13 = vcombine.high %v825_v6, %v833_v7  ;;  %v840_v14 = vld [vmem:[%s9601_s22 + $0x12a0] sm:$0xff] }
 0x2ed   : > { %7225 = vmatprep.subr.bf16.mxu0 %v8473_v16  ;;  %7389 = vmatprep.subr.bf16.mxu1 %v8475_v17  ;;  %v848_v16 = vld [vmem:[%s9601_s22 + $0x12e0] sm:$0xff]  ;;  %v841_v17 = vld [vmem:[%s9601_s22 + $0x12a8] sm:$0xff] }
 0x2ee   : > { %v8585_v23 = vcombine.high %v840_v14, %v848_v16  ;;  %v8584_v33 = vcombine.low %v840_v14, %v848_v16  ;;  %v8586_v34 = vcombine.low %v841_v17, %v849_v18  ;;  %v945_v14 = vld [vmem:[%s9601_s22 + $0x15e8] sm:$0xff] }
 0x2f0   : > { %7226 = vmatpush1.bf16.msra.mxu0 %v8472_v24  ;;  %7390 = vmatpush1.bf16.msra.mxu1 %v8474_v26  ;;  %v8587_v24 = vcombine.high %v841_v17, %v849_v18  ;;  %v856_v26 = vld [vmem:[%s9601_s22 + $0x1320] sm:$0xff] }
 0x2f1   : > { %7227 = vmatprep.subr.bf16.mxu0 %v8489_v29  ;;  %7391 = vmatprep.subr.bf16.mxu1 %v8491_v31  ;;  %v864_v29 = vld [vmem:[%s9601_s22 + $0x1360] sm:$0xff]  ;;  %v857_v31 = vld [vmem:[%s9601_s22 + $0x1328] sm:$0xff] }
 0x2f2   : > { %v8601_v35 = vcombine.high %v856_v26, %v864_v29  ;;  %v8600_v43 = vcombine.low %v856_v26, %v864_v29  ;;  %v8602_v44 = vcombine.low %v857_v31, %v865_v32  ;;  %v961_v26 = vld [vmem:[%s9601_s22 + $0x1668] sm:$0xff] }
 0x2f4   : > { %7228 = vmatpush1.bf16.msra.mxu0 %v8488_v37  ;;  %7392 = vmatpush1.bf16.msra.mxu1 %v8490_v38  ;;  %v8603_v37 = vcombine.high %v857_v31, %v865_v32  ;;  %v872_v38 = vld [vmem:[%s9601_s22 + $0x13a0] sm:$0xff] }
 0x2f5   : > { %7238 = vmatprep.subr.bf16.mxu0 %v8505_v40  ;;  %7402 = vmatprep.subr.bf16.mxu1 %v8507_v41  ;;  %v880_v40 = vld [vmem:[%s9601_s22 + $0x13e0] sm:$0xff]  ;;  %v873_v41 = vld [vmem:[%s9601_s22 + $0x13a8] sm:$0xff] }
 0x2f6   : > { %v8617_v45 = vcombine.high %v872_v38, %v880_v40  ;;  %v8616_v51 = vcombine.low %v872_v38, %v880_v40  ;;  %v8618_v52 = vcombine.low %v873_v41, %v881_v42  ;;  %v977_v38 = vld [vmem:[%s9601_s22 + $0x16e8] sm:$0xff] }
 0x2f7   : > { %7230 = vmatmul.mubr.bf16.vlgmr.msra.gmra.mrb[8].mxu0 %v9765_v22  ;;  %7394 = vmatmul.mubr.bf16.vlgmr.msra.gmra.mrb[8].mxu1 %v9765_v22 }
 0x2f8   : > { %7239 = vmatpush1.bf16.msra.mxu0 %v8504_v46  ;;  %7403 = vmatpush1.bf16.msra.mxu1 %v8506_v47  ;;  %v8619_v46 = vcombine.high %v873_v41, %v881_v42  ;;  %v888_v47 = vld [vmem:[%s9601_s22 + $0x1420] sm:$0xff] }
 0x2f9   : > { %7240 = vmatprep.subr.bf16.mxu0 %v8521_v48  ;;  %7404 = vmatprep.subr.bf16.mxu1 %v8523_v49  ;;  %v896_v48 = vld [vmem:[%s9601_s22 + $0x1460] sm:$0xff]  ;;  %v889_v49 = vld [vmem:[%s9601_s22 + $0x1428] sm:$0xff] }
 0x2fa   : > { %7270 = vmatprep.mubr.bf16.mxu0 %v9775_v15  ;;  %7434 = vmatprep.mubr.bf16.mxu1 %v9775_v15  ;;  %v8633_v54 = vcombine.high %v888_v47, %v896_v48  ;;  %v8632_v62 = vcombine.low %v888_v47, %v896_v48  ;;  %v8634_v63 = vcombine.low %v889_v49, %v897_v50  ;;  %v993_v47 = vld [vmem:[%s9601_s22 + $0x1768] sm:$0xff] }
 0x2fc   : > { %7241 = vmatpush1.bf16.msra.mxu0 %v8520_v56  ;;  %7405 = vmatpush1.bf16.msra.mxu1 %v8522_v58  ;;  %v8635_v56 = vcombine.high %v889_v49, %v897_v50  ;;  %v904_v58 = vld [vmem:[%s9601_s22 + $0x14a0] sm:$0xff] }
 0x2fd   : > { %7242 = vmatprep.subr.bf16.mxu0 %v8537_v59  ;;  %7406 = vmatprep.subr.bf16.mxu1 %v8539_v60  ;;  %v912_v59 = vld [vmem:[%s9601_s22 + $0x14e0] sm:$0xff]  ;;  %v905_v60 = vld [vmem:[%s9601_s22 + $0x14a8] sm:$0xff] }
 0x2fe   : > { %v8649_v0 = vcombine.high %v904_v58, %v912_v59  ;;  %v8648_v5 = vcombine.low %v904_v58, %v912_v59  ;;  %v8650_v6 = vcombine.low %v905_v60, %v913_v61  ;;  %v1009_v58 = vld [vmem:[%s9601_s22 + $0x17e8] sm:$0xff] }
 0x300   : > { %7243 = vmatpush1.bf16.msra.mxu0 %v8536_v39  ;;  %7407 = vmatpush1.bf16.msra.mxu1 %v8538_v1  ;;  %v8651_v39 = vcombine.high %v905_v60, %v913_v61  ;;  %v920_v1 = vld [vmem:[%s9601_s22 + $0x1520] sm:$0xff] }
 0x301   : > { %7244 = vmatprep.subr.bf16.mxu0 %v8553_v2  ;;  %7408 = vmatprep.subr.bf16.mxu1 %v8555_v3  ;;  %v928_v2 = vld [vmem:[%s9601_s22 + $0x1560] sm:$0xff]  ;;  %v921_v3 = vld [vmem:[%s9601_s22 + $0x1528] sm:$0xff] }
 0x302   : > { %v8665_v7 = vcombine.high %v920_v1, %v928_v2  ;;  %v8664_v16 = vcombine.low %v920_v1, %v928_v2  ;;  %v8666_v17 = vcombine.low %v921_v3, %v929_v4  ;;  %v1025_v1 = vld [vmem:[%s9601_s22 + $0x1868] sm:$0xff] }
 0x304   : > { %7245 = vmatpush1.bf16.msra.mxu0 %v8552_v8  ;;  %7409 = vmatpush1.bf16.msra.mxu1 %v8554_v9  ;;  %v8667_v8 = vcombine.high %v921_v3, %v929_v4  ;;  %v936_v9 = vld [vmem:[%s9601_s22 + $0x15a0] sm:$0xff] }
 0x305   : > { %7246 = vmatprep.subr.bf16.mxu0 %v8569_v10  ;;  %7410 = vmatprep.subr.bf16.mxu1 %v8571_v13  ;;  %v944_v10 = vld [vmem:[%s9601_s22 + $0x15e0] sm:$0xff]  ;;  %v937_v13 = vld [vmem:[%s9601_s22 + $0x15a8] sm:$0xff] }
 0x306   : > { %v8681_v18 = vcombine.high %v936_v9, %v944_v10  ;;  %v8680_v29 = vcombine.low %v936_v9, %v944_v10  ;;  %v8682_v31 = vcombine.low %v937_v13, %v945_v14  ;;  %v1041_v9 = vld [vmem:[%s9601_s22 + $0x18e8] sm:$0xff] }
 0x308   : > { %7247 = vmatpush1.bf16.msra.mxu0 %v8568_v19  ;;  %7411 = vmatpush1.bf16.msra.mxu1 %v8570_v21  ;;  %v8683_v19 = vcombine.high %v937_v13, %v945_v14  ;;  %v952_v21 = vld [vmem:[%s9601_s22 + $0x1620] sm:$0xff] }
 0x309   : > { %7248 = vmatprep.subr.bf16.mxu0 %v8585_v23  ;;  %7412 = vmatprep.subr.bf16.mxu1 %v8587_v24  ;;  %v960_v23 = vld [vmem:[%s9601_s22 + $0x1660] sm:$0xff]  ;;  %v953_v24 = vld [vmem:[%s9601_s22 + $0x1628] sm:$0xff] }
 0x30a   : > { %v8697_v32 = vcombine.high %v952_v21, %v960_v23  ;;  %v8696_v40 = vcombine.low %v952_v21, %v960_v23  ;;  %v8698_v41 = vcombine.low %v953_v24, %v961_v26  ;;  %v1057_v21 = vld [vmem:[%s9601_s22 + $0x1968] sm:$0xff] }
 0x30c   : > { %7249 = vmatpush1.bf16.msra.mxu0 %v8584_v33  ;;  %7413 = vmatpush1.bf16.msra.mxu1 %v8586_v34  ;;  %v8699_v33 = vcombine.high %v953_v24, %v961_v26  ;;  %v968_v34 = vld [vmem:[%s9601_s22 + $0x16a0] sm:$0xff] }
 0x30d   : > { %7250 = vmatprep.subr.bf16.mxu0 %v8601_v35  ;;  %7414 = vmatprep.subr.bf16.mxu1 %v8603_v37  ;;  %v976_v35 = vld [vmem:[%s9601_s22 + $0x16e0] sm:$0xff]  ;;  %v969_v37 = vld [vmem:[%s9601_s22 + $0x16a8] sm:$0xff] }
 0x30e   : > { %v8713_v42 = vcombine.high %v968_v34, %v976_v35  ;;  %v8712_v48 = vcombine.low %v968_v34, %v976_v35  ;;  %v8714_v49 = vcombine.low %v969_v37, %v977_v38  ;;  %v1073_v34 = vld [vmem:[%s9601_s22 + $0x19e8] sm:$0xff] }
 0x310   : > { %7251 = vmatpush1.bf16.msra.mxu0 %v8600_v43  ;;  %7415 = vmatpush1.bf16.msra.mxu1 %v8602_v44  ;;  %v8715_v43 = vcombine.high %v969_v37, %v977_v38  ;;  %v984_v44 = vld [vmem:[%s9601_s22 + $0x1720] sm:$0xff] }
 0x311   : > { %7252 = vmatprep.subr.bf16.mxu0 %v8617_v45  ;;  %7416 = vmatprep.subr.bf16.mxu1 %v8619_v46  ;;  %v992_v45 = vld [vmem:[%s9601_s22 + $0x1760] sm:$0xff]  ;;  %v985_v46 = vld [vmem:[%s9601_s22 + $0x1728] sm:$0xff] }
 0x312   : > { %v8729_v50 = vcombine.high %v984_v44, %v992_v45  ;;  %v8728_v59 = vcombine.low %v984_v44, %v992_v45  ;;  %v8730_v60 = vcombine.low %v985_v46, %v993_v47  ;;  %v1089_v44 = vld [vmem:[%s9601_s22 + $0x1a68] sm:$0xff] }
 0x314   : > { %7253 = vmatpush1.bf16.msra.mxu0 %v8616_v51  ;;  %7417 = vmatpush1.bf16.msra.mxu1 %v8618_v52  ;;  %v8731_v51 = vcombine.high %v985_v46, %v993_v47  ;;  %v1000_v52 = vld [vmem:[%s9601_s22 + $0x17a0] sm:$0xff] }
 0x315   : > { %7254 = vmatprep.subr.bf16.mxu0 %v8633_v54  ;;  %7418 = vmatprep.subr.bf16.mxu1 %v8635_v56  ;;  %v1008_v54 = vld [vmem:[%s9601_s22 + $0x17e0] sm:$0xff]  ;;  %v1001_v56 = vld [vmem:[%s9601_s22 + $0x17a8] sm:$0xff] }
 0x316   : > { %v8745_v61 = vcombine.high %v1000_v52, %v1008_v54  ;;  %v8744_v2 = vcombine.low %v1000_v52, %v1008_v54  ;;  %v8746_v3 = vcombine.low %v1001_v56, %v1009_v58  ;;  %v1097_v52 = vld [vmem:[%s9601_s22 + $0x1aa8] sm:$0xff] }
 0x317   : > { %v1105_v54 = vld [vmem:[%s9601_s22 + $0x1ae8] sm:$0xff] }
 0x318   : > { %7255 = vmatpush1.bf16.msra.mxu0 %v8632_v62  ;;  %7419 = vmatpush1.bf16.msra.mxu1 %v8634_v63  ;;  %v8747_v62 = vcombine.high %v1001_v56, %v1009_v58  ;;  %v1016_v63 = vld [vmem:[%s9601_s22 + $0x1820] sm:$0xff]  ;;  %v1298_v58 = vsub.s32 6, %v10146_v11 }
 0x319   : > { %7256 = vmatprep.subr.bf16.mxu0 %v8649_v0  ;;  %7420 = vmatprep.subr.bf16.mxu1 %v8651_v39  ;;  %v1024_v0 = vld [vmem:[%s9601_s22 + $0x1860] sm:$0xff]  ;;  %v1017_v39 = vld [vmem:[%s9601_s22 + $0x1828] sm:$0xff] }
 0x31a   : > { %v8761_v4 = vcombine.high %v1016_v63, %v1024_v0  ;;  %v8760_v10 = vcombine.low %v1016_v63, %v1024_v0  ;;  %v8762_v13 = vcombine.low %v1017_v39, %v1025_v1  ;;  %v8843_v63 = vcombine.high %v1097_v52, %v1105_v54  ;;  %v1112_v0 = vld [vmem:[%s9601_s22 + $0x1b20] sm:$0xff] }
 0x31c   : > { %7257 = vmatpush1.bf16.msra.mxu0 %v8648_v5  ;;  %7421 = vmatpush1.bf16.msra.mxu1 %v8650_v6  ;;  %v8763_v5 = vcombine.high %v1017_v39, %v1025_v1  ;;  %v1032_v6 = vld [vmem:[%s9601_s22 + $0x18a0] sm:$0xff] }
 0x31d   : > { %7258 = vmatprep.subr.bf16.mxu0 %v8665_v7  ;;  %7422 = vmatprep.subr.bf16.mxu1 %v8667_v8  ;;  %v1040_v7 = vld [vmem:[%s9601_s22 + $0x18e0] sm:$0xff]  ;;  %v1033_v8 = vld [vmem:[%s9601_s22 + $0x18a8] sm:$0xff] }
 0x31e   : > { %v8777_v14 = vcombine.high %v1032_v6, %v1040_v7  ;;  %v8776_v23 = vcombine.low %v1032_v6, %v1040_v7  ;;  %v8778_v24 = vcombine.low %v1033_v8, %v1041_v9  ;;  %v1120_v39 = vld [vmem:[%s9601_s22 + $0x1b60] sm:$0xff] }
 0x31f   : > { %v9233_v1 = vld [vmem:[%s10153_s27] sm:$0xff] }
 0x320   : > { %7259 = vmatpush1.bf16.msra.mxu0 %v8664_v16  ;;  %7423 = vmatpush1.bf16.msra.mxu1 %v8666_v17  ;;  %v8779_v16 = vcombine.high %v1033_v8, %v1041_v9  ;;  %v1048_v17 = vld [vmem:[%s9601_s22 + $0x1920] sm:$0xff]  ;;  %v8842_v9 = vcombine.low %v1097_v52, %v1105_v54 }
 0x321   : > { %7260 = vmatprep.subr.bf16.mxu0 %v8681_v18  ;;  %7424 = vmatprep.subr.bf16.mxu1 %v8683_v19  ;;  %v1056_v18 = vld [vmem:[%s9601_s22 + $0x1960] sm:$0xff]  ;;  %v1049_v19 = vld [vmem:[%s9601_s22 + $0x1928] sm:$0xff] }
 0x322   : > { %v8793_v26 = vcombine.high %v1048_v17, %v1056_v18  ;;  %v8792_v35 = vcombine.low %v1048_v17, %v1056_v18  ;;  %v8794_v37 = vcombine.low %v1049_v19, %v1057_v21  ;;  %v1136_v17 = vld [vmem:[%s9601_s22 + $0x1be0] sm:$0xff] }
 0x323   : > { %v1160_v52 = vld [vmem:[%s9601_s22 + $0x1ca0] sm:$0xff] }
 0x324   : > { %7261 = vmatpush1.bf16.msra.mxu0 %v8680_v29  ;;  %7425 = vmatpush1.bf16.msra.mxu1 %v8682_v31  ;;  %v8795_v29 = vcombine.high %v1049_v19, %v1057_v21  ;;  %v1064_v31 = vld [vmem:[%s9601_s22 + $0x19a0] sm:$0xff] }
 0x325   : > { %7262 = vmatprep.subr.bf16.mxu0 %v8697_v32  ;;  %7426 = vmatprep.subr.bf16.mxu1 %v8699_v33  ;;  %v1072_v32 = vld [vmem:[%s9601_s22 + $0x19e0] sm:$0xff]  ;;  %v1065_v33 = vld [vmem:[%s9601_s22 + $0x19a8] sm:$0xff] }
 0x326   : > { %v8809_v38 = vcombine.high %v1064_v31, %v1072_v32  ;;  %v8808_v45 = vcombine.low %v1064_v31, %v1072_v32  ;;  %v8810_v46 = vcombine.low %v1065_v33, %v1073_v34  ;;  %v1168_v54 = vld [vmem:[%s9601_s22 + $0x1ce0] sm:$0xff] }
 0x328   : > { %7263 = vmatpush1.bf16.msra.mxu0 %v8696_v40  ;;  %7427 = vmatpush1.bf16.msra.mxu1 %v8698_v41  ;;  %v8811_v40 = vcombine.high %v1065_v33, %v1073_v34  ;;  %v1080_v41 = vld [vmem:[%s9601_s22 + $0x1a20] sm:$0xff]  ;;  %v8856_v33 = vcombine.low %v1112_v0, %v1120_v39 }
 0x329   : > { %7264 = vmatprep.subr.bf16.mxu0 %v8713_v42  ;;  %7428 = vmatprep.subr.bf16.mxu1 %v8715_v43  ;;  %v1088_v42 = vld [vmem:[%s9601_s22 + $0x1a60] sm:$0xff]  ;;  %v1081_v43 = vld [vmem:[%s9601_s22 + $0x1a28] sm:$0xff] }
 0x32a   : > { %v8825_v47 = vcombine.high %v1080_v41, %v1088_v42  ;;  %v8824_v56 = vcombine.low %v1080_v41, %v1088_v42 }
 0x32c   : > { %7265 = vmatpush1.bf16.msra.mxu0 %v8712_v48  ;;  %7429 = vmatpush1.bf16.msra.mxu1 %v8714_v49  ;;  %v8827_v48 = vcombine.high %v1081_v43, %v1089_v44  ;;  %v1096_v49 = vld [vmem:[%s9601_s22 + $0x1aa0] sm:$0xff] }
 0x32d   : > { %7266 = vmatprep.subr.bf16.mxu0 %v8729_v50  ;;  %7430 = vmatprep.subr.bf16.mxu1 %v8731_v51  ;;  %v1104_v50 = vld [vmem:[%s9601_s22 + $0x1ae0] sm:$0xff]  ;;  %v1290_v51 = vsub.s32 4, %v10146_v11 }
 0x32e   : > { %v8840_v7 = vcombine.low %v1096_v49, %v1104_v50 }
 0x330   : > { %7267 = vmatpush1.bf16.msra.mxu0 %v8728_v59  ;;  %7431 = vmatpush1.bf16.msra.mxu1 %v8730_v60  ;;  %v1294_v59 = vsub.s32 5, %v10146_v11  ;;  %v8826_v60 = vcombine.low %v1081_v43, %v1089_v44  ;;  %v1144_v43 = vld [vmem:[%s9601_s22 + $0x1c20] sm:$0xff] }
 0x331   : > { %7268 = vmatprep.subr.bf16.mxu0 %v8745_v61  ;;  %7432 = vmatprep.subr.bf16.mxu1 %v8747_v62  ;;  %v1302_v61 = vsub.s32 7, %v10146_v11  ;;  %v8841_v62 = vcombine.high %v1096_v49, %v1104_v50  ;;  %v1152_v44 = vld [vmem:[%s9601_s22 + $0x1c60] sm:$0xff] }
 0x332   : > { %v1295_v6 = vrot.slane %v9233_v1, %v1294_v59  ;;  %v8889_v49 = vcombine.high %v1144_v43, %v1152_v44 }
 0x333   : > { %v1303_v8 = vrot.slane %v9233_v1, %v1302_v61 }
 0x334   : > { %7269 = vmatpush1.bf16.msra.mxu0 %v8744_v2  ;;  %7433 = vmatpush1.bf16.msra.mxu1 %v8746_v3  ;;  %v1291_v2 = vrot.slane %v9233_v1, %v1290_v51  ;;  %v1113_v3 = vld [vmem:[%s9601_s22 + $0x1b28] sm:$0xff] }
 0x335   : > { %7279 = vmatprep.subr.bf16.mxu0 %v8761_v4  ;;  %7443 = vmatprep.subr.bf16.mxu1 %v8763_v5  ;;  %v1121_v4 = vld [vmem:[%s9601_s22 + $0x1b68] sm:$0xff]  ;;  %v1299_v5 = vrot.slane %v9233_v1, %v1298_v58  ;;  %v1176_v1 = vld [vmem:[%s9601_s22 + $0x1d20] sm:$0xff] }
 0x337   : > { %7271 = vmatmul.mubr.bf16.vlgmr.msra.gmra.mrb[8].mxu0 %v9843_v36  ;;  %7435 = vmatmul.mubr.bf16.vlgmr.msra.gmra.mrb[8].mxu1 %v9843_v36 }
 0x338   : > { %7280 = vmatpush1.bf16.msra.mxu0 %v8760_v10  ;;  %7444 = vmatpush1.bf16.msra.mxu1 %v8762_v13  ;;  %v8857_v10 = vcombine.high %v1112_v0, %v1120_v39  ;;  %v8905_v0 = vcombine.high %v1160_v52, %v1168_v54 }
 0x339   : > { %7281 = vmatprep.subr.bf16.mxu0 %v8777_v14  ;;  %7445 = vmatprep.subr.bf16.mxu1 %v8779_v16  ;;  %v8859_v14 = vcombine.high %v1113_v3, %v1121_v4  ;;  %v1128_v16 = vld [vmem:[%s9601_s22 + $0x1ba0] sm:$0xff] }
 0x33a   : > { %7311 = vmatprep.mubr.bf16.mxu0 %v9853_v25  ;;  %7475 = vmatprep.mubr.bf16.mxu1 %v9853_v25 }
 0x33c   : > { %7282 = vmatpush1.bf16.msra.mxu0 %v8776_v23  ;;  %7446 = vmatpush1.bf16.msra.mxu1 %v8778_v24  ;;  %v1129_v23 = vld [vmem:[%s9601_s22 + $0x1ba8] sm:$0xff] }
 0x33d   : > { %7283 = vmatprep.subr.bf16.mxu0 %v8793_v26  ;;  %7447 = vmatprep.subr.bf16.mxu1 %v8795_v29  ;;  %v1137_v24 = vld [vmem:[%s9601_s22 + $0x1be8] sm:$0xff] }
 0x33e   : > { %v8875_v42 = vcombine.high %v1129_v23, %v1137_v24 }
 0x340   : > { %7284 = vmatpush1.bf16.msra.mxu0 %v8792_v35  ;;  %7448 = vmatpush1.bf16.msra.mxu1 %v8794_v37 }
 0x341   : > { %7285 = vmatprep.subr.bf16.mxu0 %v8809_v38  ;;  %7449 = vmatprep.subr.bf16.mxu1 %v8811_v40  ;;  %v8858_v38 = vcombine.low %v1113_v3, %v1121_v4  ;;  %v8873_v40 = vcombine.high %v1128_v16, %v1136_v17  ;;  %v1177_v4 = vld [vmem:[%s9601_s22 + $0x1d28] sm:$0xff] }
 0x344   : > { %7286 = vmatpush1.bf16.msra.mxu0 %v8808_v45  ;;  %7450 = vmatpush1.bf16.msra.mxu1 %v8810_v46  ;;  %v1145_v45 = vld [vmem:[%s9601_s22 + $0x1c28] sm:$0xff] }
 0x345   : > { %7287 = vmatprep.subr.bf16.mxu0 %v8825_v47  ;;  %7451 = vmatprep.subr.bf16.mxu1 %v8827_v48  ;;  %v1153_v46 = vld [vmem:[%s9601_s22 + $0x1c68] sm:$0xff]  ;;  %v8872_v47 = vcombine.low %v1128_v16, %v1136_v17  ;;  %v8874_v48 = vcombine.low %v1129_v23, %v1137_v24  ;;  %v1192_v16 = vld [vmem:[%s9601_s22 + $0x1da0] sm:$0xff] }
 0x346   : > { %v8891_v50 = vcombine.high %v1145_v45, %v1153_v46  ;;  %v1200_v17 = vld [vmem:[%s9601_s22 + $0x1de0] sm:$0xff] }
 0x347   : > { %v8937_v24 = vcombine.high %v1192_v16, %v1200_v17 }
 0x348   : > { %7288 = vmatpush1.bf16.msra.mxu0 %v8824_v56  ;;  %7452 = vmatpush1.bf16.msra.mxu1 %v8826_v60  ;;  %v1161_v56 = vld [vmem:[%s9601_s22 + $0x1ca8] sm:$0xff] }
 0x349   : > { %7289 = vmatprep.subr.bf16.mxu0 %v8841_v62  ;;  %7453 = vmatprep.subr.bf16.mxu1 %v8843_v63  ;;  %v1169_v60 = vld [vmem:[%s9601_s22 + $0x1ce8] sm:$0xff]  ;;  %v8888_v62 = vcombine.low %v1144_v43, %v1152_v44  ;;  %v8890_v63 = vcombine.low %v1145_v45, %v1153_v46 }
 0x34a   : > { %v6985_v13 = vpop.f32.mrb[4].mxu0  ;;  %v7149_v19 = vpop.f32.mrb[4].mxu1  ;;  %v8907_v39 = vcombine.high %v1161_v56, %v1169_v60  ;;  %v1233_v43 = vld [vmem:[%s9601_s22 + $0x1ee8] sm:$0xff] }
 0x34b   : > { %v9020_v18 = vadd.f32 %v6985_v13, %v1291_v2  ;;  %v6987_v21 = vpop.f32.mrb[5].mxu0  ;;  %v9022_v26 = vadd.f32 %v7149_v19, %v1299_v5  ;;  %v7151_v31 = vpop.f32.mrb[5].mxu1  ;;  %v1184_v2 = vld [vmem:[%s9601_s22 + $0x1d60] sm:$0xff]  ;;  %v1185_v5 = vld [vmem:[%s9601_s22 + $0x1d68] sm:$0xff] }
 0x34c   : > { %v9021_v29 = vadd.f32 %v6987_v21, %v1295_v6  ;;  %v6989_v32 = vpop.f32.mrb[6].mxu0  ;;  %7290 = vmatpush1.bf16.msra.mxu0 %v8840_v7  ;;  %v9023_v34 = vadd.f32 %v7151_v31, %v1303_v8  ;;  %v7153_v35 = vpop.f32.mrb[6].mxu1  ;;  %7454 = vmatpush1.bf16.msra.mxu1 %v8842_v9  ;;  %v8904_v7 = vcombine.low %v1160_v52, %v1168_v54  ;;  %v1201_v19 = vld [vmem:[%s9601_s22 + $0x1de8] sm:$0xff]  ;;  %v1216_v31 = vld [vmem:[%s9601_s22 + $0x1e60] sm:$0xff] }
 0x34d   : > { %9209 = vtanh.f32 %v9020_v18  ;;  %v6990_v37 = vpop.f32.mrb[7].mxu0  ;;  %7291 = vmatprep.subr.bf16.mxu0 %v8857_v10  ;;  %v7154_v41 = vpop.f32.mrb[7].mxu1  ;;  %7455 = vmatprep.subr.bf16.mxu1 %v8859_v14  ;;  %v8906_v9 = vcombine.low %v1161_v56, %v1169_v60  ;;  %v8921_v10 = vcombine.high %v1176_v1, %v1184_v2  ;;  %v8923_v14 = vcombine.high %v1177_v4, %v1185_v5  ;;  %v1193_v18 = vld [vmem:[%s9601_s22 + $0x1da8] sm:$0xff] }
 0x34e   : > { %9211 = vtanh.f32 %v9022_v26  ;;  %v8920_v21 = vcombine.low %v1176_v1, %v1184_v2  ;;  %v8922_v23 = vcombine.low %v1177_v4, %v1185_v5  ;;  %v8939_v26 = vcombine.high %v1193_v18, %v1201_v19  ;;  %v1209_v32 = vld [vmem:[%s9601_s22 + $0x1e28] sm:$0xff]  ;;  %v1232_v41 = vld [vmem:[%s9601_s22 + $0x1ee0] sm:$0xff] }
 0x34f   : > { %9213 = vtanh.f32 %v9021_v29  ;;  %v1208_v29 = vld [vmem:[%s9601_s22 + $0x1e20] sm:$0xff]  ;;  %v8938_v35 = vcombine.low %v1193_v18, %v1201_v19  ;;  %v1249_v52 = vld [vmem:[%s9601_s22 + $0x1f68] sm:$0xff]  ;;  %v274_v18 = vld [vmem:[%s9601_s22 + $0xf0] sm:$0xff] }
 0x350   : > { %9215 = vtanh.f32 %v9023_v34  ;;  %7292 = vmatpush1.bf16.msra.mxu0 %v8856_v33  ;;  %7456 = vmatpush1.bf16.msra.mxu1 %v8858_v38  ;;  %v1217_v33 = vld [vmem:[%s9601_s22 + $0x1e68] sm:$0xff]  ;;  %v8936_v34 = vcombine.low %v1192_v16, %v1200_v17  ;;  %v8953_v37 = vcombine.high %v1208_v29, %v1216_v31  ;;  %v8952_v44 = vcombine.low %v1208_v29, %v1216_v31  ;;  %v266_v17 = vld [vmem:[%s9601_s22 + $0xb0] sm:$0xff]  ;;  %v267_v19 = vld [vmem:[%s9601_s22 + $0xb8] sm:$0xff] }
 0x351   : > { %7293 = vmatprep.subr.bf16.mxu0 %v8873_v40  ;;  %7457 = vmatprep.subr.bf16.mxu1 %v8875_v42  ;;  %v8955_v38 = vcombine.high %v1209_v32, %v1217_v33  ;;  %v1224_v40 = vld [vmem:[%s9601_s22 + $0x1ea0] sm:$0xff]  ;;  %v1225_v42 = vld [vmem:[%s9601_s22 + $0x1ea8] sm:$0xff]  ;;  %v8954_v45 = vcombine.low %v1209_v32, %v1217_v33  ;;  %v282_v31 = vld [vmem:[%s9601_s22 + $0x130] sm:$0xff] }
 0x352   : > { %v8969_v46 = vcombine.high %v1224_v40, %v1232_v41  ;;  %v8968_v54 = vcombine.low %v1224_v40, %v1232_v41  ;;  %v8970_v56 = vcombine.low %v1225_v42, %v1233_v43  ;;  %v1265_v1 = vld [vmem:[%s9601_s22 + $0x1fe8] sm:$0xff]  ;;  %v290_v32 = vld [vmem:[%s9601_s22 + $0x170] sm:$0xff]  ;;  %v283_v33 = vld [vmem:[%s9601_s22 + $0x138] sm:$0xff] }
 0x353   : > { %v298_v41 = vld [vmem:[%s9601_s22 + $0x1b0] sm:$0xff] }
 0x354   : > { %7294 = vmatpush1.bf16.msra.mxu0 %v8872_v47  ;;  %7458 = vmatpush1.bf16.msra.mxu1 %v8874_v48  ;;  %v8971_v47 = vcombine.high %v1225_v42, %v1233_v43  ;;  %v1240_v48 = vld [vmem:[%s9601_s22 + $0x1f20] sm:$0xff]  ;;  %v306_v42 = vld [vmem:[%s9601_s22 + $0x1f0] sm:$0xff]  ;;  %v299_v43 = vld [vmem:[%s9601_s22 + $0x1b8] sm:$0xff] }
 0x355   : > { %7295 = vmatprep.subr.bf16.mxu0 %v8889_v49  ;;  %7459 = vmatprep.subr.bf16.mxu1 %v8891_v50  ;;  %v1248_v49 = vld [vmem:[%s9601_s22 + $0x1f60] sm:$0xff]  ;;  %v1241_v50 = vld [vmem:[%s9601_s22 + $0x1f28] sm:$0xff] }
 0x356   : > { %v8985_v60 = vcombine.high %v1240_v48, %v1248_v49  ;;  %v8984_v2 = vcombine.low %v1240_v48, %v1248_v49  ;;  %v314_v49 = vld [vmem:[%s9601_s22 + $0x230] sm:$0xff] }
 0x357   : > { %v9210_v3 = vpop.eup %9209 }
 0x358   : > { %v9212_v6 = vpop.eup %9211  ;;  %7832 = vst [vmem:[%s10188_s10 + $0x20] sm:$0xff] %v9210_v3  ;;  %7296 = vmatpush1.bf16.msra.mxu0 %v8888_v62  ;;  %7460 = vmatpush1.bf16.msra.mxu1 %v8890_v63  ;;  %v8987_v62 = vcombine.high %v1241_v50, %v1249_v52  ;;  %v1256_v63 = vld [vmem:[%s9601_s22 + $0x1fa0] sm:$0xff]  ;;  %v8986_v3 = vcombine.low %v1241_v50, %v1249_v52  ;;  %v322_v50 = vld [vmem:[%s9601_s22 + $0x270] sm:$0xff]  ;;  %v315_v52 = vld [vmem:[%s9601_s22 + $0x238] sm:$0xff] }
 0x359   : > { %v9214_v8 = vpop.eup %9213  ;;  %7834 = vst [vmem:[%s10188_s10 + $0x30] sm:$0xff] %v9212_v6  ;;  %7297 = vmatprep.subr.bf16.mxu0 %v8905_v0  ;;  %7461 = vmatprep.subr.bf16.mxu1 %v8907_v39  ;;  %v1264_v0 = vld [vmem:[%s9601_s22 + $0x1fe0] sm:$0xff]  ;;  %v1257_v39 = vld [vmem:[%s9601_s22 + $0x1fa8] sm:$0xff]  ;;  %v250_v6 = vld [vmem:[%s9601_s22 + $0x30] sm:$0xff] }
 0x35a   : > { %v9216_v13 = vpop.eup %9215  ;;  %7833 = vst [vmem:[%s10188_s10 + $0x28] sm:$0xff] %v9214_v8  ;;  %v9001_v4 = vcombine.high %v1256_v63, %v1264_v0  ;;  %v9003_v5 = vcombine.high %v1257_v39, %v1265_v1  ;;  %v251_v8 = vld [vmem:[%s9601_s22 + $0x38] sm:$0xff] }
 0x35b   : > { %7835 = vst [vmem:[%s10188_s10 + $0x38] sm:$0xff] %v9216_v13  ;;  %v9002_v13 = vcombine.low %v1257_v39, %v1265_v1  ;;  %v331_v39 = vld [vmem:[%s9601_s22 + $0x2b8] sm:$0xff] }
 0x35c   : > { %7298 = vmatpush1.bf16.msra.mxu0 %v8904_v7  ;;  %7462 = vmatpush1.bf16.msra.mxu1 %v8906_v9  ;;  %v258_v7 = vld [vmem:[%s9601_s22 + $0x70] sm:$0xff]  ;;  %v259_v9 = vld [vmem:[%s9601_s22 + $0x78] sm:$0xff] }
 0x35d   : > { %7299 = vmatprep.subr.bf16.mxu0 %v8921_v10  ;;  %7463 = vmatprep.subr.bf16.mxu1 %v8923_v14  ;;  %v9000_v10 = vcombine.low %v1256_v63, %v1264_v0  ;;  %v7997_v14 = vcombine.high %v250_v6, %v258_v7  ;;  %v7999_v16 = vcombine.high %v251_v8, %v259_v9  ;;  %v330_v63 = vld [vmem:[%s9601_s22 + $0x2b0] sm:$0xff]  ;;  %v339_v1 = vld [vmem:[%s9601_s22 + $0x2f8] sm:$0xff] }
 0x35e   : > { %v338_v0 = vld [vmem:[%s9601_s22 + $0x2f0] sm:$0xff] }
 0x360   : > { %7300 = vmatpush1.bf16.msra.mxu0 %v8920_v21  ;;  %7464 = vmatpush1.bf16.msra.mxu1 %v8922_v23  ;;  %v275_v21 = vld [vmem:[%s9601_s22 + $0xf8] sm:$0xff]  ;;  %v7996_v23 = vcombine.low %v250_v6, %v258_v7  ;;  %v346_v6 = vld [vmem:[%s9601_s22 + $0x330] sm:$0xff] }
 0x361   : > { %7301 = vmatprep.subr.bf16.mxu0 %v8937_v24  ;;  %7465 = vmatprep.subr.bf16.mxu1 %v8939_v26  ;;  %v7998_v24 = vcombine.low %v251_v8, %v259_v9  ;;  %v8013_v26 = vcombine.high %v266_v17, %v274_v18  ;;  %v8015_v29 = vcombine.high %v267_v19, %v275_v21  ;;  %v354_v7 = vld [vmem:[%s9601_s22 + $0x370] sm:$0xff]  ;;  %v347_v8 = vld [vmem:[%s9601_s22 + $0x338] sm:$0xff] }
 0x362   : > { %v355_v9 = vld [vmem:[%s9601_s22 + $0x378] sm:$0xff] }
 0x364   : > { %7302 = vmatpush1.bf16.msra.mxu0 %v8936_v34  ;;  %7466 = vmatpush1.bf16.msra.mxu1 %v8938_v35  ;;  %v291_v34 = vld [vmem:[%s9601_s22 + $0x178] sm:$0xff]  ;;  %v8012_v35 = vcombine.low %v266_v17, %v274_v18  ;;  %v362_v17 = vld [vmem:[%s9601_s22 + $0x3b0] sm:$0xff] }
 0x365   : > { %7303 = vmatprep.subr.bf16.mxu0 %v8953_v37  ;;  %7467 = vmatprep.subr.bf16.mxu1 %v8955_v38  ;;  %v8014_v37 = vcombine.low %v267_v19, %v275_v21  ;;  %v8029_v38 = vcombine.high %v282_v31, %v290_v32  ;;  %v8031_v40 = vcombine.high %v283_v33, %v291_v34  ;;  %v370_v18 = vld [vmem:[%s9601_s22 + $0x3f0] sm:$0xff]  ;;  %v363_v19 = vld [vmem:[%s9601_s22 + $0x3b8] sm:$0xff] }
 0x366   : > { %v371_v21 = vld [vmem:[%s9601_s22 + $0x3f8] sm:$0xff] }
 0x368   : > { %7304 = vmatpush1.bf16.msra.mxu0 %v8952_v44  ;;  %7468 = vmatpush1.bf16.msra.mxu1 %v8954_v45  ;;  %v307_v44 = vld [vmem:[%s9601_s22 + $0x1f8] sm:$0xff]  ;;  %v8028_v45 = vcombine.low %v282_v31, %v290_v32  ;;  %v378_v31 = vld [vmem:[%s9601_s22 + $0x430] sm:$0xff] }
 0x369   : > { %7305 = vmatprep.subr.bf16.mxu0 %v8969_v46  ;;  %7469 = vmatprep.subr.bf16.mxu1 %v8971_v47  ;;  %v8030_v46 = vcombine.low %v283_v33, %v291_v34  ;;  %v8045_v47 = vcombine.high %v298_v41, %v306_v42  ;;  %v8047_v48 = vcombine.high %v299_v43, %v307_v44  ;;  %v386_v32 = vld [vmem:[%s9601_s22 + $0x470] sm:$0xff]  ;;  %v379_v33 = vld [vmem:[%s9601_s22 + $0x438] sm:$0xff] }
 0x36a   : > { %v387_v34 = vld [vmem:[%s9601_s22 + $0x478] sm:$0xff] }
 0x36c   : > { %7306 = vmatpush1.bf16.msra.mxu0 %v8968_v54  ;;  %7470 = vmatpush1.bf16.msra.mxu1 %v8970_v56  ;;  %v323_v54 = vld [vmem:[%s9601_s22 + $0x278] sm:$0xff]  ;;  %v8044_v56 = vcombine.low %v298_v41, %v306_v42  ;;  %v394_v41 = vld [vmem:[%s9601_s22 + $0x4b0] sm:$0xff] }
 0x36d   : > { %7307 = vmatprep.subr.bf16.mxu0 %v8985_v60  ;;  %7471 = vmatprep.subr.bf16.mxu1 %v8987_v62  ;;  %v8061_v60 = vcombine.high %v314_v49, %v322_v50  ;;  %v8063_v62 = vcombine.high %v315_v52, %v323_v54  ;;  %v402_v42 = vld [vmem:[%s9601_s22 + $0x4f0] sm:$0xff] }
 0x370   : > { %7308 = vmatpush1.bf16.msra.mxu0 %v8984_v2  ;;  %7472 = vmatpush1.bf16.msra.mxu1 %v8986_v3  ;;  %v8060_v2 = vcombine.low %v314_v49, %v322_v50  ;;  %v8062_v3 = vcombine.low %v315_v52, %v323_v54  ;;  %v410_v49 = vld [vmem:[%s9601_s22 + $0x530] sm:$0xff]  ;;  %v411_v52 = vld [vmem:[%s9601_s22 + $0x538] sm:$0xff] }
 0x371   : > { %7309 = vmatprep.subr.bf16.mxu0 %v9001_v4  ;;  %7473 = vmatprep.subr.bf16.mxu1 %v9003_v5  ;;  %v8077_v4 = vcombine.high %v330_v63, %v338_v0  ;;  %v8079_v5 = vcombine.high %v331_v39, %v339_v1  ;;  %v418_v50 = vld [vmem:[%s9601_s22 + $0x570] sm:$0xff]  ;;  %v419_v54 = vld [vmem:[%s9601_s22 + $0x578] sm:$0xff] }
 0x374   : > { %7310 = vmatpush1.bf16.msra.mxu0 %v9000_v10  ;;  %7474 = vmatpush1.bf16.msra.mxu1 %v9002_v13  ;;  %v8076_v10 = vcombine.low %v330_v63, %v338_v0  ;;  %v8078_v13 = vcombine.low %v331_v39, %v339_v1  ;;  %v426_v63 = vld [vmem:[%s9601_s22 + $0x5b0] sm:$0xff]  ;;  %v427_v39 = vld [vmem:[%s9601_s22 + $0x5b8] sm:$0xff] }
 0x375   : > { %7484 = vmatprep.subr.bf16.mxu0 %v7997_v14  ;;  %7648 = vmatprep.subr.bf16.mxu1 %v7999_v16  ;;  %v8093_v14 = vcombine.high %v346_v6, %v354_v7  ;;  %v8095_v16 = vcombine.high %v347_v8, %v355_v9  ;;  %v434_v0 = vld [vmem:[%s9601_s22 + $0x5f0] sm:$0xff]  ;;  %v435_v1 = vld [vmem:[%s9601_s22 + $0x5f8] sm:$0xff] }
 0x377   : > { %7312 = vmatmul.mubr.bf16.vlgmr.msra.gmra.mrb[8].mxu0 %v9921_v55  ;;  %7476 = vmatmul.mubr.bf16.vlgmr.msra.gmra.mrb[8].mxu1 %v9921_v55 }
 0x378   : > { %7485 = vmatpush1.bf16.msra.mxu0 %v7996_v23  ;;  %7649 = vmatpush1.bf16.msra.mxu1 %v7998_v24  ;;  %v8092_v23 = vcombine.low %v346_v6, %v354_v7  ;;  %v8094_v24 = vcombine.low %v347_v8, %v355_v9  ;;  %v442_v6 = vld [vmem:[%s9601_s22 + $0x630] sm:$0xff]  ;;  %v443_v8 = vld [vmem:[%s9601_s22 + $0x638] sm:$0xff] }
 0x379   : > { %7486 = vmatprep.subr.bf16.mxu0 %v8013_v26  ;;  %7650 = vmatprep.subr.bf16.mxu1 %v8015_v29  ;;  %v8109_v26 = vcombine.high %v362_v17, %v370_v18  ;;  %v8111_v29 = vcombine.high %v363_v19, %v371_v21  ;;  %v450_v7 = vld [vmem:[%s9601_s22 + $0x670] sm:$0xff]  ;;  %v451_v9 = vld [vmem:[%s9601_s22 + $0x678] sm:$0xff] }
 0x37a   : > { %7516 = vmatprep.mubr.bf16.mxu0 %v9641_v57  ;;  %7680 = vmatprep.mubr.bf16.mxu1 %v9641_v57  ;;  %v8046_v57 = vcombine.low %v299_v43, %v307_v44  ;;  %v395_v43 = vld [vmem:[%s9601_s22 + $0x4b8] sm:$0xff] }
 0x37b   : > { %v403_v44 = vld [vmem:[%s9601_s22 + $0x4f8] sm:$0xff] }
 0x37c   : > { %7487 = vmatpush1.bf16.msra.mxu0 %v8012_v35  ;;  %7651 = vmatpush1.bf16.msra.mxu1 %v8014_v37  ;;  %v8108_v35 = vcombine.low %v362_v17, %v370_v18  ;;  %v8110_v37 = vcombine.low %v363_v19, %v371_v21  ;;  %v458_v17 = vld [vmem:[%s9601_s22 + $0x6b0] sm:$0xff]  ;;  %v459_v19 = vld [vmem:[%s9601_s22 + $0x6b8] sm:$0xff] }
 0x37d   : > { %7488 = vmatprep.subr.bf16.mxu0 %v8029_v38  ;;  %7652 = vmatprep.subr.bf16.mxu1 %v8031_v40  ;;  %v8125_v38 = vcombine.high %v378_v31, %v386_v32  ;;  %v8127_v40 = vcombine.high %v379_v33, %v387_v34  ;;  %v466_v18 = vld [vmem:[%s9601_s22 + $0x6f0] sm:$0xff]  ;;  %v467_v21 = vld [vmem:[%s9601_s22 + $0x6f8] sm:$0xff] }
 0x380   : > { %7489 = vmatpush1.bf16.msra.mxu0 %v8028_v45  ;;  %7653 = vmatpush1.bf16.msra.mxu1 %v8030_v46  ;;  %v8124_v45 = vcombine.low %v378_v31, %v386_v32  ;;  %v8126_v46 = vcombine.low %v379_v33, %v387_v34  ;;  %v474_v31 = vld [vmem:[%s9601_s22 + $0x730] sm:$0xff]  ;;  %v475_v33 = vld [vmem:[%s9601_s22 + $0x738] sm:$0xff] }
 0x381   : > { %7490 = vmatprep.subr.bf16.mxu0 %v8045_v47  ;;  %7654 = vmatprep.subr.bf16.mxu1 %v8047_v48  ;;  %v8141_v47 = vcombine.high %v394_v41, %v402_v42  ;;  %v8143_v48 = vcombine.high %v395_v43, %v403_v44  ;;  %v482_v32 = vld [vmem:[%s9601_s22 + $0x770] sm:$0xff]  ;;  %v483_v34 = vld [vmem:[%s9601_s22 + $0x778] sm:$0xff] }
 0x384   : > { %7491 = vmatpush1.bf16.msra.mxu0 %v8044_v56  ;;  %7655 = vmatpush1.bf16.msra.mxu1 %v8046_v57  ;;  %v8140_v56 = vcombine.low %v394_v41, %v402_v42  ;;  %v8142_v57 = vcombine.low %v395_v43, %v403_v44  ;;  %v490_v41 = vld [vmem:[%s9601_s22 + $0x7b0] sm:$0xff]  ;;  %v491_v43 = vld [vmem:[%s9601_s22 + $0x7b8] sm:$0xff] }
 0x385   : > { %7492 = vmatprep.subr.bf16.mxu0 %v8061_v60  ;;  %7656 = vmatprep.subr.bf16.mxu1 %v8063_v62  ;;  %v8157_v60 = vcombine.high %v410_v49, %v418_v50  ;;  %v8159_v62 = vcombine.high %v411_v52, %v419_v54  ;;  %v498_v42 = vld [vmem:[%s9601_s22 + $0x7f0] sm:$0xff]  ;;  %v499_v44 = vld [vmem:[%s9601_s22 + $0x7f8] sm:$0xff] }
 0x388   : > { %7493 = vmatpush1.bf16.msra.mxu0 %v8060_v2  ;;  %7657 = vmatpush1.bf16.msra.mxu1 %v8062_v3  ;;  %v8156_v2 = vcombine.low %v410_v49, %v418_v50  ;;  %v8158_v3 = vcombine.low %v411_v52, %v419_v54  ;;  %v506_v49 = vld [vmem:[%s9601_s22 + $0x830] sm:$0xff]  ;;  %v507_v52 = vld [vmem:[%s9601_s22 + $0x838] sm:$0xff] }
 0x389   : > { %7494 = vmatprep.subr.bf16.mxu0 %v8077_v4  ;;  %7658 = vmatprep.subr.bf16.mxu1 %v8079_v5  ;;  %v8173_v4 = vcombine.high %v426_v63, %v434_v0  ;;  %v8175_v5 = vcombine.high %v427_v39, %v435_v1  ;;  %v514_v50 = vld [vmem:[%s9601_s22 + $0x870] sm:$0xff]  ;;  %v515_v54 = vld [vmem:[%s9601_s22 + $0x878] sm:$0xff] }
 0x38c   : > { %7495 = vmatpush1.bf16.msra.mxu0 %v8076_v10  ;;  %7659 = vmatpush1.bf16.msra.mxu1 %v8078_v13  ;;  %v8172_v10 = vcombine.low %v426_v63, %v434_v0  ;;  %v8174_v13 = vcombine.low %v427_v39, %v435_v1  ;;  %v522_v63 = vld [vmem:[%s9601_s22 + $0x8b0] sm:$0xff]  ;;  %v523_v39 = vld [vmem:[%s9601_s22 + $0x8b8] sm:$0xff] }
 0x38d   : > { %7496 = vmatprep.subr.bf16.mxu0 %v8093_v14  ;;  %7660 = vmatprep.subr.bf16.mxu1 %v8095_v16  ;;  %v8189_v14 = vcombine.high %v442_v6, %v450_v7  ;;  %v8191_v16 = vcombine.high %v443_v8, %v451_v9  ;;  %v530_v0 = vld [vmem:[%s9601_s22 + $0x8f0] sm:$0xff]  ;;  %v531_v1 = vld [vmem:[%s9601_s22 + $0x8f8] sm:$0xff] }
 0x390   : > { %7497 = vmatpush1.bf16.msra.mxu0 %v8092_v23  ;;  %7661 = vmatpush1.bf16.msra.mxu1 %v8094_v24  ;;  %v8188_v23 = vcombine.low %v442_v6, %v450_v7  ;;  %v8190_v24 = vcombine.low %v443_v8, %v451_v9  ;;  %v538_v6 = vld [vmem:[%s9601_s22 + $0x930] sm:$0xff]  ;;  %v539_v8 = vld [vmem:[%s9601_s22 + $0x938] sm:$0xff] }
 0x391   : > { %7498 = vmatprep.subr.bf16.mxu0 %v8109_v26  ;;  %7662 = vmatprep.subr.bf16.mxu1 %v8111_v29  ;;  %v8205_v26 = vcombine.high %v458_v17, %v466_v18  ;;  %v8207_v29 = vcombine.high %v459_v19, %v467_v21  ;;  %v546_v7 = vld [vmem:[%s9601_s22 + $0x970] sm:$0xff]  ;;  %v547_v9 = vld [vmem:[%s9601_s22 + $0x978] sm:$0xff] }
 0x394   : > { %7499 = vmatpush1.bf16.msra.mxu0 %v8108_v35  ;;  %7663 = vmatpush1.bf16.msra.mxu1 %v8110_v37  ;;  %v8204_v35 = vcombine.low %v458_v17, %v466_v18  ;;  %v8206_v37 = vcombine.low %v459_v19, %v467_v21  ;;  %v554_v17 = vld [vmem:[%s9601_s22 + $0x9b0] sm:$0xff]  ;;  %v555_v19 = vld [vmem:[%s9601_s22 + $0x9b8] sm:$0xff] }
 0x395   : > { %7500 = vmatprep.subr.bf16.mxu0 %v8125_v38  ;;  %7664 = vmatprep.subr.bf16.mxu1 %v8127_v40  ;;  %v8221_v38 = vcombine.high %v474_v31, %v482_v32  ;;  %v8223_v40 = vcombine.high %v475_v33, %v483_v34  ;;  %v562_v18 = vld [vmem:[%s9601_s22 + $0x9f0] sm:$0xff]  ;;  %v563_v21 = vld [vmem:[%s9601_s22 + $0x9f8] sm:$0xff] }
 0x398   : > { %7501 = vmatpush1.bf16.msra.mxu0 %v8124_v45  ;;  %7665 = vmatpush1.bf16.msra.mxu1 %v8126_v46  ;;  %v8220_v45 = vcombine.low %v474_v31, %v482_v32  ;;  %v8222_v46 = vcombine.low %v475_v33, %v483_v34  ;;  %v578_v31 = vld [vmem:[%s9601_s22 + $0xa70] sm:$0xff]  ;;  %v571_v32 = vld [vmem:[%s9601_s22 + $0xa38] sm:$0xff]  ;;  %v8300_v34 = vcombine.low %v554_v17, %v562_v18 }
 0x399   : > { %7502 = vmatprep.subr.bf16.mxu0 %v8141_v47  ;;  %7666 = vmatprep.subr.bf16.mxu1 %v8143_v48  ;;  %v8237_v47 = vcombine.high %v490_v41, %v498_v42  ;;  %v8239_v48 = vcombine.high %v491_v43, %v499_v44  ;;  %v579_v33 = vld [vmem:[%s9601_s22 + $0xa78] sm:$0xff] }
 0x39c   : > { %7503 = vmatpush1.bf16.msra.mxu0 %v8140_v56  ;;  %7667 = vmatpush1.bf16.msra.mxu1 %v8142_v57  ;;  %v8236_v56 = vcombine.low %v490_v41, %v498_v42  ;;  %v8238_v57 = vcombine.low %v491_v43, %v499_v44  ;;  %v587_v41 = vld [vmem:[%s9601_s22 + $0xab8] sm:$0xff]  ;;  %v8318_v44 = vcombine.low %v571_v32, %v579_v33 }
 0x39d   : > { %7504 = vmatprep.subr.bf16.mxu0 %v8157_v60  ;;  %7668 = vmatprep.subr.bf16.mxu1 %v8159_v62  ;;  %v8253_v60 = vcombine.high %v506_v49, %v514_v50  ;;  %v8255_v62 = vcombine.high %v507_v52, %v515_v54  ;;  %v595_v42 = vld [vmem:[%s9601_s22 + $0xaf8] sm:$0xff] }
 0x3a0   : > { %7505 = vmatpush1.bf16.msra.mxu0 %v8156_v2  ;;  %7669 = vmatpush1.bf16.msra.mxu1 %v8158_v3  ;;  %v8252_v2 = vcombine.low %v506_v49, %v514_v50  ;;  %v8254_v3 = vcombine.low %v507_v52, %v515_v54  ;;  %v603_v49 = vld [vmem:[%s9601_s22 + $0xb38] sm:$0xff]  ;;  %v8334_v54 = vcombine.low %v587_v41, %v595_v42 }
 0x3a1   : > { %7506 = vmatprep.subr.bf16.mxu0 %v8173_v4  ;;  %7670 = vmatprep.subr.bf16.mxu1 %v8175_v5  ;;  %v8269_v4 = vcombine.high %v522_v63, %v530_v0  ;;  %v8271_v5 = vcombine.high %v523_v39, %v531_v1  ;;  %v611_v50 = vld [vmem:[%s9601_s22 + $0xb78] sm:$0xff] }
 0x3a4   : > { %7507 = vmatpush1.bf16.msra.mxu0 %v8172_v10  ;;  %7671 = vmatpush1.bf16.msra.mxu1 %v8174_v13  ;;  %v8268_v10 = vcombine.low %v522_v63, %v530_v0  ;;  %v8270_v13 = vcombine.low %v523_v39, %v531_v1  ;;  %v619_v63 = vld [vmem:[%s9601_s22 + $0xbb8] sm:$0xff]  ;;  %v8350_v1 = vcombine.low %v603_v49, %v611_v50 }
 0x3a5   : > { %7508 = vmatprep.subr.bf16.mxu0 %v8189_v14  ;;  %7672 = vmatprep.subr.bf16.mxu1 %v8191_v16  ;;  %v8285_v14 = vcombine.high %v538_v6, %v546_v7  ;;  %v8287_v16 = vcombine.high %v539_v8, %v547_v9  ;;  %v627_v0 = vld [vmem:[%s9601_s22 + $0xbf8] sm:$0xff] }
 0x3a8   : > { %7509 = vmatpush1.bf16.msra.mxu0 %v8188_v23  ;;  %7673 = vmatpush1.bf16.msra.mxu1 %v8190_v24  ;;  %v8286_v23 = vcombine.low %v539_v8, %v547_v9  ;;  %v8301_v24 = vcombine.high %v554_v17, %v562_v18  ;;  %v8366_v9 = vcombine.low %v619_v63, %v627_v0  ;;  %v651_v17 = vld [vmem:[%s9601_s22 + $0xcb8] sm:$0xff] }
 0x3a9   : > { %7510 = vmatprep.subr.bf16.mxu0 %v8205_v26  ;;  %7674 = vmatprep.subr.bf16.mxu1 %v8207_v29  ;;  %v8303_v26 = vcombine.high %v555_v19, %v563_v21  ;;  %v570_v29 = vld [vmem:[%s9601_s22 + $0xa30] sm:$0xff]  ;;  %v659_v18 = vld [vmem:[%s9601_s22 + $0xcf8] sm:$0xff] }
 0x3aa   : > { %v8316_v43 = vcombine.low %v570_v29, %v578_v31 }
 0x3ac   : > { %7511 = vmatpush1.bf16.msra.mxu0 %v8204_v35  ;;  %7675 = vmatpush1.bf16.msra.mxu1 %v8206_v37  ;;  %v8317_v35 = vcombine.high %v570_v29, %v578_v31  ;;  %v8319_v37 = vcombine.high %v571_v32, %v579_v33  ;;  %v667_v29 = vld [vmem:[%s9601_s22 + $0xd38] sm:$0xff]  ;;  %v8398_v33 = vcombine.low %v651_v17, %v659_v18 }
 0x3ad   : > { %7512 = vmatprep.subr.bf16.mxu0 %v8221_v38  ;;  %7676 = vmatprep.subr.bf16.mxu1 %v8223_v40  ;;  %v586_v38 = vld [vmem:[%s9601_s22 + $0xab0] sm:$0xff]  ;;  %v675_v31 = vld [vmem:[%s9601_s22 + $0xd78] sm:$0xff] }
 0x3ae   : > { %v594_v40 = vld [vmem:[%s9601_s22 + $0xaf0] sm:$0xff] }
 0x3af   : > { %v8332_v52 = vcombine.low %v586_v38, %v594_v40 }
 0x3b0   : > { %7513 = vmatpush1.bf16.msra.mxu0 %v8220_v45  ;;  %7677 = vmatpush1.bf16.msra.mxu1 %v8222_v46  ;;  %v8333_v45 = vcombine.high %v586_v38, %v594_v40  ;;  %v8335_v46 = vcombine.high %v587_v41, %v595_v42  ;;  %v683_v38 = vld [vmem:[%s9601_s22 + $0xdb8] sm:$0xff]  ;;  %v8414_v42 = vcombine.low %v667_v29, %v675_v31 }
 0x3b1   : > { %7514 = vmatprep.subr.bf16.mxu0 %v8237_v47  ;;  %7678 = vmatprep.subr.bf16.mxu1 %v8239_v48  ;;  %v602_v47 = vld [vmem:[%s9601_s22 + $0xb30] sm:$0xff]  ;;  %v691_v40 = vld [vmem:[%s9601_s22 + $0xdf8] sm:$0xff] }
 0x3b2   : > { %v610_v48 = vld [vmem:[%s9601_s22 + $0xb70] sm:$0xff] }
 0x3b3   : > { %v8348_v39 = vcombine.low %v602_v47, %v610_v48 }
 0x3b4   : > { %7515 = vmatpush1.bf16.msra.mxu0 %v8236_v56  ;;  %7679 = vmatpush1.bf16.msra.mxu1 %v8238_v57  ;;  %v8349_v56 = vcombine.high %v602_v47, %v610_v48  ;;  %v8351_v57 = vcombine.high %v603_v49, %v611_v50  ;;  %v699_v47 = vld [vmem:[%s9601_s22 + $0xe38] sm:$0xff]  ;;  %v8430_v50 = vcombine.low %v683_v38, %v691_v40 }
 0x3b5   : > { %7525 = vmatprep.subr.bf16.mxu0 %v8253_v60  ;;  %7689 = vmatprep.subr.bf16.mxu1 %v8255_v62  ;;  %v618_v60 = vld [vmem:[%s9601_s22 + $0xbb0] sm:$0xff]  ;;  %v707_v48 = vld [vmem:[%s9601_s22 + $0xe78] sm:$0xff] }
 0x3b6   : > { %v626_v62 = vld [vmem:[%s9601_s22 + $0xbf0] sm:$0xff] }
 0x3b7   : > { %7517 = vmatmul.mubr.bf16.vlgmr.msra.gmra.mrb[12].mxu0 %v9687_v12  ;;  %7681 = vmatmul.mubr.bf16.vlgmr.msra.gmra.mrb[12].mxu1 %v9687_v12  ;;  %v8284_v12 = vcombine.low %v538_v6, %v546_v7  ;;  %v635_v6 = vld [vmem:[%s9601_s22 + $0xc38] sm:$0xff]  ;;  %v8364_v8 = vcombine.low %v618_v60, %v626_v62 }
 0x3b8   : > { %7526 = vmatpush1.bf16.msra.mxu0 %v8252_v2  ;;  %7690 = vmatpush1.bf16.msra.mxu1 %v8254_v3  ;;  %v8365_v2 = vcombine.high %v618_v60, %v626_v62  ;;  %v8367_v3 = vcombine.high %v619_v63, %v627_v0  ;;  %v643_v7 = vld [vmem:[%s9601_s22 + $0xc78] sm:$0xff]  ;;  %v8446_v0 = vcombine.low %v699_v47, %v707_v48 }
 0x3b9   : > { %7527 = vmatprep.subr.bf16.mxu0 %v8269_v4  ;;  %7691 = vmatprep.subr.bf16.mxu1 %v8271_v5  ;;  %v634_v4 = vld [vmem:[%s9601_s22 + $0xc30] sm:$0xff]  ;;  %v715_v60 = vld [vmem:[%s9601_s22 + $0xeb8] sm:$0xff] }
 0x3ba   : > { %7557 = vmatprep.mubr.bf16.mxu0 %v9697_v53  ;;  %7721 = vmatprep.mubr.bf16.mxu1 %v9697_v53  ;;  %v8302_v53 = vcombine.low %v555_v19, %v563_v21  ;;  %v642_v5 = vld [vmem:[%s9601_s22 + $0xc70] sm:$0xff]  ;;  %v8382_v21 = vcombine.low %v635_v6, %v643_v7  ;;  %v723_v62 = vld [vmem:[%s9601_s22 + $0xef8] sm:$0xff] }
 0x3bb   : > { %v8380_v19 = vcombine.low %v634_v4, %v642_v5 }
 0x3bc   : > { %7528 = vmatpush1.bf16.msra.mxu0 %v8268_v10  ;;  %7692 = vmatpush1.bf16.msra.mxu1 %v8270_v13  ;;  %v8381_v10 = vcombine.high %v634_v4, %v642_v5  ;;  %v8383_v13 = vcombine.high %v635_v6, %v643_v7  ;;  %v731_v4 = vld [vmem:[%s9601_s22 + $0xf38] sm:$0xff]  ;;  %v8462_v7 = vcombine.low %v715_v60, %v723_v62 }
 0x3bd   : > { %7529 = vmatprep.subr.bf16.mxu0 %v8285_v14  ;;  %7693 = vmatprep.subr.bf16.mxu1 %v8287_v16  ;;  %v650_v14 = vld [vmem:[%s9601_s22 + $0xcb0] sm:$0xff]  ;;  %v739_v5 = vld [vmem:[%s9601_s22 + $0xf78] sm:$0xff] }
 0x3be   : > { %v658_v16 = vld [vmem:[%s9601_s22 + $0xcf0] sm:$0xff] }
 0x3bf   : > { %v8396_v32 = vcombine.low %v650_v14, %v658_v16 }
 0x3c0   : > { %7530 = vmatpush1.bf16.msra.mxu0 %v8284_v12  ;;  %7694 = vmatpush1.bf16.msra.mxu1 %v8286_v23  ;;  %v8397_v12 = vcombine.high %v650_v14, %v658_v16  ;;  %v8399_v23 = vcombine.high %v651_v17, %v659_v18  ;;  %v747_v14 = vld [vmem:[%s9601_s22 + $0xfb8] sm:$0xff]  ;;  %v8478_v18 = vcombine.low %v731_v4, %v739_v5 }
 0x3c1   : > { %7531 = vmatprep.subr.bf16.mxu0 %v8301_v24  ;;  %7695 = vmatprep.subr.bf16.mxu1 %v8303_v26  ;;  %v666_v24 = vld [vmem:[%s9601_s22 + $0xd30] sm:$0xff]  ;;  %v755_v16 = vld [vmem:[%s9601_s22 + $0xff8] sm:$0xff] }
 0x3c2   : > { %v674_v26 = vld [vmem:[%s9601_s22 + $0xd70] sm:$0xff] }
 0x3c3   : > { %v8412_v41 = vcombine.low %v666_v24, %v674_v26 }
 0x3c4   : > { %7532 = vmatpush1.bf16.msra.mxu0 %v8300_v34  ;;  %7696 = vmatpush1.bf16.msra.mxu1 %v8302_v53  ;;  %v8413_v34 = vcombine.high %v666_v24, %v674_v26  ;;  %v8415_v53 = vcombine.high %v667_v29, %v675_v31  ;;  %v763_v24 = vld [vmem:[%s9601_s22 + $0x1038] sm:$0xff]  ;;  %v8494_v31 = vcombine.low %v747_v14, %v755_v16 }
 0x3c5   : > { %7533 = vmatprep.subr.bf16.mxu0 %v8317_v35  ;;  %7697 = vmatprep.subr.bf16.mxu1 %v8319_v37  ;;  %v682_v35 = vld [vmem:[%s9601_s22 + $0xdb0] sm:$0xff]  ;;  %v771_v26 = vld [vmem:[%s9601_s22 + $0x1078] sm:$0xff] }
 0x3c6   : > { %v690_v37 = vld [vmem:[%s9601_s22 + $0xdf0] sm:$0xff] }
 0x3c7   : > { %v8428_v49 = vcombine.low %v682_v35, %v690_v37 }
 0x3c8   : > { %7534 = vmatpush1.bf16.msra.mxu0 %v8316_v43  ;;  %7698 = vmatpush1.bf16.msra.mxu1 %v8318_v44  ;;  %v8429_v43 = vcombine.high %v682_v35, %v690_v37  ;;  %v8431_v44 = vcombine.high %v683_v38, %v691_v40  ;;  %v779_v35 = vld [vmem:[%s9601_s22 + $0x10b8] sm:$0xff]  ;;  %v8510_v40 = vcombine.low %v763_v24, %v771_v26 }
 0x3c9   : > { %7535 = vmatprep.subr.bf16.mxu0 %v8333_v45  ;;  %7699 = vmatprep.subr.bf16.mxu1 %v8335_v46  ;;  %v698_v45 = vld [vmem:[%s9601_s22 + $0xe30] sm:$0xff]  ;;  %v787_v37 = vld [vmem:[%s9601_s22 + $0x10f8] sm:$0xff] }
 0x3ca   : > { %v706_v46 = vld [vmem:[%s9601_s22 + $0xe70] sm:$0xff] }
 0x3cb   : > { %v8444_v63 = vcombine.low %v698_v45, %v706_v46 }
 0x3cc   : > { %7536 = vmatpush1.bf16.msra.mxu0 %v8332_v52  ;;  %7700 = vmatpush1.bf16.msra.mxu1 %v8334_v54  ;;  %v8445_v52 = vcombine.high %v698_v45, %v706_v46  ;;  %v8447_v54 = vcombine.high %v699_v47, %v707_v48  ;;  %v795_v45 = vld [vmem:[%s9601_s22 + $0x1138] sm:$0xff]  ;;  %v8526_v48 = vcombine.low %v779_v35, %v787_v37 }
 0x3cd   : > { %7537 = vmatprep.subr.bf16.mxu0 %v8349_v56  ;;  %7701 = vmatprep.subr.bf16.mxu1 %v8351_v57  ;;  %v714_v56 = vld [vmem:[%s9601_s22 + $0xeb0] sm:$0xff]  ;;  %v803_v46 = vld [vmem:[%s9601_s22 + $0x1178] sm:$0xff] }
 0x3ce   : > { %v722_v57 = vld [vmem:[%s9601_s22 + $0xef0] sm:$0xff] }
 0x3cf   : > { %v8460_v6 = vcombine.low %v714_v56, %v722_v57 }
 0x3d0   : > { %7538 = vmatpush1.bf16.msra.mxu0 %v8348_v39  ;;  %7702 = vmatpush1.bf16.msra.mxu1 %v8350_v1  ;;  %v8461_v39 = vcombine.high %v714_v56, %v722_v57  ;;  %v8463_v1 = vcombine.high %v715_v60, %v723_v62  ;;  %v811_v56 = vld [vmem:[%s9601_s22 + $0x11b8] sm:$0xff]  ;;  %v8542_v60 = vcombine.low %v795_v45, %v803_v46 }
 0x3d1   : > { %7539 = vmatprep.subr.bf16.mxu0 %v8365_v2  ;;  %7703 = vmatprep.subr.bf16.mxu1 %v8367_v3  ;;  %v730_v2 = vld [vmem:[%s9601_s22 + $0xf30] sm:$0xff]  ;;  %v819_v57 = vld [vmem:[%s9601_s22 + $0x11f8] sm:$0xff] }
 0x3d2   : > { %v738_v3 = vld [vmem:[%s9601_s22 + $0xf70] sm:$0xff] }
 0x3d3   : > { %v8476_v17 = vcombine.low %v730_v2, %v738_v3 }
 0x3d4   : > { %7540 = vmatpush1.bf16.msra.mxu0 %v8364_v8  ;;  %7704 = vmatpush1.bf16.msra.mxu1 %v8366_v9  ;;  %v8477_v8 = vcombine.high %v730_v2, %v738_v3  ;;  %v8479_v9 = vcombine.high %v731_v4, %v739_v5  ;;  %v835_v2 = vld [vmem:[%s9601_s22 + $0x1278] sm:$0xff] }
 0x3d5   : > { %7541 = vmatprep.subr.bf16.mxu0 %v8381_v10  ;;  %7705 = vmatprep.subr.bf16.mxu1 %v8383_v13  ;;  %v746_v10 = vld [vmem:[%s9601_s22 + $0xfb0] sm:$0xff] }
 0x3d6   : > { %v754_v13 = vld [vmem:[%s9601_s22 + $0xff0] sm:$0xff] }
 0x3d7   : > { %v8492_v29 = vcombine.low %v746_v10, %v754_v13 }
 0x3d8   : > { %7542 = vmatpush1.bf16.msra.mxu0 %v8380_v19  ;;  %7706 = vmatpush1.bf16.msra.mxu1 %v8382_v21  ;;  %v8493_v19 = vcombine.high %v746_v10, %v754_v13  ;;  %v8495_v21 = vcombine.high %v747_v14, %v755_v16 }
 0x3d9   : > { %7543 = vmatprep.subr.bf16.mxu0 %v8397_v12  ;;  %7707 = vmatprep.subr.bf16.mxu1 %v8399_v23  ;;  %v762_v12 = vld [vmem:[%s9601_s22 + $0x1030] sm:$0xff] }
 0x3da   : > { %v770_v23 = vld [vmem:[%s9601_s22 + $0x1070] sm:$0xff] }
 0x3db   : > { %v8508_v38 = vcombine.low %v762_v12, %v770_v23 }
 0x3dc   : > { %7544 = vmatpush1.bf16.msra.mxu0 %v8396_v32  ;;  %7708 = vmatpush1.bf16.msra.mxu1 %v8398_v33  ;;  %v8509_v32 = vcombine.high %v762_v12, %v770_v23  ;;  %v8511_v33 = vcombine.high %v763_v24, %v771_v26 }
 0x3dd   : > { %7545 = vmatprep.subr.bf16.mxu0 %v8413_v34  ;;  %7709 = vmatprep.subr.bf16.mxu1 %v8415_v53  ;;  %v778_v34 = vld [vmem:[%s9601_s22 + $0x10b0] sm:$0xff] }
 0x3de   : > { %v786_v53 = vld [vmem:[%s9601_s22 + $0x10f0] sm:$0xff] }
 0x3df   : > { %v8524_v47 = vcombine.low %v778_v34, %v786_v53 }
 0x3e0   : > { %7546 = vmatpush1.bf16.msra.mxu0 %v8412_v41  ;;  %7710 = vmatpush1.bf16.msra.mxu1 %v8414_v42  ;;  %v8525_v41 = vcombine.high %v778_v34, %v786_v53  ;;  %v8527_v42 = vcombine.high %v779_v35, %v787_v37 }
 0x3e1   : > { %7547 = vmatprep.subr.bf16.mxu0 %v8429_v43  ;;  %7711 = vmatprep.subr.bf16.mxu1 %v8431_v44  ;;  %v794_v43 = vld [vmem:[%s9601_s22 + $0x1130] sm:$0xff] }
 0x3e2   : > { %v802_v44 = vld [vmem:[%s9601_s22 + $0x1170] sm:$0xff] }
 0x3e4   : > { %7548 = vmatpush1.bf16.msra.mxu0 %v8428_v49  ;;  %7712 = vmatpush1.bf16.msra.mxu1 %v8430_v50  ;;  %v8541_v49 = vcombine.high %v794_v43, %v802_v44  ;;  %v8543_v50 = vcombine.high %v795_v45, %v803_v46 }
 0x3e5   : > { %7549 = vmatprep.subr.bf16.mxu0 %v8445_v52  ;;  %7713 = vmatprep.subr.bf16.mxu1 %v8447_v54  ;;  %v810_v52 = vld [vmem:[%s9601_s22 + $0x11b0] sm:$0xff] }
 0x3e6   : > { %v818_v54 = vld [vmem:[%s9601_s22 + $0x11f0] sm:$0xff] }
 0x3e7   : > { %v8557_v62 = vcombine.high %v810_v52, %v818_v54  ;;  %v8556_v3 = vcombine.low %v810_v52, %v818_v54 }
 0x3e8   : > { %7550 = vmatpush1.bf16.msra.mxu0 %v8444_v63  ;;  %7714 = vmatpush1.bf16.msra.mxu1 %v8446_v0  ;;  %v8559_v63 = vcombine.high %v811_v56, %v819_v57  ;;  %v826_v0 = vld [vmem:[%s9601_s22 + $0x1230] sm:$0xff] }
 0x3e9   : > { %7551 = vmatprep.subr.bf16.mxu0 %v8461_v39  ;;  %7715 = vmatprep.subr.bf16.mxu1 %v8463_v1  ;;  %v834_v39 = vld [vmem:[%s9601_s22 + $0x1270] sm:$0xff]  ;;  %v827_v1 = vld [vmem:[%s9601_s22 + $0x1238] sm:$0xff] }
 0x3ea   : > { %v8573_v4 = vcombine.high %v826_v0, %v834_v39  ;;  %v8575_v5 = vcombine.high %v827_v1, %v835_v2  ;;  %v8572_v10 = vcombine.low %v826_v0, %v834_v39  ;;  %v8574_v13 = vcombine.low %v827_v1, %v835_v2 }
 0x3ec   : > { %7552 = vmatpush1.bf16.msra.mxu0 %v8460_v6  ;;  %7716 = vmatpush1.bf16.msra.mxu1 %v8462_v7  ;;  %v842_v6 = vld [vmem:[%s9601_s22 + $0x12b0] sm:$0xff] }
 0x3ed   : > { %7553 = vmatprep.subr.bf16.mxu0 %v8477_v8  ;;  %7717 = vmatprep.subr.bf16.mxu1 %v8479_v9  ;;  %v850_v7 = vld [vmem:[%s9601_s22 + $0x12f0] sm:$0xff]  ;;  %v843_v8 = vld [vmem:[%s9601_s22 + $0x12b8] sm:$0xff] }
 0x3ee   : > { %v851_v9 = vld [vmem:[%s9601_s22 + $0x12f8] sm:$0xff]  ;;  %v8589_v14 = vcombine.high %v842_v6, %v850_v7  ;;  %v8588_v12 = vcombine.low %v842_v6, %v850_v7 }
 0x3ef   : > { %v8591_v16 = vcombine.high %v843_v8, %v851_v9  ;;  %v8590_v23 = vcombine.low %v843_v8, %v851_v9 }
 0x3f0   : > { %7554 = vmatpush1.bf16.msra.mxu0 %v8476_v17  ;;  %7718 = vmatpush1.bf16.msra.mxu1 %v8478_v18  ;;  %v858_v17 = vld [vmem:[%s9601_s22 + $0x1330] sm:$0xff] }
 0x3f1   : > { %7555 = vmatprep.subr.bf16.mxu0 %v8493_v19  ;;  %7719 = vmatprep.subr.bf16.mxu1 %v8495_v21  ;;  %v866_v18 = vld [vmem:[%s9601_s22 + $0x1370] sm:$0xff]  ;;  %v859_v19 = vld [vmem:[%s9601_s22 + $0x1338] sm:$0xff] }
 0x3f2   : > { %v867_v21 = vld [vmem:[%s9601_s22 + $0x1378] sm:$0xff]  ;;  %v8605_v24 = vcombine.high %v858_v17, %v866_v18  ;;  %v8604_v34 = vcombine.low %v858_v17, %v866_v18 }
 0x3f3   : > { %v8607_v26 = vcombine.high %v859_v19, %v867_v21  ;;  %v8606_v53 = vcombine.low %v859_v19, %v867_v21 }
 0x3f4   : > { %7556 = vmatpush1.bf16.msra.mxu0 %v8492_v29  ;;  %7720 = vmatpush1.bf16.msra.mxu1 %v8494_v31  ;;  %v874_v29 = vld [vmem:[%s9601_s22 + $0x13b0] sm:$0xff] }
 0x3f5   : > { %7566 = vmatprep.subr.bf16.mxu0 %v8509_v32  ;;  %7730 = vmatprep.subr.bf16.mxu1 %v8511_v33  ;;  %v882_v31 = vld [vmem:[%s9601_s22 + $0x13f0] sm:$0xff]  ;;  %v875_v32 = vld [vmem:[%s9601_s22 + $0x13b8] sm:$0xff] }
 0x3f6   : > { %v883_v33 = vld [vmem:[%s9601_s22 + $0x13f8] sm:$0xff]  ;;  %v8621_v35 = vcombine.high %v874_v29, %v882_v31 }
 0x3f7   : > { %7558 = vmatmul.mubr.bf16.vlgmr.msra.gmra.mrb[12].mxu0 %v9765_v22  ;;  %7722 = vmatmul.mubr.bf16.vlgmr.msra.gmra.mrb[12].mxu1 %v9765_v22  ;;  %v8540_v22 = vcombine.low %v794_v43, %v802_v44  ;;  %v8623_v37 = vcombine.high %v875_v32, %v883_v33  ;;  %v8620_v43 = vcombine.low %v874_v29, %v882_v31 }
 0x3f8   : > { %7567 = vmatpush1.bf16.msra.mxu0 %v8508_v38  ;;  %7731 = vmatpush1.bf16.msra.mxu1 %v8510_v40  ;;  %v890_v38 = vld [vmem:[%s9601_s22 + $0x1430] sm:$0xff]  ;;  %v8622_v44 = vcombine.low %v875_v32, %v883_v33 }
 0x3f9   : > { %7568 = vmatprep.subr.bf16.mxu0 %v8525_v41  ;;  %7732 = vmatprep.subr.bf16.mxu1 %v8527_v42  ;;  %v898_v40 = vld [vmem:[%s9601_s22 + $0x1470] sm:$0xff]  ;;  %v891_v41 = vld [vmem:[%s9601_s22 + $0x1438] sm:$0xff] }
 0x3fa   : > { %7598 = vmatprep.mubr.bf16.mxu0 %v9775_v15  ;;  %7762 = vmatprep.mubr.bf16.mxu1 %v9775_v15  ;;  %v8558_v15 = vcombine.low %v811_v56, %v819_v57  ;;  %v899_v42 = vld [vmem:[%s9601_s22 + $0x1478] sm:$0xff]  ;;  %v8637_v45 = vcombine.high %v890_v38, %v898_v40  ;;  %v8636_v52 = vcombine.low %v890_v38, %v898_v40 }
 0x3fb   : > { %v8639_v46 = vcombine.high %v891_v41, %v899_v42  ;;  %v8638_v54 = vcombine.low %v891_v41, %v899_v42 }
 0x3fc   : > { %7569 = vmatpush1.bf16.msra.mxu0 %v8524_v47  ;;  %7733 = vmatpush1.bf16.msra.mxu1 %v8526_v48  ;;  %v906_v47 = vld [vmem:[%s9601_s22 + $0x14b0] sm:$0xff] }
 0x3fd   : > { %7570 = vmatprep.subr.bf16.mxu0 %v8541_v49  ;;  %7734 = vmatprep.subr.bf16.mxu1 %v8543_v50  ;;  %v914_v48 = vld [vmem:[%s9601_s22 + $0x14f0] sm:$0xff]  ;;  %v907_v49 = vld [vmem:[%s9601_s22 + $0x14b8] sm:$0xff] }
 0x3fe   : > { %v915_v50 = vld [vmem:[%s9601_s22 + $0x14f8] sm:$0xff]  ;;  %v8653_v56 = vcombine.high %v906_v47, %v914_v48  ;;  %v8652_v0 = vcombine.low %v906_v47, %v914_v48 }
 0x3ff   : > { %v8655_v57 = vcombine.high %v907_v49, %v915_v50  ;;  %v8654_v39 = vcombine.low %v907_v49, %v915_v50 }
 0x400   : > { %7571 = vmatpush1.bf16.msra.mxu0 %v8540_v22  ;;  %7735 = vmatpush1.bf16.msra.mxu1 %v8542_v60  ;;  %v922_v22 = vld [vmem:[%s9601_s22 + $0x1530] sm:$0xff] }
 0x401   : > { %7572 = vmatprep.subr.bf16.mxu0 %v8557_v62  ;;  %7736 = vmatprep.subr.bf16.mxu1 %v8559_v63  ;;  %v930_v60 = vld [vmem:[%s9601_s22 + $0x1570] sm:$0xff]  ;;  %v923_v62 = vld [vmem:[%s9601_s22 + $0x1538] sm:$0xff] }
 0x402   : > { %v931_v63 = vld [vmem:[%s9601_s22 + $0x1578] sm:$0xff]  ;;  %v8669_v1 = vcombine.high %v922_v22, %v930_v60  ;;  %v8668_v6 = vcombine.low %v922_v22, %v930_v60 }
 0x403   : > { %v8671_v2 = vcombine.high %v923_v62, %v931_v63  ;;  %v8670_v7 = vcombine.low %v923_v62, %v931_v63 }
 0x404   : > { %7573 = vmatpush1.bf16.msra.mxu0 %v8556_v3  ;;  %7737 = vmatpush1.bf16.msra.mxu1 %v8558_v15  ;;  %v938_v3 = vld [vmem:[%s9601_s22 + $0x15b0] sm:$0xff] }
 0x405   : > { %7574 = vmatprep.subr.bf16.mxu0 %v8573_v4  ;;  %7738 = vmatprep.subr.bf16.mxu1 %v8575_v5  ;;  %v946_v15 = vld [vmem:[%s9601_s22 + $0x15f0] sm:$0xff]  ;;  %v939_v4 = vld [vmem:[%s9601_s22 + $0x15b8] sm:$0xff] }
 0x406   : > { %v947_v5 = vld [vmem:[%s9601_s22 + $0x15f8] sm:$0xff]  ;;  %v8685_v8 = vcombine.high %v938_v3, %v946_v15  ;;  %v8684_v17 = vcombine.low %v938_v3, %v946_v15 }
 0x407   : > { %v8687_v9 = vcombine.high %v939_v4, %v947_v5  ;;  %v8686_v18 = vcombine.low %v939_v4, %v947_v5 }
 0x408   : > { %7575 = vmatpush1.bf16.msra.mxu0 %v8572_v10  ;;  %7739 = vmatpush1.bf16.msra.mxu1 %v8574_v13  ;;  %v954_v10 = vld [vmem:[%s9601_s22 + $0x1630] sm:$0xff] }
 0x409   : > { %7576 = vmatprep.subr.bf16.mxu0 %v8589_v14  ;;  %7740 = vmatprep.subr.bf16.mxu1 %v8591_v16  ;;  %v962_v13 = vld [vmem:[%s9601_s22 + $0x1670] sm:$0xff]  ;;  %v955_v14 = vld [vmem:[%s9601_s22 + $0x1638] sm:$0xff] }
 0x40a   : > { %v963_v16 = vld [vmem:[%s9601_s22 + $0x1678] sm:$0xff]  ;;  %v8701_v19 = vcombine.high %v954_v10, %v962_v13  ;;  %v8700_v29 = vcombine.low %v954_v10, %v962_v13 }
 0x40b   : > { %v8703_v21 = vcombine.high %v955_v14, %v963_v16  ;;  %v8702_v31 = vcombine.low %v955_v14, %v963_v16 }
 0x40c   : > { %7577 = vmatpush1.bf16.msra.mxu0 %v8588_v12  ;;  %7741 = vmatpush1.bf16.msra.mxu1 %v8590_v23  ;;  %v970_v12 = vld [vmem:[%s9601_s22 + $0x16b0] sm:$0xff] }
 0x40d   : > { %7578 = vmatprep.subr.bf16.mxu0 %v8605_v24  ;;  %7742 = vmatprep.subr.bf16.mxu1 %v8607_v26  ;;  %v978_v23 = vld [vmem:[%s9601_s22 + $0x16f0] sm:$0xff]  ;;  %v971_v24 = vld [vmem:[%s9601_s22 + $0x16b8] sm:$0xff] }
 0x40e   : > { %v979_v26 = vld [vmem:[%s9601_s22 + $0x16f8] sm:$0xff]  ;;  %v8717_v32 = vcombine.high %v970_v12, %v978_v23  ;;  %v8716_v38 = vcombine.low %v970_v12, %v978_v23 }
 0x40f   : > { %v8719_v33 = vcombine.high %v971_v24, %v979_v26  ;;  %v8718_v40 = vcombine.low %v971_v24, %v979_v26  ;;  %v1082_v26 = vld [vmem:[%s9601_s22 + $0x1a30] sm:$0xff] }
 0x410   : > { %7579 = vmatpush1.bf16.msra.mxu0 %v8604_v34  ;;  %7743 = vmatpush1.bf16.msra.mxu1 %v8606_v53  ;;  %v986_v34 = vld [vmem:[%s9601_s22 + $0x1730] sm:$0xff] }
 0x411   : > { %7580 = vmatprep.subr.bf16.mxu0 %v8621_v35  ;;  %7744 = vmatprep.subr.bf16.mxu1 %v8623_v37  ;;  %v994_v53 = vld [vmem:[%s9601_s22 + $0x1770] sm:$0xff]  ;;  %v987_v35 = vld [vmem:[%s9601_s22 + $0x1738] sm:$0xff] }
 0x412   : > { %v995_v37 = vld [vmem:[%s9601_s22 + $0x1778] sm:$0xff]  ;;  %v8733_v41 = vcombine.high %v986_v34, %v994_v53  ;;  %v8732_v47 = vcombine.low %v986_v34, %v994_v53 }
 0x413   : > { %v8735_v42 = vcombine.high %v987_v35, %v995_v37  ;;  %v8734_v48 = vcombine.low %v987_v35, %v995_v37  ;;  %v1098_v35 = vld [vmem:[%s9601_s22 + $0x1ab0] sm:$0xff] }
 0x414   : > { %7581 = vmatpush1.bf16.msra.mxu0 %v8620_v43  ;;  %7745 = vmatpush1.bf16.msra.mxu1 %v8622_v44  ;;  %v1002_v43 = vld [vmem:[%s9601_s22 + $0x17b0] sm:$0xff] }
 0x415   : > { %7582 = vmatprep.subr.bf16.mxu0 %v8637_v45  ;;  %7746 = vmatprep.subr.bf16.mxu1 %v8639_v46  ;;  %v1010_v44 = vld [vmem:[%s9601_s22 + $0x17f0] sm:$0xff]  ;;  %v1003_v45 = vld [vmem:[%s9601_s22 + $0x17b8] sm:$0xff] }
 0x416   : > { %v1011_v46 = vld [vmem:[%s9601_s22 + $0x17f8] sm:$0xff]  ;;  %v8749_v49 = vcombine.high %v1002_v43, %v1010_v44  ;;  %v8748_v22 = vcombine.low %v1002_v43, %v1010_v44  ;;  %v1106_v37 = vld [vmem:[%s9601_s22 + $0x1af0] sm:$0xff] }
 0x417   : > { %v8751_v50 = vcombine.high %v1003_v45, %v1011_v46  ;;  %v8750_v60 = vcombine.low %v1003_v45, %v1011_v46  ;;  %v8845_v44 = vcombine.high %v1098_v35, %v1106_v37  ;;  %v1114_v46 = vld [vmem:[%s9601_s22 + $0x1b30] sm:$0xff] }
 0x418   : > { %7583 = vmatpush1.bf16.msra.mxu0 %v8636_v52  ;;  %7747 = vmatpush1.bf16.msra.mxu1 %v8638_v54  ;;  %v1018_v52 = vld [vmem:[%s9601_s22 + $0x1830] sm:$0xff] }
 0x419   : > { %7584 = vmatprep.subr.bf16.mxu0 %v8653_v56  ;;  %7748 = vmatprep.subr.bf16.mxu1 %v8655_v57  ;;  %v1026_v54 = vld [vmem:[%s9601_s22 + $0x1870] sm:$0xff]  ;;  %v1019_v56 = vld [vmem:[%s9601_s22 + $0x1838] sm:$0xff] }
 0x41a   : > { %v1027_v57 = vld [vmem:[%s9601_s22 + $0x1878] sm:$0xff]  ;;  %v8765_v62 = vcombine.high %v1018_v52, %v1026_v54  ;;  %v8764_v3 = vcombine.low %v1018_v52, %v1026_v54 }
 0x41b   : > { %v8767_v63 = vcombine.high %v1019_v56, %v1027_v57  ;;  %v8766_v15 = vcombine.low %v1019_v56, %v1027_v57  ;;  %v8844_v56 = vcombine.low %v1098_v35, %v1106_v37  ;;  %v1186_v35 = vld [vmem:[%s9601_s22 + $0x1d70] sm:$0xff] }
 0x41c   : > { %7585 = vmatpush1.bf16.msra.mxu0 %v8652_v0  ;;  %7749 = vmatpush1.bf16.msra.mxu1 %v8654_v39  ;;  %v1034_v0 = vld [vmem:[%s9601_s22 + $0x18b0] sm:$0xff] }
 0x41d   : > { %7586 = vmatprep.subr.bf16.mxu0 %v8669_v1  ;;  %7750 = vmatprep.subr.bf16.mxu1 %v8671_v2  ;;  %v1042_v39 = vld [vmem:[%s9601_s22 + $0x18f0] sm:$0xff]  ;;  %v1035_v1 = vld [vmem:[%s9601_s22 + $0x18b8] sm:$0xff] }
 0x41e   : > { %v1043_v2 = vld [vmem:[%s9601_s22 + $0x18f8] sm:$0xff]  ;;  %v8781_v4 = vcombine.high %v1034_v0, %v1042_v39  ;;  %v8780_v10 = vcombine.low %v1034_v0, %v1042_v39 }
 0x41f   : > { %v8783_v5 = vcombine.high %v1035_v1, %v1043_v2  ;;  %v8782_v13 = vcombine.low %v1035_v1, %v1043_v2  ;;  %v1131_v2 = vld [vmem:[%s9601_s22 + $0x1bb8] sm:$0xff] }
 0x420   : > { %7587 = vmatpush1.bf16.msra.mxu0 %v8668_v6  ;;  %7751 = vmatpush1.bf16.msra.mxu1 %v8670_v7  ;;  %v1050_v6 = vld [vmem:[%s9601_s22 + $0x1930] sm:$0xff] }
 0x421   : > { %7588 = vmatprep.subr.bf16.mxu0 %v8685_v8  ;;  %7752 = vmatprep.subr.bf16.mxu1 %v8687_v9  ;;  %v1058_v7 = vld [vmem:[%s9601_s22 + $0x1970] sm:$0xff]  ;;  %v1051_v8 = vld [vmem:[%s9601_s22 + $0x1938] sm:$0xff] }
 0x422   : > { %v1059_v9 = vld [vmem:[%s9601_s22 + $0x1978] sm:$0xff]  ;;  %v8797_v14 = vcombine.high %v1050_v6, %v1058_v7 }
 0x423   : > { %v8799_v16 = vcombine.high %v1051_v8, %v1059_v9  ;;  %v8798_v12 = vcombine.low %v1051_v8, %v1059_v9 }
 0x424   : > { %7589 = vmatpush1.bf16.msra.mxu0 %v8684_v17  ;;  %7753 = vmatpush1.bf16.msra.mxu1 %v8686_v18  ;;  %v1066_v17 = vld [vmem:[%s9601_s22 + $0x19b0] sm:$0xff] }
 0x425   : > { %7590 = vmatprep.subr.bf16.mxu0 %v8701_v19  ;;  %7754 = vmatprep.subr.bf16.mxu1 %v8703_v21  ;;  %v1074_v18 = vld [vmem:[%s9601_s22 + $0x19f0] sm:$0xff]  ;;  %v1067_v19 = vld [vmem:[%s9601_s22 + $0x19b8] sm:$0xff] }
 0x426   : > { %v1075_v21 = vld [vmem:[%s9601_s22 + $0x19f8] sm:$0xff]  ;;  %v8813_v23 = vcombine.high %v1066_v17, %v1074_v18 }
 0x427   : > { %v8815_v24 = vcombine.high %v1067_v19, %v1075_v21 }
 0x428   : > { %7591 = vmatpush1.bf16.msra.mxu0 %v8700_v29  ;;  %7755 = vmatpush1.bf16.msra.mxu1 %v8702_v31  ;;  %v1090_v29 = vld [vmem:[%s9601_s22 + $0x1a70] sm:$0xff]  ;;  %v1083_v31 = vld [vmem:[%s9601_s22 + $0x1a38] sm:$0xff] }
 0x429   : > { %7592 = vmatprep.subr.bf16.mxu0 %v8717_v32  ;;  %7756 = vmatprep.subr.bf16.mxu1 %v8719_v33  ;;  %v1091_v32 = vld [vmem:[%s9601_s22 + $0x1a78] sm:$0xff]  ;;  %v8812_v33 = vcombine.low %v1066_v17, %v1074_v18  ;;  %v8829_v34 = vcombine.high %v1082_v26, %v1090_v29  ;;  %v1154_v17 = vld [vmem:[%s9601_s22 + $0x1c70] sm:$0xff] }
 0x42a   : > { %v8831_v53 = vcombine.high %v1083_v31, %v1091_v32  ;;  %v8830_v43 = vcombine.low %v1083_v31, %v1091_v32  ;;  %v1147_v18 = vld [vmem:[%s9601_s22 + $0x1c38] sm:$0xff] }
 0x42b   : > { %v1171_v31 = vld [vmem:[%s9601_s22 + $0x1cf8] sm:$0xff] }
 0x42c   : > { %7593 = vmatpush1.bf16.msra.mxu0 %v8716_v38  ;;  %7757 = vmatpush1.bf16.msra.mxu1 %v8718_v40  ;;  %v1099_v38 = vld [vmem:[%s9601_s22 + $0x1ab8] sm:$0xff] }
 0x42d   : > { %7594 = vmatprep.subr.bf16.mxu0 %v8733_v41  ;;  %7758 = vmatprep.subr.bf16.mxu1 %v8735_v42  ;;  %v1107_v40 = vld [vmem:[%s9601_s22 + $0x1af8] sm:$0xff]  ;;  %v8828_v41 = vcombine.low %v1082_v26, %v1090_v29  ;;  %v1170_v26 = vld [vmem:[%s9601_s22 + $0x1cf0] sm:$0xff] }
 0x42e   : > { %v10736_v42 = vld [vmem:[%s10153_s27 + $0x8] sm:$0xff]  ;;  %v8847_v45 = vcombine.high %v1099_v38, %v1107_v40  ;;  %v8846_v57 = vcombine.low %v1099_v38, %v1107_v40 }
 0x42f   : > { %v1315_v52 = vrot.slane %v10736_v42, %v1282_v27  ;;  %v1311_v54 = vrot.slane %v10736_v42, %v1278_v28  ;;  %v1138_v27 = vld [vmem:[%s9601_s22 + $0x1bf0] sm:$0xff]  ;;  %v1139_v28 = vld [vmem:[%s9601_s22 + $0x1bf8] sm:$0xff] }
 0x430   : > { %7595 = vmatpush1.bf16.msra.mxu0 %v8732_v47  ;;  %7759 = vmatpush1.bf16.msra.mxu1 %v8734_v48  ;;  %v1122_v47 = vld [vmem:[%s9601_s22 + $0x1b70] sm:$0xff]  ;;  %v1307_v48 = vrot.slane %v10736_v42, %v1274_v20  ;;  %v1319_v20 = vrot.slane %v10736_v42, %v1286_v30  ;;  %v1163_v29 = vld [vmem:[%s9601_s22 + $0x1cb8] sm:$0xff] }
 0x431   : > { %7596 = vmatprep.subr.bf16.mxu0 %v8749_v49  ;;  %7760 = vmatprep.subr.bf16.mxu1 %v8751_v50  ;;  %v1115_v49 = vld [vmem:[%s9601_s22 + $0x1b38] sm:$0xff]  ;;  %v8860_v30 = vcombine.low %v1114_v46, %v1122_v47 }
 0x432   : > { %v1123_v50 = vld [vmem:[%s9601_s22 + $0x1b78] sm:$0xff] }
 0x433   : > { %v8862_v9 = vcombine.low %v1115_v49, %v1123_v50  ;;  %v1179_v38 = vld [vmem:[%s9601_s22 + $0x1d38] sm:$0xff] }
 0x434   : > { %7597 = vmatpush1.bf16.msra.mxu0 %v8748_v22  ;;  %7761 = vmatpush1.bf16.msra.mxu1 %v8750_v60  ;;  %v8861_v22 = vcombine.high %v1114_v46, %v1122_v47  ;;  %v1187_v40 = vld [vmem:[%s9601_s22 + $0x1d78] sm:$0xff] }
 0x435   : > { %7607 = vmatprep.subr.bf16.mxu0 %v8765_v62  ;;  %7771 = vmatprep.subr.bf16.mxu1 %v8767_v63  ;;  %v8863_v62 = vcombine.high %v1115_v49, %v1123_v50  ;;  %v1130_v63 = vld [vmem:[%s9601_s22 + $0x1bb0] sm:$0xff] }
 0x436   : > { %v1194_v49 = vld [vmem:[%s9601_s22 + $0x1db0] sm:$0xff] }
 0x437   : > { %7599 = vmatmul.mubr.bf16.vlgmr.msra.gmra.mrb[12].mxu0 %v9843_v36  ;;  %7763 = vmatmul.mubr.bf16.vlgmr.msra.gmra.mrb[12].mxu1 %v9843_v36  ;;  %v8796_v36 = vcombine.low %v1050_v6, %v1058_v7  ;;  %v1202_v50 = vld [vmem:[%s9601_s22 + $0x1df0] sm:$0xff] }
 0x438   : > { %7608 = vmatpush1.bf16.msra.mxu0 %v8764_v3  ;;  %7772 = vmatpush1.bf16.msra.mxu1 %v8766_v15 }
 0x439   : > { %7609 = vmatprep.subr.bf16.mxu0 %v8781_v4  ;;  %7773 = vmatprep.subr.bf16.mxu1 %v8783_v5 }
 0x43a   : > { %7639 = vmatprep.mubr.bf16.mxu0 %v9853_v25  ;;  %7803 = vmatprep.mubr.bf16.mxu1 %v9853_v25  ;;  %v8814_v25 = vcombine.low %v1067_v19, %v1075_v21  ;;  %v1155_v19 = vld [vmem:[%s9601_s22 + $0x1c78] sm:$0xff]  ;;  %v8876_v21 = vcombine.low %v1130_v63, %v1138_v27 }
 0x43c   : > { %7610 = vmatpush1.bf16.msra.mxu0 %v8780_v10  ;;  %7774 = vmatpush1.bf16.msra.mxu1 %v8782_v13  ;;  %v8877_v10 = vcombine.high %v1130_v63, %v1138_v27  ;;  %v1211_v63 = vld [vmem:[%s9601_s22 + $0x1e38] sm:$0xff] }
 0x43d   : > { %7611 = vmatprep.subr.bf16.mxu0 %v8797_v14  ;;  %7775 = vmatprep.subr.bf16.mxu1 %v8799_v16  ;;  %v8879_v14 = vcombine.high %v1131_v2, %v1139_v28  ;;  %v1146_v16 = vld [vmem:[%s9601_s22 + $0x1c30] sm:$0xff]  ;;  %v1219_v27 = vld [vmem:[%s9601_s22 + $0x1e78] sm:$0xff] }
 0x43e   : > { %v8892_v32 = vcombine.low %v1146_v16, %v1154_v17 }
 0x440   : > { %7612 = vmatpush1.bf16.msra.mxu0 %v8796_v36  ;;  %7776 = vmatpush1.bf16.msra.mxu1 %v8798_v12  ;;  %v8878_v36 = vcombine.low %v1131_v2, %v1139_v28  ;;  %v8893_v12 = vcombine.high %v1146_v16, %v1154_v17  ;;  %v8959_v2 = vcombine.high %v1211_v63, %v1219_v27  ;;  %v1226_v28 = vld [vmem:[%s9601_s22 + $0x1eb0] sm:$0xff] }
 0x441   : > { %7613 = vmatprep.subr.bf16.mxu0 %v8813_v23  ;;  %7777 = vmatprep.subr.bf16.mxu1 %v8815_v24  ;;  %v8895_v23 = vcombine.high %v1147_v18, %v1155_v19  ;;  %v1162_v24 = vld [vmem:[%s9601_s22 + $0x1cb0] sm:$0xff] }
 0x444   : > { %7614 = vmatpush1.bf16.msra.mxu0 %v8812_v33  ;;  %7778 = vmatpush1.bf16.msra.mxu1 %v8814_v25  ;;  %v8894_v33 = vcombine.low %v1147_v18, %v1155_v19  ;;  %v8909_v25 = vcombine.high %v1162_v24, %v1170_v26  ;;  %v1258_v19 = vld [vmem:[%s9601_s22 + $0x1fb0] sm:$0xff] }
 0x445   : > { %7615 = vmatprep.subr.bf16.mxu0 %v8829_v34  ;;  %7779 = vmatprep.subr.bf16.mxu1 %v8831_v53  ;;  %v8911_v34 = vcombine.high %v1163_v29, %v1171_v31  ;;  %v1178_v53 = vld [vmem:[%s9601_s22 + $0x1d30] sm:$0xff] }
 0x446   : > { %v8925_v46 = vcombine.high %v1178_v53, %v1186_v35 }
 0x448   : > { %7616 = vmatpush1.bf16.msra.mxu0 %v8828_v41  ;;  %7780 = vmatpush1.bf16.msra.mxu1 %v8830_v43  ;;  %v8908_v43 = vcombine.low %v1162_v24, %v1170_v26 }
 0x449   : > { %7617 = vmatprep.subr.bf16.mxu0 %v8845_v44  ;;  %7781 = vmatprep.subr.bf16.mxu1 %v8847_v45  ;;  %v8910_v45 = vcombine.low %v1163_v29, %v1171_v31 }
 0x44a   : > { %v7313_v60 = vpop.f32.mrb[8].mxu0  ;;  %v7477_v39 = vpop.f32.mrb[8].mxu1 }
 0x44b   : > { %v9024_v0 = vadd.f32 %v7313_v60, %v1307_v48  ;;  %v7315_v1 = vpop.f32.mrb[9].mxu0  ;;  %v9026_v3 = vadd.f32 %v7477_v39, %v1315_v52  ;;  %v7479_v4 = vpop.f32.mrb[9].mxu1  ;;  %v8927_v48 = vcombine.high %v1179_v38, %v1187_v40  ;;  %v1195_v52 = vld [vmem:[%s9601_s22 + $0x1db8] sm:$0xff]  ;;  %v1210_v60 = vld [vmem:[%s9601_s22 + $0x1e30] sm:$0xff] }
 0x44c   : > { %v9025_v15 = vadd.f32 %v7315_v1, %v1311_v54  ;;  %v7317_v5 = vpop.f32.mrb[10].mxu0  ;;  %7618 = vmatpush1.bf16.msra.mxu0 %v8844_v56  ;;  %v9027_v6 = vadd.f32 %v7479_v4, %v1319_v20  ;;  %v7481_v7 = vpop.f32.mrb[10].mxu1  ;;  %7782 = vmatpush1.bf16.msra.mxu1 %v8846_v57  ;;  %v1203_v54 = vld [vmem:[%s9601_s22 + $0x1df8] sm:$0xff]  ;;  %v8924_v56 = vcombine.low %v1178_v53, %v1186_v35 }
 0x44d   : > { %9217 = vtanh.f32 %v9024_v0  ;;  %v7318_v8 = vpop.f32.mrb[11].mxu0  ;;  %7619 = vmatprep.subr.bf16.mxu0 %v8861_v22  ;;  %v7482_v13 = vpop.f32.mrb[11].mxu1  ;;  %7783 = vmatprep.subr.bf16.mxu1 %v8863_v62  ;;  %v8926_v20 = vcombine.low %v1179_v38, %v1187_v40  ;;  %v8941_v57 = vcombine.high %v1194_v49, %v1202_v50  ;;  %v8943_v22 = vcombine.high %v1195_v52, %v1203_v54  ;;  %v1218_v62 = vld [vmem:[%s9601_s22 + $0x1e70] sm:$0xff]  ;;  %v1235_v4 = vld [vmem:[%s9601_s22 + $0x1ef8] sm:$0xff] }
 0x44e   : > { %9219 = vtanh.f32 %v9026_v3  ;;  %v8940_v0 = vcombine.low %v1194_v49, %v1202_v50  ;;  %v8942_v39 = vcombine.low %v1195_v52, %v1203_v54  ;;  %v8957_v1 = vcombine.high %v1210_v60, %v1218_v62  ;;  %v1234_v3 = vld [vmem:[%s9601_s22 + $0x1ef0] sm:$0xff]  ;;  %v1251_v13 = vld [vmem:[%s9601_s22 + $0x1f78] sm:$0xff] }
 0x44f   : > { %9221 = vtanh.f32 %v9025_v15  ;;  %v1227_v15 = vld [vmem:[%s9601_s22 + $0x1eb8] sm:$0xff]  ;;  %v8956_v5 = vcombine.low %v1210_v60, %v1218_v62  ;;  %v1242_v8 = vld [vmem:[%s9601_s22 + $0x1f30] sm:$0xff]  ;;  %v1335_v53 = vrot.slane %v10736_v42, %v1302_v61 }
 0x450   : > { %9223 = vtanh.f32 %v9027_v6  ;;  %7620 = vmatpush1.bf16.msra.mxu0 %v8860_v30  ;;  %7784 = vmatpush1.bf16.msra.mxu1 %v8862_v9  ;;  %v8958_v30 = vcombine.low %v1211_v63, %v1219_v27  ;;  %v8973_v6 = vcombine.high %v1226_v28, %v1234_v3  ;;  %v8975_v7 = vcombine.high %v1227_v15, %v1235_v4  ;;  %v1250_v9 = vld [vmem:[%s9601_s22 + $0x1f70] sm:$0xff] }
 0x451   : > { %7621 = vmatprep.subr.bf16.mxu0 %v8877_v10  ;;  %7785 = vmatprep.subr.bf16.mxu1 %v8879_v14  ;;  %v1243_v10 = vld [vmem:[%s9601_s22 + $0x1f38] sm:$0xff]  ;;  %v8972_v14 = vcombine.low %v1226_v28, %v1234_v3  ;;  %v8974_v16 = vcombine.low %v1227_v15, %v1235_v4  ;;  %v8989_v17 = vcombine.high %v1242_v8, %v1250_v9 }
 0x452   : > { %v8991_v18 = vcombine.high %v1243_v10, %v1251_v13  ;;  %v8990_v24 = vcombine.low %v1243_v10, %v1251_v13 }
 0x454   : > { %7622 = vmatpush1.bf16.msra.mxu0 %v8876_v21  ;;  %7786 = vmatpush1.bf16.msra.mxu1 %v8878_v36  ;;  %v1266_v21 = vld [vmem:[%s9601_s22 + $0x1ff0] sm:$0xff]  ;;  %v1259_v36 = vld [vmem:[%s9601_s22 + $0x1fb8] sm:$0xff] }
 0x455   : > { %7623 = vmatprep.subr.bf16.mxu0 %v8893_v12  ;;  %7787 = vmatprep.subr.bf16.mxu1 %v8895_v23  ;;  %v1267_v12 = vld [vmem:[%s9601_s22 + $0x1ff8] sm:$0xff]  ;;  %v8988_v23 = vcombine.low %v1242_v8, %v1250_v9  ;;  %v9005_v26 = vcombine.high %v1258_v19, %v1266_v21  ;;  %v9004_v31 = vcombine.low %v1258_v19, %v1266_v21 }
 0x456   : > { %v9007_v29 = vcombine.high %v1259_v36, %v1267_v12 }
 0x457   : > { %v9218_v37 = vpop.eup %9217 }
 0x458   : > { %v9220_v41 = vpop.eup %9219  ;;  %7836 = vst [vmem:[%s10188_s10 + $0x40] sm:$0xff] %v9218_v37  ;;  %7624 = vmatpush1.bf16.msra.mxu0 %v8892_v32  ;;  %7788 = vmatpush1.bf16.msra.mxu1 %v8894_v33  ;;  %v9006_v32 = vcombine.low %v1259_v36, %v1267_v12  ;;  %v1323_v33 = vrot.slane %v10736_v42, %v1290_v51 }
 0x459   : > { %v9222_v44 = vpop.eup %9221  ;;  %7838 = vst [vmem:[%s10188_s10 + $0x50] sm:$0xff] %v9220_v41  ;;  %7625 = vmatprep.subr.bf16.mxu0 %v8909_v25  ;;  %7789 = vmatprep.subr.bf16.mxu1 %v8911_v34  ;;  %v1331_v25 = vrot.slane %v10736_v42, %v1298_v58  ;;  %v1327_v34 = vrot.slane %v10736_v42, %v1294_v59 }
 0x45a   : > { %v9224_v47 = vpop.eup %9223  ;;  %7837 = vst [vmem:[%s10188_s10 + $0x48] sm:$0xff] %v9222_v44 }
 0x45b   : > { %7839 = vst [vmem:[%s10188_s10 + $0x58] sm:$0xff] %v9224_v47 }
 0x45c   : > { %7626 = vmatpush1.bf16.msra.mxu0 %v8908_v43  ;;  %7790 = vmatpush1.bf16.msra.mxu1 %v8910_v45 }
 0x45d   : > { %7627 = vmatprep.subr.bf16.mxu0 %v8925_v46  ;;  %7791 = vmatprep.subr.bf16.mxu1 %v8927_v48 }
 0x460   : > { %7628 = vmatpush1.bf16.msra.mxu0 %v8924_v56  ;;  %7792 = vmatpush1.bf16.msra.mxu1 %v8926_v20 }
 0x461   : > { %7629 = vmatprep.subr.bf16.mxu0 %v8941_v57  ;;  %7793 = vmatprep.subr.bf16.mxu1 %v8943_v22 }
 0x464   : > { %7630 = vmatpush1.bf16.msra.mxu0 %v8940_v0  ;;  %7794 = vmatpush1.bf16.msra.mxu1 %v8942_v39 }
 0x465   : > { %7631 = vmatprep.subr.bf16.mxu0 %v8957_v1  ;;  %7795 = vmatprep.subr.bf16.mxu1 %v8959_v2 }
 0x468   : > { %7632 = vmatpush1.bf16.msra.mxu0 %v8956_v5  ;;  %7796 = vmatpush1.bf16.msra.mxu1 %v8958_v30 }
 0x469   : > { %7633 = vmatprep.subr.bf16.mxu0 %v8973_v6  ;;  %7797 = vmatprep.subr.bf16.mxu1 %v8975_v7 }
 0x46c   : > { %7634 = vmatpush1.bf16.msra.mxu0 %v8972_v14  ;;  %7798 = vmatpush1.bf16.msra.mxu1 %v8974_v16 }
 0x46d   : > { %7635 = vmatprep.subr.bf16.mxu0 %v8989_v17  ;;  %7799 = vmatprep.subr.bf16.mxu1 %v8991_v18 }
 0x470   : > { %7636 = vmatpush1.bf16.msra.mxu0 %v8988_v23  ;;  %7800 = vmatpush1.bf16.msra.mxu1 %v8990_v24 }
 0x471   : > { %7637 = vmatprep.subr.bf16.mxu0 %v9005_v26  ;;  %7801 = vmatprep.subr.bf16.mxu1 %v9007_v29 }
 0x474   : > { %7638 = vmatpush1.bf16.msra.mxu0 %v9004_v31  ;;  %7802 = vmatpush1.bf16.msra.mxu1 %v9006_v32 }
 0x477   : > { %7640 = vmatmul.mubr.bf16.vlgmr.msra.gmra.mrb[12].mxu0 %v9921_v55  ;;  %7804 = vmatmul.mubr.bf16.vlgmr.msra.gmra.mrb[12].mxu1 %v9921_v55 }
 0x54a   : > { %v7641_v35 = vpop.f32.mrb[12].mxu0  ;;  %v7805_v55 = vpop.f32.mrb[12].mxu1 }
 0x54b   : > { %v9028_v37 = vadd.f32 %v7641_v35, %v1323_v33  ;;  %v7643_v38 = vpop.f32.mrb[13].mxu0  ;;  %v9030_v40 = vadd.f32 %v7805_v55, %v1331_v25  ;;  %v7807_v41 = vpop.f32.mrb[13].mxu1 }
 0x54c   : > { %v9029_v51 = vadd.f32 %v7643_v38, %v1327_v34  ;;  %v7645_v58 = vpop.f32.mrb[14].mxu0  ;;  %v9031_v43 = vadd.f32 %v7807_v41, %v1335_v53  ;;  %v7809_v44 = vpop.f32.mrb[14].mxu1 }
 0x54d   : > { %9225 = vtanh.f32 %v9028_v37  ;;  %v7646_v59 = vpop.f32.mrb[15].mxu0  ;;  %v7810_v11 = vpop.f32.mrb[15].mxu1 }
 0x54e   : > { %9227 = vtanh.f32 %v9030_v40 }
 0x54f   : > { %9229 = vtanh.f32 %v9029_v51 }
 0x550   : > { %9231 = vtanh.f32 %v9031_v43 }
 0x557   : > { %v9226_v61 = vpop.eup %9225 }
 0x558   : > { %v9228_v42 = vpop.eup %9227  ;;  %7840 = vst [vmem:[%s10188_s10 + $0x60] sm:$0xff] %v9226_v61 }
 0x559   : > { %v9230_v45 = vpop.eup %9229  ;;  %7842 = vst [vmem:[%s10188_s10 + $0x70] sm:$0xff] %v9228_v42 }
 0x55a   : > { %v9232_v46 = vpop.eup %9231  ;;  %7841 = vst [vmem:[%s10188_s10 + $0x68] sm:$0xff] %v9230_v45 }
 0x55b   : > { %7843 = vst [vmem:[%s10188_s10 + $0x78] sm:$0xff] %v9232_v46 }
 0x55c   : > { %9335 = shalt.err (!%p9332_p1)
}
 0x55d   : > { %s9336_s17 = scalar_lea.hbm %s10815_s5, 2048  ;;  %s9340_s21 = scalar_lea.hbm %s10863_s3, 65536 }
 0x55e   : > { %p9337_p5 = scmp.ne.s32.totalorder %s10815_s5, %s9336_s17  ;;  %p9341_p6 = scmp.lt.u32.totalorder %s10815_s5, %s10863_s3 }
 0x55f   : > { %p9342_p8 = scmp.lt.u32.totalorder %s9340_s21, %s9336_s17  ;;  %p9344_p11 = scmp.lt.u32.totalorder %s9336_s17, %s10815_s5 }
 0x560   : > { %p9338_p4 = pnand %p9337_p5, %p10884_p3 }
 0x561   : > { %p9343_p13 = por %p9342_p8, %p9341_p6 }
 0x562   : > { %p9339_p2 = pneg %p9338_p4 }
 0x563   : > { %p9345_p0 = por %p9344_p11, %p9343_p13 }
 0x565   : > { %p9346_p10 = pnand %p9345_p0, %p9339_p2 }
 0x567   : > { %9349 = shalt.err (!%p9346_p10)
}
 0x568   : > { %9136 = dma.vmem_to_hbm [thread:$0]  (%p10884_p3), %s10817_s23, 2048, %s10815_s5, %s7845_s24  }
 0x569 PF: > { %p9156_p12 = scmp.ge.s32.totalorder %s9392_s15, 2  ;;  %s7871_s27 = sand.u32 1, %s9380_s12  }
 0x56a   : > { %p10885_p9 = scmp.ne.s32.totalorder %s10874_s28, 0  ;;  %s7872_s4 = scalar_lea.sflag [#allocation4], %s7871_s27 }
 0x56c   : > { %p9150_p7 = pnand %p9156_p12, %p10885_p9 }
 0x56e   : > { %9375 = dma.done.wait (!%p9150_p7), %s7872_s4, 2048  }
 0x56f   : > { %9377 = vsyncadd (!%p9150_p7), %s7872_s4, 4294965248  ;;  %p17_p1 = scmp.ge.s32.totalorder %s9442_s16, 34   ;;  %s10886_s12 = smov %s9384_s13 }
 0x570   : > { %s10887_s13 = smov %s9388_s14  ;;  %s10888_s14 = smov %s9452_s19 }
 0x571   : > { %s10889_s15 = smov %s9442_s16  ;;  %19 = sbr.rel (!%p17_p1) target bundleno = 6 (0x6), region = 93 }
 0x578   :  { %7877 = vsyncpa [#allocation3], 1 }
 0x579   :  { %7879 = vsyncpa [#allocation3 + $0x1], 1 }
 0x57a   :  { %7880 = vsyncpa [#allocation6], 1 }
 0x57b   :  { %7882 = vsyncpa [#allocation6 + $0x1], 1 }
 0x57c   :  { %7883 = vsyncpa [#allocation4], 1 }
 0x57d   :  { %7885 = vsyncpa [#allocation4 + $0x1], 1 }

</bundles_post_ra>
